<compile_context>
chip_gen: v5e
topology: v5e:2x2
jax: 0.10.0
libtpu: 0.0.40
codegen_flags: <defaults>
</compile_context>

<pallas_src>
import jax
import jax.numpy as jnp
from jax import lax
from jax.experimental import pallas as pl
from jax.experimental.pallas import tpu as pltpu


# ----------------------------------------------------------------------------
# Helpers
# ----------------------------------------------------------------------------

_TM_MAX, _TN_MAX, _TK_MAX = 256, 256, 512
_VMEM_LIMIT = 32 * 1024 * 1024


def _ceil_to(x, m):
    return ((x + m - 1) // m) * m


# ----------------------------------------------------------------------------
# Pallas kernels
# ----------------------------------------------------------------------------

def _make_matmul_kernel(fuse_bias_tanh, emit_stats):
    """Tiled MXU matmul; optional fused tanh(x+bias) epilogue; optional
    per-tile column sum / sum-of-squares outputs (for BatchNorm stats)."""

    def kernel(*refs):
        idx = 0
        a_ref = refs[idx]; idx += 1
        b_ref = refs[idx]; idx += 1
        bias_ref = None
        if fuse_bias_tanh:
            bias_ref = refs[idx]; idx += 1
        o_ref = refs[idx]; idx += 1
        stats_ref = None
        if emit_stats:
            stats_ref = refs[idx]; idx += 1
        acc_ref = refs[idx]

        @pl.when(pl.program_id(2) == 0)
        def _():
            acc_ref[...] = jnp.zeros_like(acc_ref)

        acc_ref[...] += jnp.dot(a_ref[...], b_ref[...],
                                preferred_element_type=jnp.float32)

        @pl.when(pl.program_id(2) == pl.num_programs(2) - 1)
        def _():
            acc = acc_ref[...]
            if fuse_bias_tanh:
                acc = jnp.tanh(acc + bias_ref[...])
            o_ref[...] = acc.astype(o_ref.dtype)
            if emit_stats:
                colsum = jnp.sum(acc, axis=0, keepdims=True)
                colsq = jnp.sum(acc * acc, axis=0, keepdims=True)
                row = lax.broadcasted_iota(jnp.int32, stats_ref.shape, 0)
                stats_ref[...] = jnp.where(
                    row == 0, colsum, jnp.where(row == 1, colsq, 0.0))

    return kernel


def matmul_pallas(a, b, *, bias_tanh=None, emit_stats=False):
    """(M, K) @ (K, N) -> (M, N) f32. bf16 operands, f32 accumulation.

    bias_tanh: if given, fuse tanh(out + bias) in the epilogue.
    emit_stats: also return per-column (sum, sum_sq) of the (valid) output.
    """
    assert not (emit_stats and bias_tanh is not None)
    M, K = a.shape
    K2, N = b.shape
    assert K == K2

    tm = min(_TM_MAX, _ceil_to(M, 128))
    tn = min(_TN_MAX, _ceil_to(N, 128))
    tk = min(_TK_MAX, _ceil_to(K, 128))
    Mp, Np, Kp = _ceil_to(M, tm), _ceil_to(N, tn), _ceil_to(K, tk)
    gm, gn, gk = Mp // tm, Np // tn, Kp // tk

    a = a.astype(jnp.bfloat16)
    b = b.astype(jnp.bfloat16)
    if (Mp, Kp) != (M, K):
        a = jnp.pad(a, ((0, Mp - M), (0, Kp - K)))
    if (Kp, Np) != (K, N):
        b = jnp.pad(b, ((0, Kp - K), (0, Np - N)))

    inputs = [a, b]
    in_specs = [pl.BlockSpec((tm, tk), lambda i, j, k: (i, k)),
                pl.BlockSpec((tk, tn), lambda i, j, k: (k, j))]
    if bias_tanh is not None:
        bp = jnp.zeros((1, Np), jnp.float32).at[0, :N].set(
            bias_tanh.astype(jnp.float32))
        inputs.append(bp)
        in_specs.append(pl.BlockSpec((1, tn), lambda i, j, k: (0, j)))

    out_specs = [pl.BlockSpec((tm, tn), lambda i, j, k: (i, j))]
    out_shapes = [jax.ShapeDtypeStruct((Mp, Np), jnp.float32)]
    if emit_stats:
        out_specs.append(pl.BlockSpec((8, tn), lambda i, j, k: (i, j)))
        out_shapes.append(jax.ShapeDtypeStruct((gm * 8, Np), jnp.float32))

    cost = pl.CostEstimate(
        flops=2 * Mp * Np * Kp,
        transcendentals=Mp * Np if bias_tanh is not None else 0,
        bytes_accessed=(Mp * Kp + Kp * Np) * 2 + Mp * Np * 4)

    res = pl.pallas_call(
        _make_matmul_kernel(bias_tanh is not None, emit_stats),
        out_shape=tuple(out_shapes) if emit_stats else out_shapes[0],
        grid_spec=pltpu.PrefetchScalarGridSpec(
            num_scalar_prefetch=0,
            grid=(gm, gn, gk),
            in_specs=in_specs,
            out_specs=out_specs if emit_stats else out_specs[0],
            scratch_shapes=[pltpu.VMEM((tm, tn), jnp.float32)]),
        compiler_params=pltpu.CompilerParams(
            dimension_semantics=("parallel", "parallel", "arbitrary"),
            vmem_limit_bytes=_VMEM_LIMIT),
        cost_estimate=cost,
    )(*inputs)

    if emit_stats:
        out, stats = res
        st = stats.reshape(gm, 8, Np)
        colsum = jnp.sum(st[:, 0, :N], axis=0)
        colsq = jnp.sum(st[:, 1, :N], axis=0)
        return out[:M, :N], (colsum, colsq)
    return res[:M, :N]


def _affine_kernel(x_ref, s_ref, b_ref, o_ref):
    o_ref[...] = x_ref[...] * s_ref[...] + b_ref[...]


def fused_affine(x, scale, shift):
    """Per-column y = x * scale + shift on an (M, C) array, tiled on both axes."""
    M, C = x.shape
    Cp = _ceil_to(C, 128)
    tc = 256 if Cp % 256 == 0 else 128
    Mp8 = _ceil_to(M, 8)
    tm = Mp8 if Mp8 <= 1024 else 1024
    Mp = _ceil_to(M, tm)

    xp = x.astype(jnp.float32)
    if (Mp, Cp) != (M, C):
        xp = jnp.pad(xp, ((0, Mp - M), (0, Cp - C)))
    sp = jnp.zeros((1, Cp), jnp.float32).at[0, :C].set(scale)
    bp = jnp.zeros((1, Cp), jnp.float32).at[0, :C].set(shift)

    out = pl.pallas_call(
        _affine_kernel,
        out_shape=jax.ShapeDtypeStruct((Mp, Cp), jnp.float32),
        grid_spec=pltpu.PrefetchScalarGridSpec(
            num_scalar_prefetch=0,
            grid=(Mp // tm, Cp // tc),
            in_specs=[pl.BlockSpec((tm, tc), lambda i, j: (i, j)),
                      pl.BlockSpec((1, tc), lambda i, j: (0, j)),
                      pl.BlockSpec((1, tc), lambda i, j: (0, j))],
            out_specs=pl.BlockSpec((tm, tc), lambda i, j: (i, j))),
        compiler_params=pltpu.CompilerParams(
            dimension_semantics=("parallel", "parallel"),
            vmem_limit_bytes=_VMEM_LIMIT),
    )(xp, sp, bp)
    return out[:M, :C]


# ----------------------------------------------------------------------------
# Conv / ConvTranspose / BatchNorm building blocks
# ----------------------------------------------------------------------------

def leaky_relu(x, slope=0.2):
    return jnp.where(x >= 0, x, slope * x)


def _bn_scale_shift(colsum, colsq, count, gamma, beta, eps=1e-5):
    mean = colsum / count
    var = colsq / count - mean * mean          # biased (training-mode) variance
    scale = gamma * lax.rsqrt(var + eps)
    shift = beta - mean * scale
    return scale, shift


def _im2col(x, kh, kw, stride):
    """x NHWC (already padded). Returns bf16 (N*oh*ow, kh*kw*C) and (N, oh, ow)."""
    N, H, W, C = x.shape
    oh = (H - kh) // stride + 1
    ow = (W - kw) // stride + 1
    cols = []
    for i in range(kh):
        for j in range(kw):
            cols.append(x[:, i:i + (oh - 1) * stride + 1:stride,
                          j:j + (ow - 1) * stride + 1:stride, :])
    patches = jnp.stack(cols, axis=3)                 # (N, oh, ow, kh*kw, C)
    return (patches.reshape(N * oh * ow, kh * kw * C).astype(jnp.bfloat16),
            (N, oh, ow))


def conv4x4_s2(x, w, *, with_stats=False):
    """Conv2d(k=4, stride=2, pad=1, bias=False). x NHWC; w (Cout, Cin, 4, 4)."""
    N, H, W, Cin = x.shape
    Cout = w.shape[0]
    xp = jnp.pad(x, ((0, 0), (1, 1), (1, 1), (0, 0)))
    a, (_, oh, ow) = _im2col(xp, 4, 4, 2)
    wm = jnp.transpose(w, (2, 3, 1, 0)).reshape(16 * Cin, Cout)
    if with_stats:
        y, (cs, cq) = matmul_pallas(a, wm, emit_stats=True)
        return y, (N, oh, ow, Cout), (cs, cq, N * oh * ow)
    y = matmul_pallas(a, wm)
    return y, (N, oh, ow, Cout)


def conv_bn(x, w, gamma, beta):
    """LeakyReLU has already been applied by the caller; conv -> BN (batch stats)."""
    yflat, shape, (cs, cq, cnt) = conv4x4_s2(x, w, with_stats=True)
    scale, shift = _bn_scale_shift(cs, cq, cnt, gamma, beta)
    return fused_affine(yflat, scale, shift).reshape(shape)


def _convt_phase_matmuls(x, w_t, *, bias_tanh=None, emit_stats=False):
    """ConvTranspose2d(k=4, stride=2, pad=1) via sub-pixel decomposition.

    x NHWC; w_t PyTorch ConvTranspose layout (Cin, Cout, 4, 4).
    Returns four phase outputs (each flat (N*H*W, Cout)), output dims, stats.
    """
    N, H, W, Cin = x.shape
    Cout = w_t.shape[1]
    xp = jnp.pad(x, ((0, 0), (1, 1), (1, 1), (0, 0)))
    phases = []
    cs_tot = None
    cq_tot = None
    for pr in range(2):
        for pc in range(2):
            cols = []
            wrows = []
            for di in range(2):
                for dj in range(2):
                    cols.append(xp[:, pr + di: pr + di + H,
                                   pc + dj: pc + dj + W, :])
                    wrows.append(w_t[:, :, (3 - pr) - 2 * di, (3 - pc) - 2 * dj])
            a = jnp.stack(cols, axis=3).reshape(
                N * H * W, 4 * Cin).astype(jnp.bfloat16)
            wm = jnp.concatenate(wrows, axis=0)        # (4*Cin, Cout)
            if emit_stats:
                y, (cs, cq) = matmul_pallas(a, wm, emit_stats=True)
                cs_tot = cs if cs_tot is None else cs_tot + cs
                cq_tot = cq if cq_tot is None else cq_tot + cq
            else:
                y = matmul_pallas(a, wm, bias_tanh=bias_tanh)
            phases.append(y)
    stats = (cs_tot, cq_tot, 4 * N * H * W) if emit_stats else None
    return phases, (N, H, W, Cout), stats


def _interleave_phases(phases, dims):
    """[p00, p01, p10, p11] flat (N*H*W, Cout) -> (N, 2H, 2W, Cout)."""
    N, H, W, Cout = dims
    ph = [p.reshape(N, H, W, Cout) for p in phases]
    y = jnp.stack([jnp.stack(ph[0:2], axis=3),
                   jnp.stack(ph[2:4], axis=3)], axis=2)   # (N, H, 2, W, 2, C)
    return y.reshape(N, 2 * H, 2 * W, Cout)


def convt_bn(x, w_t, gamma, beta):
    """ReLU applied by caller; ConvTranspose -> BN (stats over full output)."""
    phases, dims, (cs, cq, cnt) = _convt_phase_matmuls(x, w_t, emit_stats=True)
    scale, shift = _bn_scale_shift(cs, cq, cnt, gamma, beta)
    phases = [fused_affine(p, scale, shift) for p in phases]
    return _interleave_phases(phases, dims)


def convt_bias_tanh(x, w_t, bias):
    """Outermost up: ConvTranspose(+bias) with fused Tanh epilogue."""
    phases, dims, _ = _convt_phase_matmuls(x, w_t, bias_tanh=bias)
    return _interleave_phases(phases, dims)


# ----------------------------------------------------------------------------
# Vector quantizer (standard VQ-VAE nearest-neighbour quantizer)
# ----------------------------------------------------------------------------

def vector_quantize(x_nhwc, codebook, commitment_cost):
    # TODO(synk): forward-only — straight-through estimator / stop_gradient in
    # the original VectorQuantizerBlock has no effect on forward values.
    N, H, W, C = x_nhwc.shape
    flat = x_nhwc.reshape(N * H * W, C)
    xe = matmul_pallas(flat, jnp.transpose(codebook))   # (NHW, num_embeddings)
    x2 = jnp.sum(flat * flat, axis=1, keepdims=True)
    e2 = jnp.sum(codebook * codebook, axis=1)[None, :]
    dist = x2 - 2.0 * xe + e2
    idx = jnp.argmin(dist, axis=1)
    quant = codebook[idx]
    loss = (1.0 + commitment_cost) * jnp.mean((quant - flat) ** 2)
    return quant.reshape(N, H, W, C), loss


# ----------------------------------------------------------------------------
# UnetGenerator forward
# ----------------------------------------------------------------------------

def unet_generator_forward(x_nchw, params):
    """Input NCHW; returns (output NCHW, vq loss scalar)."""
    x = jnp.transpose(x_nchw, (0, 2, 3, 1)).astype(jnp.float32)

    down = params["down"]             # outermost -> innermost
    up = params["up"]                 # innermost -> outermost

    # ---------------- down path ----------------
    skips = []
    hflat, shape = conv4x4_s2(x, down[0]["w"])            # outermost: conv only
    h = hflat.reshape(shape)
    skips.append(h)
    for blk in down[1:-1]:                                # LReLU -> conv -> BN
        h = conv_bn(leaky_relu(h), blk["w"], blk["gamma"], blk["beta"])
        skips.append(h)
    hflat, shape = conv4x4_s2(leaky_relu(h), down[-1]["w"])   # innermost: no BN
    h = hflat.reshape(shape)

    # ---------------- VQ bottleneck ----------------
    q, vq_loss = vector_quantize(h, params["codebook"],
                                 params["commitment_cost"])

    # ---------------- up path ----------------
    h = convt_bn(jnp.maximum(q, 0.0), up[0]["w"], up[0]["gamma"], up[0]["beta"])
    h = jnp.concatenate([skips[-1], h], axis=-1)
    for li, blk in enumerate(up[1:-1], start=1):
        h = convt_bn(jnp.maximum(h, 0.0), blk["w"], blk["gamma"], blk["beta"])
        h = jnp.concatenate([skips[-1 - li], h], axis=-1)
    out = convt_bias_tanh(jnp.maximum(h, 0.0), up[-1]["w"], up[-1]["bias"])

    return jnp.transpose(out, (0, 3, 1, 2)), vq_loss


# ----------------------------------------------------------------------------
# Deterministic synthetic parameters
# ----------------------------------------------------------------------------

def init_params(key, input_nc, output_nc, num_downs, ngf, num_embeddings,
                commitment_cost=0.25):
    assert num_downs >= 5
    keys = iter(jax.random.split(key, 4 * num_downs + 4))

    def conv_w(cout, cin, s=0.05):
        return jax.random.normal(next(keys), (cout, cin, 4, 4), jnp.float32) * s

    def convt_w(cin, cout, s=0.05):
        return jax.random.normal(next(keys), (cin, cout, 4, 4), jnp.float32) * s

    down_in = [input_nc, ngf, ngf * 2, ngf * 4] + [ngf * 8] * (num_downs - 4)
    down_out = [ngf, ngf * 2, ngf * 4, ngf * 8] + [ngf * 8] * (num_downs - 4)
    down = [dict(w=conv_w(co, ci),
                 gamma=jnp.ones((co,), jnp.float32),
                 beta=jnp.zeros((co,), jnp.float32))
            for ci, co in zip(down_in, down_out)]

    up_in = [ngf * 8] + [ngf * 16] * (num_downs - 5) + [ngf * 16, ngf * 8,
                                                        ngf * 4, ngf * 2]
    up_out = [ngf * 8] * (num_downs - 4) + [ngf * 4, ngf * 2, ngf, output_nc]
    up = [dict(w=convt_w(ci, co),
               gamma=jnp.ones((co,), jnp.float32),
               beta=jnp.zeros((co,), jnp.float32))
          for ci, co in zip(up_in, up_out)]
    up[-1]["bias"] = (jax.random.normal(next(keys), (output_nc,), jnp.float32)
                      * 0.05)

    embedding_dim = ngf * 8          # bottleneck is 1x1 spatially
    codebook = jax.random.normal(next(keys), (num_embeddings, embedding_dim),
                                 jnp.float32)
    return dict(down=down, up=up, codebook=codebook,
                commitment_cost=commitment_cost)


# ----------------------------------------------------------------------------
# Main
# ----------------------------------------------------------------------------

if __name__ == "__main__":
    BATCH, INPUT_NC, OUTPUT_NC, NGF = 2, 3, 3, 8
    NUM_DOWNS = 6                    # input spatial = 2**NUM_DOWNS -> 1x1 VQ
    SPATIAL = 2 ** NUM_DOWNS         # 64
    NUM_EMBEDDINGS = 64              # scaled down from 8192

    root = jax.random.PRNGKey(0)
    k_params, k_in = jax.random.split(root)
    params = init_params(k_params, INPUT_NC, OUTPUT_NC, NUM_DOWNS, NGF,
                         NUM_EMBEDDINGS)
    x = jax.random.normal(k_in, (BATCH, INPUT_NC, SPATIAL, SPATIAL),
                          jnp.float32)

    fwd = jax.jit(unet_generator_forward)
    out, vq_loss = fwd(x, params)
    jax.block_until_ready((out, vq_loss))

    assert out.shape == (BATCH, OUTPUT_NC, SPATIAL, SPATIAL)
    assert vq_loss.shape == ()
    assert bool(jnp.all(jnp.isfinite(out)))
    assert bool(jnp.isfinite(vq_loss))
    print("KERNEL_OK")
</pallas_src>

<mosaic_0001>
module attributes {stable_mosaic.version = 11 : i64} {
  func.func @kernel(%arg0: i32, %arg1: i32, %arg2: i32, %arg3: memref<256x128xbf16, #tpu.memory_space<vmem>>, %arg4: memref<128x128xbf16, #tpu.memory_space<vmem>>, %arg5: memref<256x128xf32, #tpu.memory_space<vmem>>, %arg6: memref<256x128xf32, #tpu.memory_space<vmem>>) attributes {dimension_semantics = [#tpu.dimension_semantics<parallel>, #tpu.dimension_semantics<parallel>, #tpu.dimension_semantics<arbitrary>], iteration_bounds = array<i64: 8, 1, 1>, scalar_prefetch = 0 : i64, scratch_operands = 1 : i64, tpu.core_type = #tpu.core_type<tc>, window_params = [{transform_indices = @transform_0, window_bounds = array<i64: 256, 128>}, {transform_indices = @transform_1, window_bounds = array<i64: 128, 128>}, {transform_indices = @transform_2, window_bounds = array<i64: 256, 128>}]} {
    %c0_i32 = arith.constant 0 : i32
    %0 = arith.cmpi eq, %arg2, %c0_i32 : i32
    %1 = arith.extui %0 : i1 to i32
    %c0_i32_0 = arith.constant 0 : i32
    %2 = arith.cmpi ne, %1, %c0_i32_0 : i32
    scf.if %2 {
      %cst_10 = arith.constant 0.000000e+00 : f32
      %12 = vector.broadcast %cst_10 : f32 to vector<256x128xf32>
      %c0_11 = arith.constant 0 : index
      %c0_12 = arith.constant 0 : index
      %13 = vector.load %arg6[%c0_11, %c0_12] : memref<256x128xf32, #tpu.memory_space<vmem>>, vector<256x128xf32>
      tpu.vector_store %arg6[%c0_11, %c0_12], %12 {strides = array<i32>} : memref<256x128xf32, #tpu.memory_space<vmem>>, vector<256x128xf32>,
    } else {
    }
    %c0 = arith.constant 0 : index
    %c0_1 = arith.constant 0 : index
    %3 = vector.load %arg6[%c0, %c0_1] : memref<256x128xf32, #tpu.memory_space<vmem>>, vector<256x128xf32>
    %c0_2 = arith.constant 0 : index
    %c0_3 = arith.constant 0 : index
    %4 = vector.load %arg3[%c0_2, %c0_3] : memref<256x128xbf16, #tpu.memory_space<vmem>>, vector<256x128xbf16>
    %c0_4 = arith.constant 0 : index
    %c0_5 = arith.constant 0 : index
    %5 = vector.load %arg4[%c0_4, %c0_5] : memref<128x128xbf16, #tpu.memory_space<vmem>>, vector<128x128xbf16>
    %cst = arith.constant dense<0.000000e+00> : vector<256x128xf32>
    %6 = tpu.matmul %4, %5, %cst {dimension_numbers = #tpu.dot_dimension_numbers<[1], [0], [0], [1], [0, 0, 1, 1], [], []>} : vector<256x128xbf16>, vector<128x128xbf16>, vector<256x128xf32> -> vector<256x128xf32>
    %7 = arith.addf %3, %6 : vector<256x128xf32>
    %c0_6 = arith.constant 0 : index
    %c0_7 = arith.constant 0 : index
    %8 = vector.load %arg6[%c0_6, %c0_7] : memref<256x128xf32, #tpu.memory_space<vmem>>, vector<256x128xf32>
    tpu.vector_store %arg6[%c0_6, %c0_7], %7 {strides = array<i32>} : memref<256x128xf32, #tpu.memory_space<vmem>>, vector<256x128xf32>,
    %c0_i32_8 = arith.constant 0 : i32
    %9 = arith.cmpi eq, %arg2, %c0_i32_8 : i32
    %10 = arith.extui %9 : i1 to i32
    %c0_i32_9 = arith.constant 0 : i32
    %11 = arith.cmpi ne, %10, %c0_i32_9 : i32
    scf.if %11 {
      %c0_10 = arith.constant 0 : index
      %c0_11 = arith.constant 0 : index
      %12 = vector.load %arg6[%c0_10, %c0_11] : memref<256x128xf32, #tpu.memory_space<vmem>>, vector<256x128xf32>
      %c0_12 = arith.constant 0 : index
      %c0_13 = arith.constant 0 : index
      %13 = vector.load %arg5[%c0_12, %c0_13] : memref<256x128xf32, #tpu.memory_space<vmem>>, vector<256x128xf32>
      tpu.vector_store %arg5[%c0_12, %c0_13], %12 {strides = array<i32>} : memref<256x128xf32, #tpu.memory_space<vmem>>, vector<256x128xf32>,
    } else {
    }
    return
  }
  func.func @transform_0(%arg0: i32, %arg1: i32, %arg2: i32) -> (i32, i32) {
    %c0_i32 = arith.constant 0 : i32
    return %arg0, %arg2 : i32, i32
  }
  func.func @transform_1(%arg0: i32, %arg1: i32, %arg2: i32) -> (i32, i32) {
    %c0_i32 = arith.constant 0 : i32
    return %arg2, %arg1 : i32, i32
  }
  func.func @transform_2(%arg0: i32, %arg1: i32, %arg2: i32) -> (i32, i32) {
    %c0_i32 = arith.constant 0 : i32
    return %arg0, %arg1 : i32, i32
  }
}

module attributes {stable_mosaic.version = 11 : i64} {
  func.func @kernel(%arg0: i32, %arg1: i32, %arg2: i32, %arg3: memref<256x128xbf16, #tpu.memory_space<vmem>>, %arg4: memref<128x128xbf16, #tpu.memory_space<vmem>>, %arg5: memref<256x128xf32, #tpu.memory_space<vmem>>, %arg6: memref<8x128xf32, #tpu.memory_space<vmem>>, %arg7: memref<256x128xf32, #tpu.memory_space<vmem>>) attributes {dimension_semantics = [#tpu.dimension_semantics<parallel>, #tpu.dimension_semantics<parallel>, #tpu.dimension_semantics<arbitrary>], iteration_bounds = array<i64: 2, 1, 1>, scalar_prefetch = 0 : i64, scratch_operands = 1 : i64, tpu.core_type = #tpu.core_type<tc>, window_params = [{transform_indices = @transform_0, window_bounds = array<i64: 256, 128>}, {transform_indices = @transform_1, window_bounds = array<i64: 128, 128>}, {transform_indices = @transform_2, window_bounds = array<i64: 256, 128>}, {transform_indices = @transform_3, window_bounds = array<i64: 8, 128>}]} {
    %c0_i32 = arith.constant 0 : i32
    %0 = arith.cmpi eq, %arg2, %c0_i32 : i32
    %1 = arith.extui %0 : i1 to i32
    %c0_i32_0 = arith.constant 0 : i32
    %2 = arith.cmpi ne, %1, %c0_i32_0 : i32
    scf.if %2 {
      %cst_10 = arith.constant 0.000000e+00 : f32
      %12 = vector.broadcast %cst_10 : f32 to vector<256x128xf32>
      %c0_11 = arith.constant 0 : index
      %c0_12 = arith.constant 0 : index
      %13 = vector.load %arg7[%c0_11, %c0_12] : memref<256x128xf32, #tpu.memory_space<vmem>>, vector<256x128xf32>
      tpu.vector_store %arg7[%c0_11, %c0_12], %12 {strides = array<i32>} : memref<256x128xf32, #tpu.memory_space<vmem>>, vector<256x128xf32>,
    } else {
    }
    %c0 = arith.constant 0 : index
    %c0_1 = arith.constant 0 : index
    %3 = vector.load %arg7[%c0, %c0_1] : memref<256x128xf32, #tpu.memory_space<vmem>>, vector<256x128xf32>
    %c0_2 = arith.constant 0 : index
    %c0_3 = arith.constant 0 : index
    %4 = vector.load %arg3[%c0_2, %c0_3] : memref<256x128xbf16, #tpu.memory_space<vmem>>, vector<256x128xbf16>
    %c0_4 = arith.constant 0 : index
    %c0_5 = arith.constant 0 : index
    %5 = vector.load %arg4[%c0_4, %c0_5] : memref<128x128xbf16, #tpu.memory_space<vmem>>, vector<128x128xbf16>
    %cst = arith.constant dense<0.000000e+00> : vector<256x128xf32>
    %6 = tpu.matmul %4, %5, %cst {dimension_numbers = #tpu.dot_dimension_numbers<[1], [0], [0], [1], [0, 0, 1, 1], [], []>} : vector<256x128xbf16>, vector<128x128xbf16>, vector<256x128xf32> -> vector<256x128xf32>
    %7 = arith.addf %3, %6 : vector<256x128xf32>
    %c0_6 = arith.constant 0 : index
    %c0_7 = arith.constant 0 : index
    %8 = vector.load %arg7[%c0_6, %c0_7] : memref<256x128xf32, #tpu.memory_space<vmem>>, vector<256x128xf32>
    tpu.vector_store %arg7[%c0_6, %c0_7], %7 {strides = array<i32>} : memref<256x128xf32, #tpu.memory_space<vmem>>, vector<256x128xf32>,
    %c0_i32_8 = arith.constant 0 : i32
    %9 = arith.cmpi eq, %arg2, %c0_i32_8 : i32
    %10 = arith.extui %9 : i1 to i32
    %c0_i32_9 = arith.constant 0 : i32
    %11 = arith.cmpi ne, %10, %c0_i32_9 : i32
    scf.if %11 {
      %c0_10 = arith.constant 0 : index
      %c0_11 = arith.constant 0 : index
      %12 = vector.load %arg7[%c0_10, %c0_11] : memref<256x128xf32, #tpu.memory_space<vmem>>, vector<256x128xf32>
      %c0_12 = arith.constant 0 : index
      %c0_13 = arith.constant 0 : index
      %13 = vector.load %arg5[%c0_12, %c0_13] : memref<256x128xf32, #tpu.memory_space<vmem>>, vector<256x128xf32>
      tpu.vector_store %arg5[%c0_12, %c0_13], %12 {strides = array<i32>} : memref<256x128xf32, #tpu.memory_space<vmem>>, vector<256x128xf32>,
      %cst_14 = arith.constant dense<0.000000e+00> : vector<128xf32>
      %14 = vector.multi_reduction <add>, %12, %cst_14 [0] : vector<256x128xf32> to vector<128xf32>
      %15 = vector.shape_cast %14 : vector<128xf32> to vector<1x128xf32>
      %16 = arith.mulf %12, %12 : vector<256x128xf32>
      %cst_15 = arith.constant dense<0.000000e+00> : vector<128xf32>
      %17 = vector.multi_reduction <add>, %16, %cst_15 [0] : vector<256x128xf32> to vector<128xf32>
      %18 = vector.shape_cast %17 : vector<128xf32> to vector<1x128xf32>
      %19 = tpu.iota {dimensions = array<i32: 0>} : vector<8x128xi32>
      %c0_i32_16 = arith.constant 0 : i32
      %20 = vector.broadcast %c0_i32_16 : i32 to vector<8x128xi32>
      %21 = arith.cmpi eq, %19, %20 : vector<8x128xi32>
      %c1_i32 = arith.constant 1 : i32
      %22 = vector.broadcast %c1_i32 : i32 to vector<8x128xi32>
      %23 = arith.cmpi eq, %19, %22 : vector<8x128xi32>
      %cst_17 = arith.constant 0.000000e+00 : f32
      %24 = vector.shape_cast %18 : vector<1x128xf32> to vector<1x128xf32>
      %25 = vector.broadcast %24 : vector<1x128xf32> to vector<8x128xf32>
      %26 = vector.broadcast %cst_17 : f32 to vector<8x128xf32>
      %27 = arith.select %23, %25, %26 : vector<8x128xi1>, vector<8x128xf32>
      %28 = vector.shape_cast %15 : vector<1x128xf32> to vector<1x128xf32>
      %29 = vector.broadcast %28 : vector<1x128xf32> to vector<8x128xf32>
      %30 = arith.select %21, %29, %27 : vector<8x128xi1>, vector<8x128xf32>
      %c0_18 = arith.constant 0 : index
      %c0_19 = arith.constant 0 : index
      %31 = vector.load %arg6[%c0_18, %c0_19] : memref<8x128xf32, #tpu.memory_space<vmem>>, vector<8x128xf32>
      tpu.vector_store %arg6[%c0_18, %c0_19], %30 {strides = array<i32>} : memref<8x128xf32, #tpu.memory_space<vmem>>, vector<8x128xf32>,
    } else {
    }
    return
  }
  func.func @transform_0(%arg0: i32, %arg1: i32, %arg2: i32) -> (i32, i32) {
    %c0_i32 = arith.constant 0 : i32
    return %arg0, %arg2 : i32, i32
  }
  func.func @transform_1(%arg0: i32, %arg1: i32, %arg2: i32) -> (i32, i32) {
    %c0_i32 = arith.constant 0 : i32
    return %arg2, %arg1 : i32, i32
  }
  func.func @transform_2(%arg0: i32, %arg1: i32, %arg2: i32) -> (i32, i32) {
    %c0_i32 = arith.constant 0 : i32
    return %arg0, %arg1 : i32, i32
  }
  func.func @transform_3(%arg0: i32, %arg1: i32, %arg2: i32) -> (i32, i32) {
    %c0_i32 = arith.constant 0 : i32
    return %arg0, %arg1 : i32, i32
  }
}

module attributes {stable_mosaic.version = 11 : i64} {
  func.func @_affine_kernel(%arg0: i32, %arg1: i32, %arg2: memref<512x128xf32, #tpu.memory_space<vmem>>, %arg3: memref<1x128xf32, #tpu.memory_space<vmem>>, %arg4: memref<1x128xf32, #tpu.memory_space<vmem>>, %arg5: memref<512x128xf32, #tpu.memory_space<vmem>>) attributes {dimension_semantics = [#tpu.dimension_semantics<parallel>, #tpu.dimension_semantics<parallel>], iteration_bounds = array<i64: 1, 1>, scalar_prefetch = 0 : i64, scratch_operands = 0 : i64, tpu.core_type = #tpu.core_type<tc>, window_params = [{transform_indices = @transform_0, window_bounds = array<i64: 512, 128>}, {transform_indices = @transform_1, window_bounds = array<i64: 1, 128>}, {transform_indices = @transform_2, window_bounds = array<i64: 1, 128>}, {transform_indices = @transform_3, window_bounds = array<i64: 512, 128>}]} {
    %c0 = arith.constant 0 : index
    %c0_0 = arith.constant 0 : index
    %0 = vector.load %arg2[%c0, %c0_0] : memref<512x128xf32, #tpu.memory_space<vmem>>, vector<512x128xf32>
    %c0_1 = arith.constant 0 : index
    %c0_2 = arith.constant 0 : index
    %1 = vector.load %arg3[%c0_1, %c0_2] : memref<1x128xf32, #tpu.memory_space<vmem>>, vector<1x128xf32>
    %2 = vector.broadcast %1 : vector<1x128xf32> to vector<512x128xf32>
    %3 = arith.mulf %0, %2 : vector<512x128xf32>
    %c0_3 = arith.constant 0 : index
    %c0_4 = arith.constant 0 : index
    %4 = vector.load %arg4[%c0_3, %c0_4] : memref<1x128xf32, #tpu.memory_space<vmem>>, vector<1x128xf32>
    %5 = vector.broadcast %4 : vector<1x128xf32> to vector<512x128xf32>
    %6 = arith.addf %3, %5 : vector<512x128xf32>
    %c0_5 = arith.constant 0 : index
    %c0_6 = arith.constant 0 : index
    %7 = vector.load %arg5[%c0_5, %c0_6] : memref<512x128xf32, #tpu.memory_space<vmem>>, vector<512x128xf32>
    tpu.vector_store %arg5[%c0_5, %c0_6], %6 {strides = array<i32>} : memref<512x128xf32, #tpu.memory_space<vmem>>, vector<512x128xf32>,
    return
  }
  func.func @transform_0(%arg0: i32, %arg1: i32) -> (i32, i32) {
    %c0_i32 = arith.constant 0 : i32
    return %arg0, %arg1 : i32, i32
  }
  func.func @transform_1(%arg0: i32, %arg1: i32) -> (i32, i32) {
    %c0_i32 = arith.constant 0 : i32
    %c0_i32_0 = arith.constant 0 : i32
    return %c0_i32, %arg1 : i32, i32
  }
  func.func @transform_2(%arg0: i32, %arg1: i32) -> (i32, i32) {
    %c0_i32 = arith.constant 0 : i32
    %c0_i32_0 = arith.constant 0 : i32
    return %c0_i32, %arg1 : i32, i32
  }
  func.func @transform_3(%arg0: i32, %arg1: i32) -> (i32, i32) {
    %c0_i32 = arith.constant 0 : i32
    return %arg0, %arg1 : i32, i32
  }
}

module attributes {stable_mosaic.version = 11 : i64} {
  func.func @kernel(%arg0: i32, %arg1: i32, %arg2: i32, %arg3: memref<128x256xbf16, #tpu.memory_space<vmem>>, %arg4: memref<256x128xbf16, #tpu.memory_space<vmem>>, %arg5: memref<128x128xf32, #tpu.memory_space<vmem>>, %arg6: memref<8x128xf32, #tpu.memory_space<vmem>>, %arg7: memref<128x128xf32, #tpu.memory_space<vmem>>) attributes {dimension_semantics = [#tpu.dimension_semantics<parallel>, #tpu.dimension_semantics<parallel>, #tpu.dimension_semantics<arbitrary>], iteration_bounds = array<i64: 1, 1, 1>, scalar_prefetch = 0 : i64, scratch_operands = 1 : i64, tpu.core_type = #tpu.core_type<tc>, window_params = [{transform_indices = @transform_0, window_bounds = array<i64: 128, 256>}, {transform_indices = @transform_1, window_bounds = array<i64: 256, 128>}, {transform_indices = @transform_2, window_bounds = array<i64: 128, 128>}, {transform_indices = @transform_3, window_bounds = array<i64: 8, 128>}]} {
    %c0_i32 = arith.constant 0 : i32
    %0 = arith.cmpi eq, %arg2, %c0_i32 : i32
    %1 = arith.extui %0 : i1 to i32
    %c0_i32_0 = arith.constant 0 : i32
    %2 = arith.cmpi ne, %1, %c0_i32_0 : i32
    scf.if %2 {
      %cst_10 = arith.constant 0.000000e+00 : f32
      %12 = vector.broadcast %cst_10 : f32 to vector<128x128xf32>
      %c0_11 = arith.constant 0 : index
      %c0_12 = arith.constant 0 : index
      %13 = vector.load %arg7[%c0_11, %c0_12] : memref<128x128xf32, #tpu.memory_space<vmem>>, vector<128x128xf32>
      tpu.vector_store %arg7[%c0_11, %c0_12], %12 {strides = array<i32>} : memref<128x128xf32, #tpu.memory_space<vmem>>, vector<128x128xf32>,
    } else {
    }
    %c0 = arith.constant 0 : index
    %c0_1 = arith.constant 0 : index
    %3 = vector.load %arg7[%c0, %c0_1] : memref<128x128xf32, #tpu.memory_space<vmem>>, vector<128x128xf32>
    %c0_2 = arith.constant 0 : index
    %c0_3 = arith.constant 0 : index
    %4 = vector.load %arg3[%c0_2, %c0_3] : memref<128x256xbf16, #tpu.memory_space<vmem>>, vector<128x256xbf16>
    %c0_4 = arith.constant 0 : index
    %c0_5 = arith.constant 0 : index
    %5 = vector.load %arg4[%c0_4, %c0_5] : memref<256x128xbf16, #tpu.memory_space<vmem>>, vector<256x128xbf16>
    %cst = arith.constant dense<0.000000e+00> : vector<128x128xf32>
    %6 = tpu.matmul %4, %5, %cst {dimension_numbers = #tpu.dot_dimension_numbers<[1], [0], [0], [1], [0, 0, 1, 1], [], []>} : vector<128x256xbf16>, vector<256x128xbf16>, vector<128x128xf32> -> vector<128x128xf32>
    %7 = arith.addf %3, %6 : vector<128x128xf32>
    %c0_6 = arith.constant 0 : index
    %c0_7 = arith.constant 0 : index
    %8 = vector.load %arg7[%c0_6, %c0_7] : memref<128x128xf32, #tpu.memory_space<vmem>>, vector<128x128xf32>
    tpu.vector_store %arg7[%c0_6, %c0_7], %7 {strides = array<i32>} : memref<128x128xf32, #tpu.memory_space<vmem>>, vector<128x128xf32>,
    %c0_i32_8 = arith.constant 0 : i32
    %9 = arith.cmpi eq, %arg2, %c0_i32_8 : i32
    %10 = arith.extui %9 : i1 to i32
    %c0_i32_9 = arith.constant 0 : i32
    %11 = arith.cmpi ne, %10, %c0_i32_9 : i32
    scf.if %11 {
      %c0_10 = arith.constant 0 : index
      %c0_11 = arith.constant 0 : index
      %12 = vector.load %arg7[%c0_10, %c0_11] : memref<128x128xf32, #tpu.memory_space<vmem>>, vector<128x128xf32>
      %c0_12 = arith.constant 0 : index
      %c0_13 = arith.constant 0 : index
      %13 = vector.load %arg5[%c0_12, %c0_13] : memref<128x128xf32, #tpu.memory_space<vmem>>, vector<128x128xf32>
      tpu.vector_store %arg5[%c0_12, %c0_13], %12 {strides = array<i32>} : memref<128x128xf32, #tpu.memory_space<vmem>>, vector<128x128xf32>,
      %cst_14 = arith.constant dense<0.000000e+00> : vector<128xf32>
      %14 = vector.multi_reduction <add>, %12, %cst_14 [0] : vector<128x128xf32> to vector<128xf32>
      %15 = vector.shape_cast %14 : vector<128xf32> to vector<1x128xf32>
      %16 = arith.mulf %12, %12 : vector<128x128xf32>
      %cst_15 = arith.constant dense<0.000000e+00> : vector<128xf32>
      %17 = vector.multi_reduction <add>, %16, %cst_15 [0] : vector<128x128xf32> to vector<128xf32>
      %18 = vector.shape_cast %17 : vector<128xf32> to vector<1x128xf32>
      %19 = tpu.iota {dimensions = array<i32: 0>} : vector<8x128xi32>
      %c0_i32_16 = arith.constant 0 : i32
      %20 = vector.broadcast %c0_i32_16 : i32 to vector<8x128xi32>
      %21 = arith.cmpi eq, %19, %20 : vector<8x128xi32>
      %c1_i32 = arith.constant 1 : i32
      %22 = vector.broadcast %c1_i32 : i32 to vector<8x128xi32>
      %23 = arith.cmpi eq, %19, %22 : vector<8x128xi32>
      %cst_17 = arith.constant 0.000000e+00 : f32
      %24 = vector.shape_cast %18 : vector<1x128xf32> to vector<1x128xf32>
      %25 = vector.broadcast %24 : vector<1x128xf32> to vector<8x128xf32>
      %26 = vector.broadcast %cst_17 : f32 to vector<8x128xf32>
      %27 = arith.select %23, %25, %26 : vector<8x128xi1>, vector<8x128xf32>
      %28 = vector.shape_cast %15 : vector<1x128xf32> to vector<1x128xf32>
      %29 = vector.broadcast %28 : vector<1x128xf32> to vector<8x128xf32>
      %30 = arith.select %21, %29, %27 : vector<8x128xi1>, vector<8x128xf32>
      %c0_18 = arith.constant 0 : index
      %c0_19 = arith.constant 0 : index
      %31 = vector.load %arg6[%c0_18, %c0_19] : memref<8x128xf32, #tpu.memory_space<vmem>>, vector<8x128xf32>
      tpu.vector_store %arg6[%c0_18, %c0_19], %30 {strides = array<i32>} : memref<8x128xf32, #tpu.memory_space<vmem>>, vector<8x128xf32>,
    } else {
    }
    return
  }
  func.func @transform_0(%arg0: i32, %arg1: i32, %arg2: i32) -> (i32, i32) {
    %c0_i32 = arith.constant 0 : i32
    return %arg0, %arg2 : i32, i32
  }
  func.func @transform_1(%arg0: i32, %arg1: i32, %arg2: i32) -> (i32, i32) {
    %c0_i32 = arith.constant 0 : i32
    return %arg2, %arg1 : i32, i32
  }
  func.func @transform_2(%arg0: i32, %arg1: i32, %arg2: i32) -> (i32, i32) {
    %c0_i32 = arith.constant 0 : i32
    return %arg0, %arg1 : i32, i32
  }
  func.func @transform_3(%arg0: i32, %arg1: i32, %arg2: i32) -> (i32, i32) {
    %c0_i32 = arith.constant 0 : i32
    return %arg0, %arg1 : i32, i32
  }
}

module attributes {stable_mosaic.version = 11 : i64} {
  func.func @_affine_kernel(%arg0: i32, %arg1: i32, %arg2: memref<128x128xf32, #tpu.memory_space<vmem>>, %arg3: memref<1x128xf32, #tpu.memory_space<vmem>>, %arg4: memref<1x128xf32, #tpu.memory_space<vmem>>, %arg5: memref<128x128xf32, #tpu.memory_space<vmem>>) attributes {dimension_semantics = [#tpu.dimension_semantics<parallel>, #tpu.dimension_semantics<parallel>], iteration_bounds = array<i64: 1, 1>, scalar_prefetch = 0 : i64, scratch_operands = 0 : i64, tpu.core_type = #tpu.core_type<tc>, window_params = [{transform_indices = @transform_0, window_bounds = array<i64: 128, 128>}, {transform_indices = @transform_1, window_bounds = array<i64: 1, 128>}, {transform_indices = @transform_2, window_bounds = array<i64: 1, 128>}, {transform_indices = @transform_3, window_bounds = array<i64: 128, 128>}]} {
    %c0 = arith.constant 0 : index
    %c0_0 = arith.constant 0 : index
    %0 = vector.load %arg2[%c0, %c0_0] : memref<128x128xf32, #tpu.memory_space<vmem>>, vector<128x128xf32>
    %c0_1 = arith.constant 0 : index
    %c0_2 = arith.constant 0 : index
    %1 = vector.load %arg3[%c0_1, %c0_2] : memref<1x128xf32, #tpu.memory_space<vmem>>, vector<1x128xf32>
    %2 = vector.broadcast %1 : vector<1x128xf32> to vector<128x128xf32>
    %3 = arith.mulf %0, %2 : vector<128x128xf32>
    %c0_3 = arith.constant 0 : index
    %c0_4 = arith.constant 0 : index
    %4 = vector.load %arg4[%c0_3, %c0_4] : memref<1x128xf32, #tpu.memory_space<vmem>>, vector<1x128xf32>
    %5 = vector.broadcast %4 : vector<1x128xf32> to vector<128x128xf32>
    %6 = arith.addf %3, %5 : vector<128x128xf32>
    %c0_5 = arith.constant 0 : index
    %c0_6 = arith.constant 0 : index
    %7 = vector.load %arg5[%c0_5, %c0_6] : memref<128x128xf32, #tpu.memory_space<vmem>>, vector<128x128xf32>
    tpu.vector_store %arg5[%c0_5, %c0_6], %6 {strides = array<i32>} : memref<128x128xf32, #tpu.memory_space<vmem>>, vector<128x128xf32>,
    return
  }
  func.func @transform_0(%arg0: i32, %arg1: i32) -> (i32, i32) {
    %c0_i32 = arith.constant 0 : i32
    return %arg0, %arg1 : i32, i32
  }
  func.func @transform_1(%arg0: i32, %arg1: i32) -> (i32, i32) {
    %c0_i32 = arith.constant 0 : i32
    %c0_i32_0 = arith.constant 0 : i32
    return %c0_i32, %arg1 : i32, i32
  }
  func.func @transform_2(%arg0: i32, %arg1: i32) -> (i32, i32) {
    %c0_i32 = arith.constant 0 : i32
    %c0_i32_0 = arith.constant 0 : i32
    return %c0_i32, %arg1 : i32, i32
  }
  func.func @transform_3(%arg0: i32, %arg1: i32) -> (i32, i32) {
    %c0_i32 = arith.constant 0 : i32
    return %arg0, %arg1 : i32, i32
  }
}

module attributes {stable_mosaic.version = 11 : i64} {
  func.func @kernel(%arg0: i32, %arg1: i32, %arg2: i32, %arg3: memref<128x512xbf16, #tpu.memory_space<vmem>>, %arg4: memref<512x128xbf16, #tpu.memory_space<vmem>>, %arg5: memref<128x128xf32, #tpu.memory_space<vmem>>, %arg6: memref<8x128xf32, #tpu.memory_space<vmem>>, %arg7: memref<128x128xf32, #tpu.memory_space<vmem>>) attributes {dimension_semantics = [#tpu.dimension_semantics<parallel>, #tpu.dimension_semantics<parallel>, #tpu.dimension_semantics<arbitrary>], iteration_bounds = array<i64: 1, 1, 1>, scalar_prefetch = 0 : i64, scratch_operands = 1 : i64, tpu.core_type = #tpu.core_type<tc>, window_params = [{transform_indices = @transform_0, window_bounds = array<i64: 128, 512>}, {transform_indices = @transform_1, window_bounds = array<i64: 512, 128>}, {transform_indices = @transform_2, window_bounds = array<i64: 128, 128>}, {transform_indices = @transform_3, window_bounds = array<i64: 8, 128>}]} {
    %c0_i32 = arith.constant 0 : i32
    %0 = arith.cmpi eq, %arg2, %c0_i32 : i32
    %1 = arith.extui %0 : i1 to i32
    %c0_i32_0 = arith.constant 0 : i32
    %2 = arith.cmpi ne, %1, %c0_i32_0 : i32
    scf.if %2 {
      %cst_10 = arith.constant 0.000000e+00 : f32
      %12 = vector.broadcast %cst_10 : f32 to vector<128x128xf32>
      %c0_11 = arith.constant 0 : index
      %c0_12 = arith.constant 0 : index
      %13 = vector.load %arg7[%c0_11, %c0_12] : memref<128x128xf32, #tpu.memory_space<vmem>>, vector<128x128xf32>
      tpu.vector_store %arg7[%c0_11, %c0_12], %12 {strides = array<i32>} : memref<128x128xf32, #tpu.memory_space<vmem>>, vector<128x128xf32>,
    } else {
    }
    %c0 = arith.constant 0 : index
    %c0_1 = arith.constant 0 : index
    %3 = vector.load %arg7[%c0, %c0_1] : memref<128x128xf32, #tpu.memory_space<vmem>>, vector<128x128xf32>
    %c0_2 = arith.constant 0 : index
    %c0_3 = arith.constant 0 : index
    %4 = vector.load %arg3[%c0_2, %c0_3] : memref<128x512xbf16, #tpu.memory_space<vmem>>, vector<128x512xbf16>
    %c0_4 = arith.constant 0 : index
    %c0_5 = arith.constant 0 : index
    %5 = vector.load %arg4[%c0_4, %c0_5] : memref<512x128xbf16, #tpu.memory_space<vmem>>, vector<512x128xbf16>
    %cst = arith.constant dense<0.000000e+00> : vector<128x128xf32>
    %6 = tpu.matmul %4, %5, %cst {dimension_numbers = #tpu.dot_dimension_numbers<[1], [0], [0], [1], [0, 0, 1, 1], [], []>} : vector<128x512xbf16>, vector<512x128xbf16>, vector<128x128xf32> -> vector<128x128xf32>
    %7 = arith.addf %3, %6 : vector<128x128xf32>
    %c0_6 = arith.constant 0 : index
    %c0_7 = arith.constant 0 : index
    %8 = vector.load %arg7[%c0_6, %c0_7] : memref<128x128xf32, #tpu.memory_space<vmem>>, vector<128x128xf32>
    tpu.vector_store %arg7[%c0_6, %c0_7], %7 {strides = array<i32>} : memref<128x128xf32, #tpu.memory_space<vmem>>, vector<128x128xf32>,
    %c0_i32_8 = arith.constant 0 : i32
    %9 = arith.cmpi eq, %arg2, %c0_i32_8 : i32
    %10 = arith.extui %9 : i1 to i32
    %c0_i32_9 = arith.constant 0 : i32
    %11 = arith.cmpi ne, %10, %c0_i32_9 : i32
    scf.if %11 {
      %c0_10 = arith.constant 0 : index
      %c0_11 = arith.constant 0 : index
      %12 = vector.load %arg7[%c0_10, %c0_11] : memref<128x128xf32, #tpu.memory_space<vmem>>, vector<128x128xf32>
      %c0_12 = arith.constant 0 : index
      %c0_13 = arith.constant 0 : index
      %13 = vector.load %arg5[%c0_12, %c0_13] : memref<128x128xf32, #tpu.memory_space<vmem>>, vector<128x128xf32>
      tpu.vector_store %arg5[%c0_12, %c0_13], %12 {strides = array<i32>} : memref<128x128xf32, #tpu.memory_space<vmem>>, vector<128x128xf32>,
      %cst_14 = arith.constant dense<0.000000e+00> : vector<128xf32>
      %14 = vector.multi_reduction <add>, %12, %cst_14 [0] : vector<128x128xf32> to vector<128xf32>
      %15 = vector.shape_cast %14 : vector<128xf32> to vector<1x128xf32>
      %16 = arith.mulf %12, %12 : vector<128x128xf32>
      %cst_15 = arith.constant dense<0.000000e+00> : vector<128xf32>
      %17 = vector.multi_reduction <add>, %16, %cst_15 [0] : vector<128x128xf32> to vector<128xf32>
      %18 = vector.shape_cast %17 : vector<128xf32> to vector<1x128xf32>
      %19 = tpu.iota {dimensions = array<i32: 0>} : vector<8x128xi32>
      %c0_i32_16 = arith.constant 0 : i32
      %20 = vector.broadcast %c0_i32_16 : i32 to vector<8x128xi32>
      %21 = arith.cmpi eq, %19, %20 : vector<8x128xi32>
      %c1_i32 = arith.constant 1 : i32
      %22 = vector.broadcast %c1_i32 : i32 to vector<8x128xi32>
      %23 = arith.cmpi eq, %19, %22 : vector<8x128xi32>
      %cst_17 = arith.constant 0.000000e+00 : f32
      %24 = vector.shape_cast %18 : vector<1x128xf32> to vector<1x128xf32>
      %25 = vector.broadcast %24 : vector<1x128xf32> to vector<8x128xf32>
      %26 = vector.broadcast %cst_17 : f32 to vector<8x128xf32>
      %27 = arith.select %23, %25, %26 : vector<8x128xi1>, vector<8x128xf32>
      %28 = vector.shape_cast %15 : vector<1x128xf32> to vector<1x128xf32>
      %29 = vector.broadcast %28 : vector<1x128xf32> to vector<8x128xf32>
      %30 = arith.select %21, %29, %27 : vector<8x128xi1>, vector<8x128xf32>
      %c0_18 = arith.constant 0 : index
      %c0_19 = arith.constant 0 : index
      %31 = vector.load %arg6[%c0_18, %c0_19] : memref<8x128xf32, #tpu.memory_space<vmem>>, vector<8x128xf32>
      tpu.vector_store %arg6[%c0_18, %c0_19], %30 {strides = array<i32>} : memref<8x128xf32, #tpu.memory_space<vmem>>, vector<8x128xf32>,
    } else {
    }
    return
  }
  func.func @transform_0(%arg0: i32, %arg1: i32, %arg2: i32) -> (i32, i32) {
    %c0_i32 = arith.constant 0 : i32
    return %arg0, %arg2 : i32, i32
  }
  func.func @transform_1(%arg0: i32, %arg1: i32, %arg2: i32) -> (i32, i32) {
    %c0_i32 = arith.constant 0 : i32
    return %arg2, %arg1 : i32, i32
  }
  func.func @transform_2(%arg0: i32, %arg1: i32, %arg2: i32) -> (i32, i32) {
    %c0_i32 = arith.constant 0 : i32
    return %arg0, %arg1 : i32, i32
  }
  func.func @transform_3(%arg0: i32, %arg1: i32, %arg2: i32) -> (i32, i32) {
    %c0_i32 = arith.constant 0 : i32
    return %arg0, %arg1 : i32, i32
  }
}

module attributes {stable_mosaic.version = 11 : i64} {
  func.func @_affine_kernel(%arg0: i32, %arg1: i32, %arg2: memref<32x128xf32, #tpu.memory_space<vmem>>, %arg3: memref<1x128xf32, #tpu.memory_space<vmem>>, %arg4: memref<1x128xf32, #tpu.memory_space<vmem>>, %arg5: memref<32x128xf32, #tpu.memory_space<vmem>>) attributes {dimension_semantics = [#tpu.dimension_semantics<parallel>, #tpu.dimension_semantics<parallel>], iteration_bounds = array<i64: 1, 1>, scalar_prefetch = 0 : i64, scratch_operands = 0 : i64, tpu.core_type = #tpu.core_type<tc>, window_params = [{transform_indices = @transform_0, window_bounds = array<i64: 32, 128>}, {transform_indices = @transform_1, window_bounds = array<i64: 1, 128>}, {transform_indices = @transform_2, window_bounds = array<i64: 1, 128>}, {transform_indices = @transform_3, window_bounds = array<i64: 32, 128>}]} {
    %c0 = arith.constant 0 : index
    %c0_0 = arith.constant 0 : index
    %0 = vector.load %arg2[%c0, %c0_0] : memref<32x128xf32, #tpu.memory_space<vmem>>, vector<32x128xf32>
    %c0_1 = arith.constant 0 : index
    %c0_2 = arith.constant 0 : index
    %1 = vector.load %arg3[%c0_1, %c0_2] : memref<1x128xf32, #tpu.memory_space<vmem>>, vector<1x128xf32>
    %2 = vector.broadcast %1 : vector<1x128xf32> to vector<32x128xf32>
    %3 = arith.mulf %0, %2 : vector<32x128xf32>
    %c0_3 = arith.constant 0 : index
    %c0_4 = arith.constant 0 : index
    %4 = vector.load %arg4[%c0_3, %c0_4] : memref<1x128xf32, #tpu.memory_space<vmem>>, vector<1x128xf32>
    %5 = vector.broadcast %4 : vector<1x128xf32> to vector<32x128xf32>
    %6 = arith.addf %3, %5 : vector<32x128xf32>
    %c0_5 = arith.constant 0 : index
    %c0_6 = arith.constant 0 : index
    %7 = vector.load %arg5[%c0_5, %c0_6] : memref<32x128xf32, #tpu.memory_space<vmem>>, vector<32x128xf32>
    tpu.vector_store %arg5[%c0_5, %c0_6], %6 {strides = array<i32>} : memref<32x128xf32, #tpu.memory_space<vmem>>, vector<32x128xf32>,
    return
  }
  func.func @transform_0(%arg0: i32, %arg1: i32) -> (i32, i32) {
    %c0_i32 = arith.constant 0 : i32
    return %arg0, %arg1 : i32, i32
  }
  func.func @transform_1(%arg0: i32, %arg1: i32) -> (i32, i32) {
    %c0_i32 = arith.constant 0 : i32
    %c0_i32_0 = arith.constant 0 : i32
    return %c0_i32, %arg1 : i32, i32
  }
  func.func @transform_2(%arg0: i32, %arg1: i32) -> (i32, i32) {
    %c0_i32 = arith.constant 0 : i32
    %c0_i32_0 = arith.constant 0 : i32
    return %c0_i32, %arg1 : i32, i32
  }
  func.func @transform_3(%arg0: i32, %arg1: i32) -> (i32, i32) {
    %c0_i32 = arith.constant 0 : i32
    return %arg0, %arg1 : i32, i32
  }
}

module attributes {stable_mosaic.version = 11 : i64} {
  func.func @kernel(%arg0: i32, %arg1: i32, %arg2: i32, %arg3: memref<128x512xbf16, #tpu.memory_space<vmem>>, %arg4: memref<512x128xbf16, #tpu.memory_space<vmem>>, %arg5: memref<128x128xf32, #tpu.memory_space<vmem>>, %arg6: memref<8x128xf32, #tpu.memory_space<vmem>>, %arg7: memref<128x128xf32, #tpu.memory_space<vmem>>) attributes {dimension_semantics = [#tpu.dimension_semantics<parallel>, #tpu.dimension_semantics<parallel>, #tpu.dimension_semantics<arbitrary>], iteration_bounds = array<i64: 1, 1, 2>, scalar_prefetch = 0 : i64, scratch_operands = 1 : i64, tpu.core_type = #tpu.core_type<tc>, window_params = [{transform_indices = @transform_0, window_bounds = array<i64: 128, 512>}, {transform_indices = @transform_1, window_bounds = array<i64: 512, 128>}, {transform_indices = @transform_2, window_bounds = array<i64: 128, 128>}, {transform_indices = @transform_3, window_bounds = array<i64: 8, 128>}]} {
    %c0_i32 = arith.constant 0 : i32
    %0 = arith.cmpi eq, %arg2, %c0_i32 : i32
    %1 = arith.extui %0 : i1 to i32
    %c0_i32_0 = arith.constant 0 : i32
    %2 = arith.cmpi ne, %1, %c0_i32_0 : i32
    scf.if %2 {
      %cst_9 = arith.constant 0.000000e+00 : f32
      %12 = vector.broadcast %cst_9 : f32 to vector<128x128xf32>
      %c0_10 = arith.constant 0 : index
      %c0_11 = arith.constant 0 : index
      %13 = vector.load %arg7[%c0_10, %c0_11] : memref<128x128xf32, #tpu.memory_space<vmem>>, vector<128x128xf32>
      tpu.vector_store %arg7[%c0_10, %c0_11], %12 {strides = array<i32>} : memref<128x128xf32, #tpu.memory_space<vmem>>, vector<128x128xf32>,
    } else {
    }
    %c0 = arith.constant 0 : index
    %c0_1 = arith.constant 0 : index
    %3 = vector.load %arg7[%c0, %c0_1] : memref<128x128xf32, #tpu.memory_space<vmem>>, vector<128x128xf32>
    %c0_2 = arith.constant 0 : index
    %c0_3 = arith.constant 0 : index
    %4 = vector.load %arg3[%c0_2, %c0_3] : memref<128x512xbf16, #tpu.memory_space<vmem>>, vector<128x512xbf16>
    %c0_4 = arith.constant 0 : index
    %c0_5 = arith.constant 0 : index
    %5 = vector.load %arg4[%c0_4, %c0_5] : memref<512x128xbf16, #tpu.memory_space<vmem>>, vector<512x128xbf16>
    %cst = arith.constant dense<0.000000e+00> : vector<128x128xf32>
    %6 = tpu.matmul %4, %5, %cst {dimension_numbers = #tpu.dot_dimension_numbers<[1], [0], [0], [1], [0, 0, 1, 1], [], []>} : vector<128x512xbf16>, vector<512x128xbf16>, vector<128x128xf32> -> vector<128x128xf32>
    %7 = arith.addf %3, %6 : vector<128x128xf32>
    %c0_6 = arith.constant 0 : index
    %c0_7 = arith.constant 0 : index
    %8 = vector.load %arg7[%c0_6, %c0_7] : memref<128x128xf32, #tpu.memory_space<vmem>>, vector<128x128xf32>
    tpu.vector_store %arg7[%c0_6, %c0_7], %7 {strides = array<i32>} : memref<128x128xf32, #tpu.memory_space<vmem>>, vector<128x128xf32>,
    %c1_i32 = arith.constant 1 : i32
    %9 = arith.cmpi eq, %arg2, %c1_i32 : i32
    %10 = arith.extui %9 : i1 to i32
    %c0_i32_8 = arith.constant 0 : i32
    %11 = arith.cmpi ne, %10, %c0_i32_8 : i32
    scf.if %11 {
      %c0_9 = arith.constant 0 : index
      %c0_10 = arith.constant 0 : index
      %12 = vector.load %arg7[%c0_9, %c0_10] : memref<128x128xf32, #tpu.memory_space<vmem>>, vector<128x128xf32>
      %c0_11 = arith.constant 0 : index
      %c0_12 = arith.constant 0 : index
      %13 = vector.load %arg5[%c0_11, %c0_12] : memref<128x128xf32, #tpu.memory_space<vmem>>, vector<128x128xf32>
      tpu.vector_store %arg5[%c0_11, %c0_12], %12 {strides = array<i32>} : memref<128x128xf32, #tpu.memory_space<vmem>>, vector<128x128xf32>,
      %cst_13 = arith.constant dense<0.000000e+00> : vector<128xf32>
      %14 = vector.multi_reduction <add>, %12, %cst_13 [0] : vector<128x128xf32> to vector<128xf32>
      %15 = vector.shape_cast %14 : vector<128xf32> to vector<1x128xf32>
      %16 = arith.mulf %12, %12 : vector<128x128xf32>
      %cst_14 = arith.constant dense<0.000000e+00> : vector<128xf32>
      %17 = vector.multi_reduction <add>, %16, %cst_14 [0] : vector<128x128xf32> to vector<128xf32>
      %18 = vector.shape_cast %17 : vector<128xf32> to vector<1x128xf32>
      %19 = tpu.iota {dimensions = array<i32: 0>} : vector<8x128xi32>
      %c0_i32_15 = arith.constant 0 : i32
      %20 = vector.broadcast %c0_i32_15 : i32 to vector<8x128xi32>
      %21 = arith.cmpi eq, %19, %20 : vector<8x128xi32>
      %c1_i32_16 = arith.constant 1 : i32
      %22 = vector.broadcast %c1_i32_16 : i32 to vector<8x128xi32>
      %23 = arith.cmpi eq, %19, %22 : vector<8x128xi32>
      %cst_17 = arith.constant 0.000000e+00 : f32
      %24 = vector.shape_cast %18 : vector<1x128xf32> to vector<1x128xf32>
      %25 = vector.broadcast %24 : vector<1x128xf32> to vector<8x128xf32>
      %26 = vector.broadcast %cst_17 : f32 to vector<8x128xf32>
      %27 = arith.select %23, %25, %26 : vector<8x128xi1>, vector<8x128xf32>
      %28 = vector.shape_cast %15 : vector<1x128xf32> to vector<1x128xf32>
      %29 = vector.broadcast %28 : vector<1x128xf32> to vector<8x128xf32>
      %30 = arith.select %21, %29, %27 : vector<8x128xi1>, vector<8x128xf32>
      %c0_18 = arith.constant 0 : index
      %c0_19 = arith.constant 0 : index
      %31 = vector.load %arg6[%c0_18, %c0_19] : memref<8x128xf32, #tpu.memory_space<vmem>>, vector<8x128xf32>
      tpu.vector_store %arg6[%c0_18, %c0_19], %30 {strides = array<i32>} : memref<8x128xf32, #tpu.memory_space<vmem>>, vector<8x128xf32>,
    } else {
    }
    return
  }
  func.func @transform_0(%arg0: i32, %arg1: i32, %arg2: i32) -> (i32, i32) {
    %c0_i32 = arith.constant 0 : i32
    return %arg0, %arg2 : i32, i32
  }
  func.func @transform_1(%arg0: i32, %arg1: i32, %arg2: i32) -> (i32, i32) {
    %c0_i32 = arith.constant 0 : i32
    return %arg2, %arg1 : i32, i32
  }
  func.func @transform_2(%arg0: i32, %arg1: i32, %arg2: i32) -> (i32, i32) {
    %c0_i32 = arith.constant 0 : i32
    return %arg0, %arg1 : i32, i32
  }
  func.func @transform_3(%arg0: i32, %arg1: i32, %arg2: i32) -> (i32, i32) {
    %c0_i32 = arith.constant 0 : i32
    return %arg0, %arg1 : i32, i32
  }
}

module attributes {stable_mosaic.version = 11 : i64} {
  func.func @_affine_kernel(%arg0: i32, %arg1: i32, %arg2: memref<8x128xf32, #tpu.memory_space<vmem>>, %arg3: memref<1x128xf32, #tpu.memory_space<vmem>>, %arg4: memref<1x128xf32, #tpu.memory_space<vmem>>, %arg5: memref<8x128xf32, #tpu.memory_space<vmem>>) attributes {dimension_semantics = [#tpu.dimension_semantics<parallel>, #tpu.dimension_semantics<parallel>], iteration_bounds = array<i64: 1, 1>, scalar_prefetch = 0 : i64, scratch_operands = 0 : i64, tpu.core_type = #tpu.core_type<tc>, window_params = [{transform_indices = @transform_0, window_bounds = array<i64: 8, 128>}, {transform_indices = @transform_1, window_bounds = array<i64: 1, 128>}, {transform_indices = @transform_2, window_bounds = array<i64: 1, 128>}, {transform_indices = @transform_3, window_bounds = array<i64: 8, 128>}]} {
    %c0 = arith.constant 0 : index
    %c0_0 = arith.constant 0 : index
    %0 = vector.load %arg2[%c0, %c0_0] : memref<8x128xf32, #tpu.memory_space<vmem>>, vector<8x128xf32>
    %c0_1 = arith.constant 0 : index
    %c0_2 = arith.constant 0 : index
    %1 = vector.load %arg3[%c0_1, %c0_2] : memref<1x128xf32, #tpu.memory_space<vmem>>, vector<1x128xf32>
    %2 = vector.broadcast %1 : vector<1x128xf32> to vector<8x128xf32>
    %3 = arith.mulf %0, %2 : vector<8x128xf32>
    %c0_3 = arith.constant 0 : index
    %c0_4 = arith.constant 0 : index
    %4 = vector.load %arg4[%c0_3, %c0_4] : memref<1x128xf32, #tpu.memory_space<vmem>>, vector<1x128xf32>
    %5 = vector.broadcast %4 : vector<1x128xf32> to vector<8x128xf32>
    %6 = arith.addf %3, %5 : vector<8x128xf32>
    %c0_5 = arith.constant 0 : index
    %c0_6 = arith.constant 0 : index
    %7 = vector.load %arg5[%c0_5, %c0_6] : memref<8x128xf32, #tpu.memory_space<vmem>>, vector<8x128xf32>
    tpu.vector_store %arg5[%c0_5, %c0_6], %6 {strides = array<i32>} : memref<8x128xf32, #tpu.memory_space<vmem>>, vector<8x128xf32>,
    return
  }
  func.func @transform_0(%arg0: i32, %arg1: i32) -> (i32, i32) {
    %c0_i32 = arith.constant 0 : i32
    return %arg0, %arg1 : i32, i32
  }
  func.func @transform_1(%arg0: i32, %arg1: i32) -> (i32, i32) {
    %c0_i32 = arith.constant 0 : i32
    %c0_i32_0 = arith.constant 0 : i32
    return %c0_i32, %arg1 : i32, i32
  }
  func.func @transform_2(%arg0: i32, %arg1: i32) -> (i32, i32) {
    %c0_i32 = arith.constant 0 : i32
    %c0_i32_0 = arith.constant 0 : i32
    return %c0_i32, %arg1 : i32, i32
  }
  func.func @transform_3(%arg0: i32, %arg1: i32) -> (i32, i32) {
    %c0_i32 = arith.constant 0 : i32
    return %arg0, %arg1 : i32, i32
  }
}

module attributes {stable_mosaic.version = 11 : i64} {
  func.func @kernel(%arg0: i32, %arg1: i32, %arg2: i32, %arg3: memref<128x512xbf16, #tpu.memory_space<vmem>>, %arg4: memref<512x128xbf16, #tpu.memory_space<vmem>>, %arg5: memref<128x128xf32, #tpu.memory_space<vmem>>, %arg6: memref<128x128xf32, #tpu.memory_space<vmem>>) attributes {dimension_semantics = [#tpu.dimension_semantics<parallel>, #tpu.dimension_semantics<parallel>, #tpu.dimension_semantics<arbitrary>], iteration_bounds = array<i64: 1, 1, 2>, scalar_prefetch = 0 : i64, scratch_operands = 1 : i64, tpu.core_type = #tpu.core_type<tc>, window_params = [{transform_indices = @transform_0, window_bounds = array<i64: 128, 512>}, {transform_indices = @transform_1, window_bounds = array<i64: 512, 128>}, {transform_indices = @transform_2, window_bounds = array<i64: 128, 128>}]} {
    %c0_i32 = arith.constant 0 : i32
    %0 = arith.cmpi eq, %arg2, %c0_i32 : i32
    %1 = arith.extui %0 : i1 to i32
    %c0_i32_0 = arith.constant 0 : i32
    %2 = arith.cmpi ne, %1, %c0_i32_0 : i32
    scf.if %2 {
      %cst_9 = arith.constant 0.000000e+00 : f32
      %12 = vector.broadcast %cst_9 : f32 to vector<128x128xf32>
      %c0_10 = arith.constant 0 : index
      %c0_11 = arith.constant 0 : index
      %13 = vector.load %arg6[%c0_10, %c0_11] : memref<128x128xf32, #tpu.memory_space<vmem>>, vector<128x128xf32>
      tpu.vector_store %arg6[%c0_10, %c0_11], %12 {strides = array<i32>} : memref<128x128xf32, #tpu.memory_space<vmem>>, vector<128x128xf32>,
    } else {
    }
    %c0 = arith.constant 0 : index
    %c0_1 = arith.constant 0 : index
    %3 = vector.load %arg6[%c0, %c0_1] : memref<128x128xf32, #tpu.memory_space<vmem>>, vector<128x128xf32>
    %c0_2 = arith.constant 0 : index
    %c0_3 = arith.constant 0 : index
    %4 = vector.load %arg3[%c0_2, %c0_3] : memref<128x512xbf16, #tpu.memory_space<vmem>>, vector<128x512xbf16>
    %c0_4 = arith.constant 0 : index
    %c0_5 = arith.constant 0 : index
    %5 = vector.load %arg4[%c0_4, %c0_5] : memref<512x128xbf16, #tpu.memory_space<vmem>>, vector<512x128xbf16>
    %cst = arith.constant dense<0.000000e+00> : vector<128x128xf32>
    %6 = tpu.matmul %4, %5, %cst {dimension_numbers = #tpu.dot_dimension_numbers<[1], [0], [0], [1], [0, 0, 1, 1], [], []>} : vector<128x512xbf16>, vector<512x128xbf16>, vector<128x128xf32> -> vector<128x128xf32>
    %7 = arith.addf %3, %6 : vector<128x128xf32>
    %c0_6 = arith.constant 0 : index
    %c0_7 = arith.constant 0 : index
    %8 = vector.load %arg6[%c0_6, %c0_7] : memref<128x128xf32, #tpu.memory_space<vmem>>, vector<128x128xf32>
    tpu.vector_store %arg6[%c0_6, %c0_7], %7 {strides = array<i32>} : memref<128x128xf32, #tpu.memory_space<vmem>>, vector<128x128xf32>,
    %c1_i32 = arith.constant 1 : i32
    %9 = arith.cmpi eq, %arg2, %c1_i32 : i32
    %10 = arith.extui %9 : i1 to i32
    %c0_i32_8 = arith.constant 0 : i32
    %11 = arith.cmpi ne, %10, %c0_i32_8 : i32
    scf.if %11 {
      %c0_9 = arith.constant 0 : index
      %c0_10 = arith.constant 0 : index
      %12 = vector.load %arg6[%c0_9, %c0_10] : memref<128x128xf32, #tpu.memory_space<vmem>>, vector<128x128xf32>
      %c0_11 = arith.constant 0 : index
      %c0_12 = arith.constant 0 : index
      %13 = vector.load %arg5[%c0_11, %c0_12] : memref<128x128xf32, #tpu.memory_space<vmem>>, vector<128x128xf32>
      tpu.vector_store %arg5[%c0_11, %c0_12], %12 {strides = array<i32>} : memref<128x128xf32, #tpu.memory_space<vmem>>, vector<128x128xf32>,
    } else {
    }
    return
  }
  func.func @transform_0(%arg0: i32, %arg1: i32, %arg2: i32) -> (i32, i32) {
    %c0_i32 = arith.constant 0 : i32
    return %arg0, %arg2 : i32, i32
  }
  func.func @transform_1(%arg0: i32, %arg1: i32, %arg2: i32) -> (i32, i32) {
    %c0_i32 = arith.constant 0 : i32
    return %arg2, %arg1 : i32, i32
  }
  func.func @transform_2(%arg0: i32, %arg1: i32, %arg2: i32) -> (i32, i32) {
    %c0_i32 = arith.constant 0 : i32
    return %arg0, %arg1 : i32, i32
  }
}

module attributes {stable_mosaic.version = 11 : i64} {
  func.func @kernel(%arg0: i32, %arg1: i32, %arg2: i32, %arg3: memref<128x128xbf16, #tpu.memory_space<vmem>>, %arg4: memref<128x128xbf16, #tpu.memory_space<vmem>>, %arg5: memref<128x128xf32, #tpu.memory_space<vmem>>, %arg6: memref<128x128xf32, #tpu.memory_space<vmem>>) attributes {dimension_semantics = [#tpu.dimension_semantics<parallel>, #tpu.dimension_semantics<parallel>, #tpu.dimension_semantics<arbitrary>], iteration_bounds = array<i64: 1, 1, 1>, scalar_prefetch = 0 : i64, scratch_operands = 1 : i64, tpu.core_type = #tpu.core_type<tc>, window_params = [{transform_indices = @transform_0, window_bounds = array<i64: 128, 128>}, {transform_indices = @transform_1, window_bounds = array<i64: 128, 128>}, {transform_indices = @transform_2, window_bounds = array<i64: 128, 128>}]} {
    %c0_i32 = arith.constant 0 : i32
    %0 = arith.cmpi eq, %arg2, %c0_i32 : i32
    %1 = arith.extui %0 : i1 to i32
    %c0_i32_0 = arith.constant 0 : i32
    %2 = arith.cmpi ne, %1, %c0_i32_0 : i32
    scf.if %2 {
      %cst_10 = arith.constant 0.000000e+00 : f32
      %12 = vector.broadcast %cst_10 : f32 to vector<128x128xf32>
      %c0_11 = arith.constant 0 : index
      %c0_12 = arith.constant 0 : index
      %13 = vector.load %arg6[%c0_11, %c0_12] : memref<128x128xf32, #tpu.memory_space<vmem>>, vector<128x128xf32>
      tpu.vector_store %arg6[%c0_11, %c0_12], %12 {strides = array<i32>} : memref<128x128xf32, #tpu.memory_space<vmem>>, vector<128x128xf32>,
    } else {
    }
    %c0 = arith.constant 0 : index
    %c0_1 = arith.constant 0 : index
    %3 = vector.load %arg6[%c0, %c0_1] : memref<128x128xf32, #tpu.memory_space<vmem>>, vector<128x128xf32>
    %c0_2 = arith.constant 0 : index
    %c0_3 = arith.constant 0 : index
    %4 = vector.load %arg3[%c0_2, %c0_3] : memref<128x128xbf16, #tpu.memory_space<vmem>>, vector<128x128xbf16>
    %c0_4 = arith.constant 0 : index
    %c0_5 = arith.constant 0 : index
    %5 = vector.load %arg4[%c0_4, %c0_5] : memref<128x128xbf16, #tpu.memory_space<vmem>>, vector<128x128xbf16>
    %cst = arith.constant dense<0.000000e+00> : vector<128x128xf32>
    %6 = tpu.matmul %4, %5, %cst {dimension_numbers = #tpu.dot_dimension_numbers<[1], [0], [0], [1], [0, 0, 1, 1], [], []>} : vector<128x128xbf16>, vector<128x128xbf16>, vector<128x128xf32> -> vector<128x128xf32>
    %7 = arith.addf %3, %6 : vector<128x128xf32>
    %c0_6 = arith.constant 0 : index
    %c0_7 = arith.constant 0 : index
    %8 = vector.load %arg6[%c0_6, %c0_7] : memref<128x128xf32, #tpu.memory_space<vmem>>, vector<128x128xf32>
    tpu.vector_store %arg6[%c0_6, %c0_7], %7 {strides = array<i32>} : memref<128x128xf32, #tpu.memory_space<vmem>>, vector<128x128xf32>,
    %c0_i32_8 = arith.constant 0 : i32
    %9 = arith.cmpi eq, %arg2, %c0_i32_8 : i32
    %10 = arith.extui %9 : i1 to i32
    %c0_i32_9 = arith.constant 0 : i32
    %11 = arith.cmpi ne, %10, %c0_i32_9 : i32
    scf.if %11 {
      %c0_10 = arith.constant 0 : index
      %c0_11 = arith.constant 0 : index
      %12 = vector.load %arg6[%c0_10, %c0_11] : memref<128x128xf32, #tpu.memory_space<vmem>>, vector<128x128xf32>
      %c0_12 = arith.constant 0 : index
      %c0_13 = arith.constant 0 : index
      %13 = vector.load %arg5[%c0_12, %c0_13] : memref<128x128xf32, #tpu.memory_space<vmem>>, vector<128x128xf32>
      tpu.vector_store %arg5[%c0_12, %c0_13], %12 {strides = array<i32>} : memref<128x128xf32, #tpu.memory_space<vmem>>, vector<128x128xf32>,
    } else {
    }
    return
  }
  func.func @transform_0(%arg0: i32, %arg1: i32, %arg2: i32) -> (i32, i32) {
    %c0_i32 = arith.constant 0 : i32
    return %arg0, %arg2 : i32, i32
  }
  func.func @transform_1(%arg0: i32, %arg1: i32, %arg2: i32) -> (i32, i32) {
    %c0_i32 = arith.constant 0 : i32
    return %arg2, %arg1 : i32, i32
  }
  func.func @transform_2(%arg0: i32, %arg1: i32, %arg2: i32) -> (i32, i32) {
    %c0_i32 = arith.constant 0 : i32
    return %arg0, %arg1 : i32, i32
  }
}

module attributes {stable_mosaic.version = 11 : i64} {
  func.func @kernel(%arg0: i32, %arg1: i32, %arg2: i32, %arg3: memref<256x128xbf16, #tpu.memory_space<vmem>>, %arg4: memref<128x128xbf16, #tpu.memory_space<vmem>>, %arg5: memref<1x128xf32, #tpu.memory_space<vmem>>, %arg6: memref<256x128xf32, #tpu.memory_space<vmem>>, %arg7: memref<256x128xf32, #tpu.memory_space<vmem>>) attributes {dimension_semantics = [#tpu.dimension_semantics<parallel>, #tpu.dimension_semantics<parallel>, #tpu.dimension_semantics<arbitrary>], iteration_bounds = array<i64: 8, 1, 1>, scalar_prefetch = 0 : i64, scratch_operands = 1 : i64, tpu.core_type = #tpu.core_type<tc>, window_params = [{transform_indices = @transform_0, window_bounds = array<i64: 256, 128>}, {transform_indices = @transform_1, window_bounds = array<i64: 128, 128>}, {transform_indices = @transform_2, window_bounds = array<i64: 1, 128>}, {transform_indices = @transform_3, window_bounds = array<i64: 256, 128>}]} {
    %c0_i32 = arith.constant 0 : i32
    %0 = arith.cmpi eq, %arg2, %c0_i32 : i32
    %1 = arith.extui %0 : i1 to i32
    %c0_i32_0 = arith.constant 0 : i32
    %2 = arith.cmpi ne, %1, %c0_i32_0 : i32
    scf.if %2 {
      %cst_10 = arith.constant 0.000000e+00 : f32
      %12 = vector.broadcast %cst_10 : f32 to vector<256x128xf32>
      %c0_11 = arith.constant 0 : index
      %c0_12 = arith.constant 0 : index
      %13 = vector.load %arg7[%c0_11, %c0_12] : memref<256x128xf32, #tpu.memory_space<vmem>>, vector<256x128xf32>
      tpu.vector_store %arg7[%c0_11, %c0_12], %12 {strides = array<i32>} : memref<256x128xf32, #tpu.memory_space<vmem>>, vector<256x128xf32>,
    } else {
    }
    %c0 = arith.constant 0 : index
    %c0_1 = arith.constant 0 : index
    %3 = vector.load %arg7[%c0, %c0_1] : memref<256x128xf32, #tpu.memory_space<vmem>>, vector<256x128xf32>
    %c0_2 = arith.constant 0 : index
    %c0_3 = arith.constant 0 : index
    %4 = vector.load %arg3[%c0_2, %c0_3] : memref<256x128xbf16, #tpu.memory_space<vmem>>, vector<256x128xbf16>
    %c0_4 = arith.constant 0 : index
    %c0_5 = arith.constant 0 : index
    %5 = vector.load %arg4[%c0_4, %c0_5] : memref<128x128xbf16, #tpu.memory_space<vmem>>, vector<128x128xbf16>
    %cst = arith.constant dense<0.000000e+00> : vector<256x128xf32>
    %6 = tpu.matmul %4, %5, %cst {dimension_numbers = #tpu.dot_dimension_numbers<[1], [0], [0], [1], [0, 0, 1, 1], [], []>} : vector<256x128xbf16>, vector<128x128xbf16>, vector<256x128xf32> -> vector<256x128xf32>
    %7 = arith.addf %3, %6 : vector<256x128xf32>
    %c0_6 = arith.constant 0 : index
    %c0_7 = arith.constant 0 : index
    %8 = vector.load %arg7[%c0_6, %c0_7] : memref<256x128xf32, #tpu.memory_space<vmem>>, vector<256x128xf32>
    tpu.vector_store %arg7[%c0_6, %c0_7], %7 {strides = array<i32>} : memref<256x128xf32, #tpu.memory_space<vmem>>, vector<256x128xf32>,
    %c0_i32_8 = arith.constant 0 : i32
    %9 = arith.cmpi eq, %arg2, %c0_i32_8 : i32
    %10 = arith.extui %9 : i1 to i32
    %c0_i32_9 = arith.constant 0 : i32
    %11 = arith.cmpi ne, %10, %c0_i32_9 : i32
    scf.if %11 {
      %c0_10 = arith.constant 0 : index
      %c0_11 = arith.constant 0 : index
      %12 = vector.load %arg7[%c0_10, %c0_11] : memref<256x128xf32, #tpu.memory_space<vmem>>, vector<256x128xf32>
      %c0_12 = arith.constant 0 : index
      %c0_13 = arith.constant 0 : index
      %13 = vector.load %arg5[%c0_12, %c0_13] : memref<1x128xf32, #tpu.memory_space<vmem>>, vector<1x128xf32>
      %14 = vector.broadcast %13 : vector<1x128xf32> to vector<256x128xf32>
      %15 = arith.addf %12, %14 : vector<256x128xf32>
      %16 = math.tanh %15 : vector<256x128xf32>
      %c0_14 = arith.constant 0 : index
      %c0_15 = arith.constant 0 : index
      %17 = vector.load %arg6[%c0_14, %c0_15] : memref<256x128xf32, #tpu.memory_space<vmem>>, vector<256x128xf32>
      tpu.vector_store %arg6[%c0_14, %c0_15], %16 {strides = array<i32>} : memref<256x128xf32, #tpu.memory_space<vmem>>, vector<256x128xf32>,
    } else {
    }
    return
  }
  func.func @transform_0(%arg0: i32, %arg1: i32, %arg2: i32) -> (i32, i32) {
    %c0_i32 = arith.constant 0 : i32
    return %arg0, %arg2 : i32, i32
  }
  func.func @transform_1(%arg0: i32, %arg1: i32, %arg2: i32) -> (i32, i32) {
    %c0_i32 = arith.constant 0 : i32
    return %arg2, %arg1 : i32, i32
  }
  func.func @transform_2(%arg0: i32, %arg1: i32, %arg2: i32) -> (i32, i32) {
    %c0_i32 = arith.constant 0 : i32
    %c0_i32_0 = arith.constant 0 : i32
    return %c0_i32, %arg1 : i32, i32
  }
  func.func @transform_3(%arg0: i32, %arg1: i32, %arg2: i32) -> (i32, i32) {
    %c0_i32 = arith.constant 0 : i32
    return %arg0, %arg1 : i32, i32
  }
}

</mosaic_0001>

<bundles_post_ra>
// kernel: unet_generator_forward.55
= control target key start
LH: loop header
LB: loop body
LE: loop exit
PB: predicated region body
PF: predicated region fallthrough
CT: control target
= control target key end

     0   :  { %s1016_s9 = smov 0   ;;  %s1018_s10 = smov 0   ;;  %s1132_s0 = inlined_call_operand.vmem [shape: bf16[2048,128], index: 0, kind: input, shape index: {}]   ;;  %s1133_s1 = inlined_call_operand.vmem [shape: bf16[128,128], index: 1, kind: input, shape index: {}]   ;;  %s1134_s2 = inlined_call_operand.vmem [shape: f32[2048,128], index: 2, kind: output, shape index: {}]  }
   0x1   :  { %s1020_s11 = smov 0  }
   0x2 LB: > { %s31_s12 = sadd.s32 1, %s995_s10  ;;  %p802_p0 = scmp.ge.s32.totalorder %s999_s11, 1  ;;  %s999_s11 = sphi %s1020_s11, %s12_s11   ;;  %s995_s10 = sphi %s1018_s10, %s1136_s10   ;;  %s991_s9 = sphi %s1016_s9, %s1135_s9  }
   0x3   : > { %p33_p1 = scmp.ge.s32.totalorder %s31_s12, 8  ;;  %p155_p2 = scmp.lt.s32.totalorder %s999_s11, 9 }
   0x5   : > { %s1138_s12 = smov (%p33_p1, %s31_s12), 0  ;;  %p156_p3 = pnand %p802_p0, %p155_p2 }
   0x6   : > { %s803_s21 = sshll.u32 (!%p156_p3), %s991_s9, 5 }
   0x7   : > { %159 = sbr.rel (%p156_p3) target bundleno = 235 (0xeb), region = 28  ;;  %p192_p4 = scmp.lt.s32.totalorder (!%p156_p3), %s803_s21, 255 }
   0xc   : > { %v928_v0 = vld [vmem:[%s1133_s1 + $0x38] sm:$0xff]  ;;  %v927_v1 = vld [vmem:[%s1133_s1 + $0x30] sm:$0xff]  ;;  %v926_v2 = vld [vmem:[%s1133_s1 + $0x28] sm:$0xff]  ;;  %s1140_s21 = smov (!%p192_p4, %s803_s21), 255 }
   0xd   : > { %478 = vmatpush.bf16.msra.mxu0 %v928_v0  ;;  %929 = vmatpush.bf16.msra.mxu1 %v928_v0  ;;  %v925_v3 = vld [vmem:[%s1133_s1 + $0x20] sm:$0xff]  ;;  %v924_v4 = vld [vmem:[%s1133_s1 + $0x18] sm:$0xff]  ;;  %v923_v5 = vld [vmem:[%s1133_s1 + $0x10] sm:$0xff]  ;;  %s804_s28 = sshll.u32 %s1140_s21, 2  ;;  %s806_s6 = sshll.u32 %s1140_s21, 3 }
   0xe   : > { %930 = vmatpush.bf16.msra.mxu2 %v928_v0  ;;  %931 = vmatpush.bf16.msra.mxu3 %v928_v0  ;;  %v922_v6 = vld [vmem:[%s1133_s1 + $0x8] sm:$0xff]  ;;  %v921_v7 = vld [vmem:[%s1133_s1] sm:$0xff]  ;;  %s1067_s5 = scalar_lea.vmem %s1132_s0, %s804_s28  ;;  %s1089_s9 = scalar_lea.vmem %s1134_s2, %s806_s6 }
   0xf   : > { %v905_v8 = vld [vmem:[%s1067_s5] sm:$0xff]  ;;  %v906_v12 = vld [vmem:[%s1067_s5 + $0x8] sm:$0xff]  ;;  %v907_v16 = vld [vmem:[%s1067_s5 + $0x10] sm:$0xff] }
  0x10   : > { %v909_v9 = vld [vmem:[%s1067_s5 + $0x20] sm:$0xff]  ;;  %v910_v13 = vld [vmem:[%s1067_s5 + $0x28] sm:$0xff]  ;;  %v911_v17 = vld [vmem:[%s1067_s5 + $0x30] sm:$0xff] }
  0x11   : > { %479 = vmatpush.bf16.msra.mxu0 %v927_v1  ;;  %932 = vmatpush.bf16.msra.mxu1 %v927_v1  ;;  %v913_v10 = vld [vmem:[%s1067_s5 + $0x40] sm:$0xff]  ;;  %v914_v14 = vld [vmem:[%s1067_s5 + $0x48] sm:$0xff]  ;;  %v915_v18 = vld [vmem:[%s1067_s5 + $0x50] sm:$0xff] }
  0x12   : > { %933 = vmatpush.bf16.msra.mxu2 %v927_v1  ;;  %934 = vmatpush.bf16.msra.mxu3 %v927_v1  ;;  %v917_v11 = vld [vmem:[%s1067_s5 + $0x60] sm:$0xff]  ;;  %v918_v15 = vld [vmem:[%s1067_s5 + $0x68] sm:$0xff]  ;;  %v919_v19 = vld [vmem:[%s1067_s5 + $0x70] sm:$0xff] }
  0x13   : > { %v908_v20 = vld [vmem:[%s1067_s5 + $0x18] sm:$0xff] }
  0x14   : > { %v912_v21 = vld [vmem:[%s1067_s5 + $0x38] sm:$0xff] }
  0x15   : > { %480 = vmatpush.bf16.msra.mxu0 %v926_v2  ;;  %935 = vmatpush.bf16.msra.mxu1 %v926_v2  ;;  %v916_v22 = vld [vmem:[%s1067_s5 + $0x58] sm:$0xff] }
  0x16   : > { %936 = vmatpush.bf16.msra.mxu2 %v926_v2  ;;  %937 = vmatpush.bf16.msra.mxu3 %v926_v2  ;;  %v920_v23 = vld [vmem:[%s1067_s5 + $0x78] sm:$0xff] }
  0x19   : > { %481 = vmatpush.bf16.msra.mxu0 %v925_v3  ;;  %938 = vmatpush.bf16.msra.mxu1 %v925_v3 }
  0x1a   : > { %939 = vmatpush.bf16.msra.mxu2 %v925_v3  ;;  %940 = vmatpush.bf16.msra.mxu3 %v925_v3 }
  0x1d   : > { %482 = vmatpush.bf16.msra.mxu0 %v924_v4  ;;  %941 = vmatpush.bf16.msra.mxu1 %v924_v4 }
  0x1e   : > { %942 = vmatpush.bf16.msra.mxu2 %v924_v4  ;;  %943 = vmatpush.bf16.msra.mxu3 %v924_v4 }
  0x21   : > { %483 = vmatpush.bf16.msra.mxu0 %v923_v5  ;;  %944 = vmatpush.bf16.msra.mxu1 %v923_v5 }
  0x22   : > { %945 = vmatpush.bf16.msra.mxu2 %v923_v5  ;;  %946 = vmatpush.bf16.msra.mxu3 %v923_v5 }
  0x25   : > { %484 = vmatpush.bf16.msra.mxu0 %v922_v6  ;;  %947 = vmatpush.bf16.msra.mxu1 %v922_v6 }
  0x26   : > { %948 = vmatpush.bf16.msra.mxu2 %v922_v6  ;;  %949 = vmatpush.bf16.msra.mxu3 %v922_v6 }
  0x29   : > { %485 = vmatpush.bf16.msra.mxu0 %v921_v7  ;;  %950 = vmatpush.bf16.msra.mxu1 %v921_v7 }
  0x2a   : > { %951 = vmatpush.bf16.msra.mxu2 %v921_v7  ;;  %952 = vmatpush.bf16.msra.mxu3 %v921_v7 }
  0x2c   : > { %486 = vmatmul.bf16.vlgmr.msra.gmra.mxu0 %v905_v8  ;;  %506 = vmatmul.bf16.vlgmr.msra.gmra.mxu1 %v909_v9 }
  0x2d   : > { %526 = vmatmul.bf16.vlgmr.msra.gmra.mxu2 %v913_v10  ;;  %546 = vmatmul.bf16.vlgmr.msra.gmra.mxu3 %v917_v11 }
  0x3c   : > { %491 = vmatmul.bf16.gmra.mxu0 %v906_v12  ;;  %511 = vmatmul.bf16.gmra.mxu1 %v910_v13 }
  0x3d   : > { %531 = vmatmul.bf16.gmra.mxu2 %v914_v14  ;;  %551 = vmatmul.bf16.gmra.mxu3 %v918_v15 }
  0x4c   : > { %496 = vmatmul.bf16.gmra.mxu0 %v907_v16  ;;  %516 = vmatmul.bf16.gmra.mxu1 %v911_v17 }
  0x4d   : > { %536 = vmatmul.bf16.gmra.mxu2 %v915_v18  ;;  %556 = vmatmul.bf16.gmra.mxu3 %v919_v19 }
  0x5c   : > { %501 = vmatmul.bf16.gmra.mxu0 %v908_v20  ;;  %521 = vmatmul.bf16.gmra.mxu1 %v912_v21 }
  0x5d   : > { %541 = vmatmul.bf16.gmra.mxu2 %v916_v22  ;;  %561 = vmatmul.bf16.gmra.mxu3 %v920_v23 }
  0xa9   : > { %v487_v24 = vpop.f32.mrf.mxu0  ;;  %v507_v25 = vpop.f32.mrf.mxu1 }
  0xaa   : > { %666 = vst [vmem:[%s1089_s9] sm:$0xff] %v487_v24 }
  0xab   : > { %674 = vst [vmem:[%s1089_s9 + $0x40] sm:$0xff] %v507_v25 }
  0xb0   : > { %v527_v26 = vpop.f32.mrf.mxu2  ;;  %v547_v27 = vpop.f32.mrf.mxu3 }
  0xb1   : > { %682 = vst [vmem:[%s1089_s9 + $0x80] sm:$0xff] %v527_v26  ;;  %v489_v28 = vpop.f32.mrf.mxu0  ;;  %v509_v29 = vpop.f32.mrf.mxu1 }
  0xb2   : > { %690 = vst [vmem:[%s1089_s9 + $0xc0] sm:$0xff] %v547_v27 }
  0xb3   : > { %667 = vst [vmem:[%s1089_s9 + $0x8] sm:$0xff] %v489_v28 }
  0xb4   : > { %675 = vst [vmem:[%s1089_s9 + $0x48] sm:$0xff] %v509_v29 }
  0xb8   : > { %v529_v30 = vpop.f32.mrf.mxu2  ;;  %v549_v31 = vpop.f32.mrf.mxu3 }
  0xb9   : > { %683 = vst [vmem:[%s1089_s9 + $0x88] sm:$0xff] %v529_v30  ;;  %v492_v32 = vpop.f32.mrf.mxu0  ;;  %v512_v33 = vpop.f32.mrf.mxu1 }
  0xba   : > { %691 = vst [vmem:[%s1089_s9 + $0xc8] sm:$0xff] %v549_v31 }
  0xbb   : > { %668 = vst [vmem:[%s1089_s9 + $0x10] sm:$0xff] %v492_v32 }
  0xbc   : > { %676 = vst [vmem:[%s1089_s9 + $0x50] sm:$0xff] %v512_v33 }
  0xc0   : > { %v532_v34 = vpop.f32.mrf.mxu2  ;;  %v552_v35 = vpop.f32.mrf.mxu3 }
  0xc1   : > { %684 = vst [vmem:[%s1089_s9 + $0x90] sm:$0xff] %v532_v34  ;;  %v494_v36 = vpop.f32.mrf.mxu0  ;;  %v514_v37 = vpop.f32.mrf.mxu1 }
  0xc2   : > { %692 = vst [vmem:[%s1089_s9 + $0xd0] sm:$0xff] %v552_v35 }
  0xc3   : > { %669 = vst [vmem:[%s1089_s9 + $0x18] sm:$0xff] %v494_v36 }
  0xc4   : > { %677 = vst [vmem:[%s1089_s9 + $0x58] sm:$0xff] %v514_v37 }
  0xc8   : > { %v534_v38 = vpop.f32.mrf.mxu2  ;;  %v554_v39 = vpop.f32.mrf.mxu3 }
  0xc9   : > { %685 = vst [vmem:[%s1089_s9 + $0x98] sm:$0xff] %v534_v38  ;;  %v497_v40 = vpop.f32.mrf.mxu0  ;;  %v517_v41 = vpop.f32.mrf.mxu1 }
  0xca   : > { %693 = vst [vmem:[%s1089_s9 + $0xd8] sm:$0xff] %v554_v39 }
  0xcb   : > { %670 = vst [vmem:[%s1089_s9 + $0x20] sm:$0xff] %v497_v40 }
  0xcc   : > { %678 = vst [vmem:[%s1089_s9 + $0x60] sm:$0xff] %v517_v41 }
  0xd0   : > { %v537_v42 = vpop.f32.mrf.mxu2  ;;  %v557_v43 = vpop.f32.mrf.mxu3 }
  0xd1   : > { %686 = vst [vmem:[%s1089_s9 + $0xa0] sm:$0xff] %v537_v42  ;;  %v499_v44 = vpop.f32.mrf.mxu0  ;;  %v519_v45 = vpop.f32.mrf.mxu1 }
  0xd2   : > { %694 = vst [vmem:[%s1089_s9 + $0xe0] sm:$0xff] %v557_v43 }
  0xd3   : > { %671 = vst [vmem:[%s1089_s9 + $0x28] sm:$0xff] %v499_v44 }
  0xd4   : > { %679 = vst [vmem:[%s1089_s9 + $0x68] sm:$0xff] %v519_v45 }
  0xd8   : > { %v539_v46 = vpop.f32.mrf.mxu2  ;;  %v559_v47 = vpop.f32.mrf.mxu3 }
  0xd9   : > { %687 = vst [vmem:[%s1089_s9 + $0xa8] sm:$0xff] %v539_v46  ;;  %v502_v48 = vpop.f32.mrf.mxu0  ;;  %v522_v49 = vpop.f32.mrf.mxu1 }
  0xda   : > { %695 = vst [vmem:[%s1089_s9 + $0xe8] sm:$0xff] %v559_v47 }
  0xdb   : > { %672 = vst [vmem:[%s1089_s9 + $0x30] sm:$0xff] %v502_v48 }
  0xdc   : > { %680 = vst [vmem:[%s1089_s9 + $0x70] sm:$0xff] %v522_v49 }
  0xe0   : > { %v542_v50 = vpop.f32.mrf.mxu2  ;;  %v562_v51 = vpop.f32.mrf.mxu3 }
  0xe1   : > { %688 = vst [vmem:[%s1089_s9 + $0xb0] sm:$0xff] %v542_v50  ;;  %v504_v52 = vpop.f32.mrf.mxu0  ;;  %v524_v53 = vpop.f32.mrf.mxu1 }
  0xe2   : > { %696 = vst [vmem:[%s1089_s9 + $0xf0] sm:$0xff] %v562_v51 }
  0xe3   : > { %673 = vst [vmem:[%s1089_s9 + $0x38] sm:$0xff] %v504_v52 }
  0xe4   : > { %681 = vst [vmem:[%s1089_s9 + $0x78] sm:$0xff] %v524_v53 }
  0xe8   : > { %v544_v54 = vpop.f32.mrf.mxu2  ;;  %v564_v55 = vpop.f32.mrf.mxu3 }
  0xe9   : > { %689 = vst [vmem:[%s1089_s9 + $0xb8] sm:$0xff] %v544_v54 }
  0xea   : > { %697 = vst [vmem:[%s1089_s9 + $0xf8] sm:$0xff] %v564_v55 }
  0xeb PF: > { %s12_s11 = sadd.s32 1, %s999_s11   ;;  %s1135_s9 = smov %s995_s10 }
  0xec   : > { %p9_p5 = scmp.ge.s32.totalorder %s12_s11, 10   ;;  %s1136_s10 = smov %s1138_s12 }
  0xee   :  { %11 = sbr.rel (!%p9_p5) target bundleno = 2 (0x2), region = 69 }

// kernel: unet_generator_forward.56
= control target key start
LH: loop header
LB: loop body
LE: loop exit
PB: predicated region body
PF: predicated region fallthrough
CT: control target
= control target key end

     0   :  { %s1222_s12 = smov 0   ;;  %s1224_s13 = smov 0   ;;  %s1457_s0 = inlined_call_operand.vmem [shape: bf16[512,128], index: 0, kind: input, shape index: {}]   ;;  %s1458_s1 = inlined_call_operand.vmem [shape: bf16[128,128], index: 1, kind: input, shape index: {}]   ;;  %s1459_s2 = inlined_call_operand.vmem [shape: f32[512,128], index: 2, kind: output, shape index: {0}]   ;;  %s1460_s3 = inlined_call_operand.vmem [shape: f32[16,128], index: 3, kind: output, shape index: {1}]  }
   0x1   :  { %s1226_s14 = smov 0  }
   0x2 LB: > { %s33_s15 = sadd.s32 1, %s1196_s13  ;;  %p1002_p0 = scmp.ge.s32.totalorder %s1200_s14, 1  ;;  %s1200_s14 = sphi %s1226_s14, %s14_s14   ;;  %s1196_s13 = sphi %s1224_s13, %s1462_s13   ;;  %s1192_s12 = sphi %s1222_s12, %s1461_s12  }
   0x3   : > { %p35_p1 = scmp.ge.s32.totalorder %s33_s15, 2  ;;  %p185_p2 = scmp.lt.s32.totalorder %s1200_s14, 3 }
   0x5   : > { %s1464_s15 = smov (%p35_p1, %s33_s15), 0  ;;  %p186_p3 = pnand %p1002_p0, %p185_p2 }
   0x6   : > { %s1003_s24 = sshll.u32 (!%p186_p3), %s1192_s12, 5  ;;  %p257_p5 = scmp.lt.s32.totalorder (!%p186_p3), %s1192_s12, 1 }
   0x7   : > { %189 = sbr.rel (%p186_p3) target bundleno = 293 (0x125), region = 28  ;;  %p231_p4 = scmp.lt.s32.totalorder (!%p186_p3), %s1003_s24, 63 }
   0xc   : > { %v1129_v0 = vld [vmem:[%s1458_s1 + $0x38] sm:$0xff]  ;;  %v1128_v1 = vld [vmem:[%s1458_s1 + $0x30] sm:$0xff]  ;;  %v1127_v2 = vld [vmem:[%s1458_s1 + $0x28] sm:$0xff]  ;;  %s1466_s24 = smov (!%p231_p4, %s1003_s24), 63  ;;  %s1468_s12 = smov (!%p257_p5, %s1192_s12), 1 }
   0xd   : > { %524 = vmatpush.bf16.msra.mxu0 %v1129_v0  ;;  %1130 = vmatpush.bf16.msra.mxu1 %v1129_v0  ;;  %v1126_v3 = vld [vmem:[%s1458_s1 + $0x20] sm:$0xff]  ;;  %v1125_v4 = vld [vmem:[%s1458_s1 + $0x18] sm:$0xff]  ;;  %v1124_v5 = vld [vmem:[%s1458_s1 + $0x10] sm:$0xff]  ;;  %s1004_s4 = sshll.u32 %s1466_s24, 2  ;;  %s1006_s10 = sshll.u32 %s1466_s24, 3 }
   0xe   : > { %1131 = vmatpush.bf16.msra.mxu2 %v1129_v0  ;;  %1132 = vmatpush.bf16.msra.mxu3 %v1129_v0  ;;  %v1123_v6 = vld [vmem:[%s1458_s1 + $0x8] sm:$0xff]  ;;  %v1122_v7 = vld [vmem:[%s1458_s1] sm:$0xff]  ;;  %s1273_s9 = scalar_lea.vmem %s1457_s0, %s1004_s4  ;;  %s1295_s17 = scalar_lea.vmem %s1459_s2, %s1006_s10 }
   0xf   : > { %v1106_v8 = vld [vmem:[%s1273_s9] sm:$0xff]  ;;  %v1107_v12 = vld [vmem:[%s1273_s9 + $0x8] sm:$0xff]  ;;  %v1108_v16 = vld [vmem:[%s1273_s9 + $0x10] sm:$0xff]  ;;  %s1007_s18 = sshll.u32 %s1468_s12, 3 }
  0x10   : > { %v1110_v9 = vld [vmem:[%s1273_s9 + $0x20] sm:$0xff]  ;;  %v1111_v13 = vld [vmem:[%s1273_s9 + $0x28] sm:$0xff]  ;;  %v1112_v17 = vld [vmem:[%s1273_s9 + $0x30] sm:$0xff]  ;;  %s263_s21 = scalar_lea.vmem %s1460_s3, %s1007_s18 }
  0x11   : > { %525 = vmatpush.bf16.msra.mxu0 %v1128_v1  ;;  %1133 = vmatpush.bf16.msra.mxu1 %v1128_v1  ;;  %v1114_v10 = vld [vmem:[%s1273_s9 + $0x40] sm:$0xff]  ;;  %v1115_v14 = vld [vmem:[%s1273_s9 + $0x48] sm:$0xff]  ;;  %v1116_v18 = vld [vmem:[%s1273_s9 + $0x50] sm:$0xff] }
  0x12   : > { %1134 = vmatpush.bf16.msra.mxu2 %v1128_v1  ;;  %1135 = vmatpush.bf16.msra.mxu3 %v1128_v1  ;;  %v1118_v11 = vld [vmem:[%s1273_s9 + $0x60] sm:$0xff]  ;;  %v1119_v15 = vld [vmem:[%s1273_s9 + $0x68] sm:$0xff]  ;;  %v1120_v19 = vld [vmem:[%s1273_s9 + $0x70] sm:$0xff] }
  0x13   : > { %v1109_v20 = vld [vmem:[%s1273_s9 + $0x18] sm:$0xff] }
  0x14   : > { %v1113_v21 = vld [vmem:[%s1273_s9 + $0x38] sm:$0xff] }
  0x15   : > { %526 = vmatpush.bf16.msra.mxu0 %v1127_v2  ;;  %1136 = vmatpush.bf16.msra.mxu1 %v1127_v2  ;;  %v1117_v22 = vld [vmem:[%s1273_s9 + $0x58] sm:$0xff] }
  0x16   : > { %1137 = vmatpush.bf16.msra.mxu2 %v1127_v2  ;;  %1138 = vmatpush.bf16.msra.mxu3 %v1127_v2  ;;  %v1121_v23 = vld [vmem:[%s1273_s9 + $0x78] sm:$0xff] }
  0x19   : > { %527 = vmatpush.bf16.msra.mxu0 %v1126_v3  ;;  %1139 = vmatpush.bf16.msra.mxu1 %v1126_v3 }
  0x1a   : > { %1140 = vmatpush.bf16.msra.mxu2 %v1126_v3  ;;  %1141 = vmatpush.bf16.msra.mxu3 %v1126_v3 }
  0x1d   : > { %528 = vmatpush.bf16.msra.mxu0 %v1125_v4  ;;  %1142 = vmatpush.bf16.msra.mxu1 %v1125_v4 }
  0x1e   : > { %1143 = vmatpush.bf16.msra.mxu2 %v1125_v4  ;;  %1144 = vmatpush.bf16.msra.mxu3 %v1125_v4 }
  0x21   : > { %529 = vmatpush.bf16.msra.mxu0 %v1124_v5  ;;  %1145 = vmatpush.bf16.msra.mxu1 %v1124_v5 }
  0x22   : > { %1146 = vmatpush.bf16.msra.mxu2 %v1124_v5  ;;  %1147 = vmatpush.bf16.msra.mxu3 %v1124_v5 }
  0x25   : > { %530 = vmatpush.bf16.msra.mxu0 %v1123_v6  ;;  %1148 = vmatpush.bf16.msra.mxu1 %v1123_v6 }
  0x26   : > { %1149 = vmatpush.bf16.msra.mxu2 %v1123_v6  ;;  %1150 = vmatpush.bf16.msra.mxu3 %v1123_v6 }
  0x29   : > { %531 = vmatpush.bf16.msra.mxu0 %v1122_v7  ;;  %1151 = vmatpush.bf16.msra.mxu1 %v1122_v7 }
  0x2a   : > { %1152 = vmatpush.bf16.msra.mxu2 %v1122_v7  ;;  %1153 = vmatpush.bf16.msra.mxu3 %v1122_v7 }
  0x2c   : > { %532 = vmatmul.bf16.vlgmr.msra.gmra.mxu0 %v1106_v8  ;;  %552 = vmatmul.bf16.vlgmr.msra.gmra.mxu1 %v1110_v9 }
  0x2d   : > { %572 = vmatmul.bf16.vlgmr.msra.gmra.mxu2 %v1114_v10  ;;  %592 = vmatmul.bf16.vlgmr.msra.gmra.mxu3 %v1118_v11 }
  0x3c   : > { %537 = vmatmul.bf16.gmra.mxu0 %v1107_v12  ;;  %557 = vmatmul.bf16.gmra.mxu1 %v1111_v13 }
  0x3d   : > { %577 = vmatmul.bf16.gmra.mxu2 %v1115_v14  ;;  %597 = vmatmul.bf16.gmra.mxu3 %v1119_v15 }
  0x4c   : > { %542 = vmatmul.bf16.gmra.mxu0 %v1108_v16  ;;  %562 = vmatmul.bf16.gmra.mxu1 %v1112_v17 }
  0x4d   : > { %582 = vmatmul.bf16.gmra.mxu2 %v1116_v18  ;;  %602 = vmatmul.bf16.gmra.mxu3 %v1120_v19 }
  0x5c   : > { %547 = vmatmul.bf16.gmra.mxu0 %v1109_v20  ;;  %567 = vmatmul.bf16.gmra.mxu1 %v1113_v21 }
  0x5d   : > { %587 = vmatmul.bf16.gmra.mxu2 %v1117_v22  ;;  %607 = vmatmul.bf16.gmra.mxu3 %v1121_v23 }
  0xa9   : > { %v533_v24 = vpop.f32.mrf.mxu0  ;;  %v1297_v25 = vpop.f32.mrf.mxu1 }
  0xaa   : > { %712 = vst [vmem:[%s1295_s17] sm:$0xff] %v533_v24  ;;  %v781_v47 = vmul.f32 %v533_v24, %v533_v24  ;;  %v789_v11 = vmul.f32 %v1297_v25, %v1297_v25 }
  0xab   : > { %720 = vst [vmem:[%s1295_s17 + $0x40] sm:$0xff] %v1297_v25 }
  0xb0   : > { %v1302_v26 = vpop.f32.mrf.mxu2  ;;  %v1309_v29 = vpop.f32.mrf.mxu3 }
  0xb1   : > { %v535_v27 = vpop.f32.mrf.mxu0  ;;  %v1304_v28 = vpop.f32.mrf.mxu1  ;;  %728 = vst [vmem:[%s1295_s17 + $0x80] sm:$0xff] %v1302_v26 }
  0xb2   : > { %713 = vst [vmem:[%s1295_s17 + $0x8] sm:$0xff] %v535_v27  ;;  %v782_v46 = vmul.f32 %v535_v27, %v535_v27  ;;  %v744_v48 = vadd.f32 %v535_v27, %v533_v24  ;;  %v790_v14 = vmul.f32 %v1304_v28, %v1304_v28 }
  0xb3   : > { %721 = vst [vmem:[%s1295_s17 + $0x48] sm:$0xff] %v1304_v28 }
  0xb4   : > { %736 = vst [vmem:[%s1295_s17 + $0xc0] sm:$0xff] %v1309_v29  ;;  %v813_v50 = vadd.f32 %v782_v46, %v781_v47 }
  0xb8   : > { %v1315_v30 = vpop.f32.mrf.mxu2  ;;  %v1322_v33 = vpop.f32.mrf.mxu3 }
  0xb9   : > { %v538_v31 = vpop.f32.mrf.mxu0  ;;  %v1317_v32 = vpop.f32.mrf.mxu1  ;;  %729 = vst [vmem:[%s1295_s17 + $0x88] sm:$0xff] %v1315_v30 }
  0xba   : > { %714 = vst [vmem:[%s1295_s17 + $0x10] sm:$0xff] %v538_v31  ;;  %v783_v49 = vmul.f32 %v538_v31, %v538_v31  ;;  %v745_v51 = vadd.f32 %v744_v48, %v538_v31  ;;  %v791_v17 = vmul.f32 %v1317_v32, %v1317_v32 }
  0xbb   : > { %722 = vst [vmem:[%s1295_s17 + $0x50] sm:$0xff] %v1317_v32 }
  0xbc   : > { %737 = vst [vmem:[%s1295_s17 + $0xc8] sm:$0xff] %v1322_v33  ;;  %v814_v56 = vadd.f32 %v813_v50, %v783_v49  ;;  %v797_v49 = vmul.f32 %v1302_v26, %v1302_v26 }
  0xc0   : > { %v1328_v34 = vpop.f32.mrf.mxu2  ;;  %v1335_v37 = vpop.f32.mrf.mxu3 }
  0xc1   : > { %v540_v35 = vpop.f32.mrf.mxu0  ;;  %v1330_v36 = vpop.f32.mrf.mxu1  ;;  %730 = vst [vmem:[%s1295_s17 + $0x90] sm:$0xff] %v1328_v34 }
  0xc2   : > { %715 = vst [vmem:[%s1295_s17 + $0x18] sm:$0xff] %v540_v35  ;;  %v784_v52 = vmul.f32 %v540_v35, %v540_v35  ;;  %v746_v57 = vadd.f32 %v745_v51, %v540_v35  ;;  %v792_v21 = vmul.f32 %v1330_v36, %v1330_v36 }
  0xc3   : > { %723 = vst [vmem:[%s1295_s17 + $0x58] sm:$0xff] %v1330_v36 }
  0xc4   : > { %738 = vst [vmem:[%s1295_s17 + $0xd0] sm:$0xff] %v1335_v37  ;;  %v815_v60 = vadd.f32 %v814_v56, %v784_v52 }
  0xc8   : > { %v1341_v38 = vpop.f32.mrf.mxu2  ;;  %v1348_v41 = vpop.f32.mrf.mxu3 }
  0xc9   : > { %v543_v39 = vpop.f32.mrf.mxu0  ;;  %v1343_v40 = vpop.f32.mrf.mxu1  ;;  %731 = vst [vmem:[%s1295_s17 + $0x98] sm:$0xff] %v1341_v38 }
  0xca   : > { %716 = vst [vmem:[%s1295_s17 + $0x20] sm:$0xff] %v543_v39  ;;  %v785_v58 = vmul.f32 %v543_v39, %v543_v39  ;;  %v747_v61 = vadd.f32 %v746_v57, %v543_v39  ;;  %v800_v57 = vmul.f32 %v1341_v38, %v1341_v38 }
  0xcb   : > { %724 = vst [vmem:[%s1295_s17 + $0x60] sm:$0xff] %v1343_v40 }
  0xcc   : > { %739 = vst [vmem:[%s1295_s17 + $0xd8] sm:$0xff] %v1348_v41  ;;  %v816_v63 = vadd.f32 %v815_v60, %v785_v58 }
  0xd0   : > { %v1354_v42 = vpop.f32.mrf.mxu2  ;;  %v1361_v45 = vpop.f32.mrf.mxu3 }
  0xd1   : > { %v545_v43 = vpop.f32.mrf.mxu0  ;;  %v1356_v44 = vpop.f32.mrf.mxu1  ;;  %732 = vst [vmem:[%s1295_s17 + $0xa0] sm:$0xff] %v1354_v42 }
  0xd2   : > { %717 = vst [vmem:[%s1295_s17 + $0x28] sm:$0xff] %v545_v43  ;;  %v786_v62 = vmul.f32 %v545_v43, %v545_v43  ;;  %v748_v0 = vadd.f32 %v747_v61, %v545_v43  ;;  %v794_v31 = vmul.f32 %v1356_v44, %v1356_v44 }
  0xd3   : > { %725 = vst [vmem:[%s1295_s17 + $0x68] sm:$0xff] %v1356_v44 }
  0xd4   : > { %740 = vst [vmem:[%s1295_s17 + $0xe0] sm:$0xff] %v1361_v45  ;;  %v817_v2 = vadd.f32 %v816_v63, %v786_v62 }
  0xd8   : > { %v1367_v53 = vpop.f32.mrf.mxu2  ;;  %v1372_v59 = vpop.f32.mrf.mxu3 }
  0xd9   : > { %v548_v54 = vpop.f32.mrf.mxu0  ;;  %v568_v55 = vpop.f32.mrf.mxu1  ;;  %733 = vst [vmem:[%s1295_s17 + $0xa8] sm:$0xff] %v1367_v53  ;;  %v802_v63 = vmul.f32 %v1367_v53, %v1367_v53 }
  0xda   : > { %718 = vst [vmem:[%s1295_s17 + $0x30] sm:$0xff] %v548_v54  ;;  %v787_v1 = vmul.f32 %v548_v54, %v548_v54  ;;  %v749_v3 = vadd.f32 %v748_v0, %v548_v54  ;;  %v795_v43 = vmul.f32 %v568_v55, %v568_v55 }
  0xdb   : > { %726 = vst [vmem:[%s1295_s17 + $0x70] sm:$0xff] %v568_v55 }
  0xdc   : > { %741 = vst [vmem:[%s1295_s17 + $0xe8] sm:$0xff] %v1372_v59  ;;  %v818_v7 = vadd.f32 %v817_v2, %v787_v1 }
  0xe0   : > { %v588_v4 = vpop.f32.mrf.mxu2  ;;  %v1379_v10 = vpop.f32.mrf.mxu3 }
  0xe1   : > { %v550_v5 = vpop.f32.mrf.mxu0  ;;  %v570_v6 = vpop.f32.mrf.mxu1  ;;  %734 = vst [vmem:[%s1295_s17 + $0xb0] sm:$0xff] %v588_v4  ;;  %v803_v2 = vmul.f32 %v588_v4, %v588_v4 }
  0xe2   : > { %719 = vst [vmem:[%s1295_s17 + $0x38] sm:$0xff] %v550_v5  ;;  %v750_v8 = vadd.f32 %v749_v3, %v550_v5  ;;  %v788_v9 = vmul.f32 %v550_v5, %v550_v5 }
  0xe3   : > { %727 = vst [vmem:[%s1295_s17 + $0x78] sm:$0xff] %v570_v6 }
  0xe4   : > { %v751_v12 = vadd.f32 %v750_v8, %v1297_v25  ;;  %v819_v13 = vadd.f32 %v818_v7, %v788_v9  ;;  %742 = vst [vmem:[%s1295_s17 + $0xf0] sm:$0xff] %v1379_v10  ;;  %v793_v25 = vmul.f32 %v1343_v40, %v1343_v40 }
  0xe6   : > { %v752_v15 = vadd.f32 %v751_v12, %v1304_v28  ;;  %v820_v16 = vadd.f32 %v819_v13, %v789_v11  ;;  %v808_v13 = vmul.f32 %v1348_v41, %v1348_v41 }
  0xe8   : > { %v753_v18 = vadd.f32 %v752_v15, %v1317_v32  ;;  %v821_v19 = vadd.f32 %v820_v16, %v790_v14  ;;  %v590_v20 = vpop.f32.mrf.mxu2  ;;  %v610_v24 = vpop.f32.mrf.mxu3  ;;  %v809_v15 = vmul.f32 %v1361_v45, %v1361_v45 }
  0xe9   : > { %735 = vst [vmem:[%s1295_s17 + $0xb8] sm:$0xff] %v590_v20 }
  0xea   : > { %v822_v22 = vadd.f32 %v821_v19, %v791_v17  ;;  %v754_v23 = vadd.f32 %v753_v18, %v1330_v36  ;;  %743 = vst [vmem:[%s1295_s17 + $0xf8] sm:$0xff] %v610_v24  ;;  %v796_v36 = vmul.f32 %v570_v6, %v570_v6  ;;  %v810_v18 = vmul.f32 %v1372_v59, %v1372_v59 }
  0xec   : > { %v755_v27 = vadd.f32 %v754_v23, %v1343_v40  ;;  %v823_v28 = vadd.f32 %v822_v22, %v792_v21  ;;  %v798_v40 = vmul.f32 %v1315_v30, %v1315_v30  ;;  %v811_v21 = vmul.f32 %v1379_v10, %v1379_v10 }
  0xed   : > { %v812_v23 = vmul.f32 %v610_v24, %v610_v24 }
  0xee   : > { %v756_v32 = vadd.f32 %v755_v27, %v1356_v44  ;;  %v824_v35 = vadd.f32 %v823_v28, %v793_v25  ;;  %v799_v44 = vmul.f32 %v1328_v34, %v1328_v34 }
  0xf0   : > { %v757_v39 = vadd.f32 %v756_v32, %v568_v55  ;;  %v825_v46 = vadd.f32 %v824_v35, %v794_v31  ;;  %v850_v31 = vlaneseq }
  0xf2   : > { %v826_v47 = vadd.f32 %v825_v46, %v795_v43  ;;  %v758_v48 = vadd.f32 %v757_v39, %v570_v6  ;;  %v804_v6 = vmul.f32 %v590_v20, %v590_v20  ;;  %v851_v43 = vshrl.u32 %v850_v31, 7 }
  0xf4   : > { %v759_v50 = vadd.f32 %v758_v48, %v1302_v26  ;;  %v827_v51 = vadd.f32 %v826_v47, %v796_v36  ;;  %v801_v26 = vmul.f32 %v1354_v42, %v1354_v42  ;;  %vm853_vm0 = vcmp.eq.s32.totalorder %v851_v43, 1 }
  0xf5   : > { %vm852_vm1 = vcmp.eq.s32.totalorder %v851_v43, 0 }
  0xf6   : > { %v760_v52 = vadd.f32 %v759_v50, %v1315_v30  ;;  %v828_v54 = vadd.f32 %v827_v51, %v797_v49 }
  0xf8   : > { %v761_v55 = vadd.f32 %v760_v52, %v1328_v34  ;;  %v829_v56 = vadd.f32 %v828_v54, %v798_v40 }
  0xfa   : > { %v830_v58 = vadd.f32 %v829_v56, %v799_v44  ;;  %v762_v60 = vadd.f32 %v761_v55, %v1341_v38  ;;  %v805_v38 = vmul.f32 %v1309_v29, %v1309_v29 }
  0xfc   : > { %v763_v61 = vadd.f32 %v762_v60, %v1354_v42  ;;  %v831_v62 = vadd.f32 %v830_v58, %v800_v57  ;;  %v806_v42 = vmul.f32 %v1322_v33, %v1322_v33 }
  0xfe   : > { %v764_v30 = vadd.f32 %v763_v61, %v1367_v53  ;;  %v832_v0 = vadd.f32 %v831_v62, %v801_v26  ;;  %v807_v53 = vmul.f32 %v1335_v37, %v1335_v37 }
 0x100   : > { %v833_v34 = vadd.f32 %v832_v0, %v802_v63  ;;  %v765_v1 = vadd.f32 %v764_v30, %v588_v4 }
 0x102   : > { %v834_v3 = vadd.f32 %v833_v34, %v803_v2  ;;  %v766_v5 = vadd.f32 %v765_v1, %v590_v20 }
 0x104   : > { %v767_v7 = vadd.f32 %v766_v5, %v1309_v29  ;;  %v835_v8 = vadd.f32 %v834_v3, %v804_v6 }
 0x106   : > { %v768_v9 = vadd.f32 %v767_v7, %v1322_v33  ;;  %v836_v11 = vadd.f32 %v835_v8, %v805_v38 }
 0x108   : > { %v769_v4 = vadd.f32 %v768_v9, %v1335_v37  ;;  %v837_v12 = vadd.f32 %v836_v11, %v806_v42 }
 0x10a   : > { %v838_v14 = vadd.f32 %v837_v12, %v807_v53  ;;  %v770_v29 = vadd.f32 %v769_v4, %v1348_v41 }
 0x10c   : > { %v771_v16 = vadd.f32 %v770_v29, %v1361_v45  ;;  %v839_v33 = vadd.f32 %v838_v14, %v808_v13 }
 0x10e   : > { %v772_v17 = vadd.f32 %v771_v16, %v1372_v59  ;;  %v840_v37 = vadd.f32 %v839_v33, %v809_v15 }
 0x110   : > { %v841_v19 = vadd.f32 %v840_v37, %v810_v18  ;;  %v773_v20 = vadd.f32 %v772_v17, %v1379_v10 }
 0x112   : > { %v842_v41 = vadd.f32 %v841_v19, %v811_v21  ;;  %v774_v22 = vadd.f32 %v773_v20, %v610_v24 }
 0x114   : > { %v775_v25 = vrot.slane %v774_v22, 4  ;;  %v843_v27 = vadd.f32 %v842_v41, %v812_v23 }
 0x116   : > { %v776_v45 = vadd.f32 %v775_v25, %v774_v22  ;;  %v844_v28 = vrot.slane %v843_v27, 4 }
 0x118   : > { %v777_v32 = vrot.slane %v776_v45, 2  ;;  %v845_v35 = vadd.f32 %v844_v28, %v843_v27 }
 0x11a   : > { %v778_v59 = vadd.f32 %v777_v32, %v776_v45  ;;  %v846_v39 = vrot.slane %v845_v35, 2 }
 0x11c   : > { %v847_v46 = vadd.f32 %v846_v39, %v845_v35  ;;  %v779_v47 = vrot.slane %v778_v59, 1 }
 0x11e   : > { %v848_v48 = vrot.slane %v847_v46, 1  ;;  %v780_v24 = vadd.f32 %v779_v47, %v778_v59 }
 0x120   : > { %v849_v10 = vadd.f32 %v848_v48, %v847_v46 }
 0x122   : > { %v854_v36 = vsel %vm853_vm0, %v849_v10, 0.0 }
 0x123   : > { %v855_v49 = vsel %vm852_vm1, %v780_v24, %v854_v36 }
 0x124   : > { %856 = vst [vmem:[%s263_s21] sm:$0xff] %v855_v49 }
 0x125 PF: > { %s14_s14 = sadd.s32 1, %s1200_s14   ;;  %s1461_s12 = smov %s1196_s13 }
 0x126   : > { %p11_p6 = scmp.ge.s32.totalorder %s14_s14, 4   ;;  %s1462_s13 = smov %s1464_s15 }
 0x128   :  { %13 = sbr.rel (!%p11_p6) target bundleno = 2 (0x2), region = 81 }

// kernel: unet_generator_forward.57
= control target key start
LH: loop header
LB: loop body
LE: loop exit
PB: predicated region body
PF: predicated region fallthrough
CT: control target
= control target key end

     0   :  { %s829_s0 = inlined_call_operand.vmem [shape: f32[512,128], index: 0, kind: input, shape index: {}]   ;;  %s830_s1 = inlined_call_operand.vmem [shape: f32[1,128], index: 1, kind: input, shape index: {}]   ;;  %s831_s2 = inlined_call_operand.vmem [shape: f32[1,128], index: 2, kind: input, shape index: {}]   ;;  %s832_s3 = inlined_call_operand.vmem [shape: f32[512,128], index: 3, kind: output, shape index: {}]  }
   0x1   :  { %v14_v0 = vld [vmem:[%s829_s0] sm:$0xff]  ;;  %v15_v3 = vld [vmem:[%s829_s0 + $0x8] sm:$0xff]  ;;  %v16_v6 = vld [vmem:[%s829_s0 + $0x10] sm:$0xff] }
   0x2   :  { %v310_v1 = vld [vmem:[%s830_s1] ss:$0 sm:$0xff]  ;;  %v17_v7 = vld [vmem:[%s829_s0 + $0x18] sm:$0xff]  ;;  %v19_v12 = vld [vmem:[%s829_s0 + $0x28] sm:$0xff] }
   0x3   :  { %v315_v2 = vld [vmem:[%s831_s2] ss:$0 sm:$0xff]  ;;  %v82_v4 = vmul.f32 %v310_v1, %v14_v0  ;;  %v83_v5 = vmul.f32 %v310_v1, %v15_v3  ;;  %v84_v9 = vmul.f32 %v310_v1, %v16_v6  ;;  %v85_v10 = vmul.f32 %v310_v1, %v17_v7  ;;  %v20_v13 = vld [vmem:[%s829_s0 + $0x30] sm:$0xff]  ;;  %v21_v14 = vld [vmem:[%s829_s0 + $0x38] sm:$0xff] }
   0x4   :  { %v18_v8 = vld [vmem:[%s829_s0 + $0x20] sm:$0xff]  ;;  %v87_v17 = vmul.f32 %v310_v1, %v19_v12  ;;  %v88_v18 = vmul.f32 %v310_v1, %v20_v13  ;;  %v23_v20 = vld [vmem:[%s829_s0 + $0x48] sm:$0xff]  ;;  %v89_v23 = vmul.f32 %v310_v1, %v21_v14  ;;  %v24_v24 = vld [vmem:[%s829_s0 + $0x50] sm:$0xff] }
   0x5   :  { %v86_v11 = vmul.f32 %v310_v1, %v18_v8  ;;  %v150_v15 = vadd.f32 %v315_v2, %v82_v4  ;;  %v151_v16 = vadd.f32 %v315_v2, %v83_v5  ;;  %v22_v19 = vld [vmem:[%s829_s0 + $0x40] sm:$0xff]  ;;  %v152_v21 = vadd.f32 %v315_v2, %v84_v9  ;;  %v25_v27 = vld [vmem:[%s829_s0 + $0x58] sm:$0xff]  ;;  %v27_v33 = vld [vmem:[%s829_s0 + $0x68] sm:$0xff] }
   0x6   :  { %v153_v22 = vadd.f32 %v315_v2, %v85_v10  ;;  %v90_v26 = vmul.f32 %v310_v1, %v22_v19  ;;  %v155_v28 = vadd.f32 %v315_v2, %v87_v17  ;;  %v91_v29 = vmul.f32 %v310_v1, %v23_v20  ;;  %v26_v30 = vld [vmem:[%s829_s0 + $0x60] sm:$0xff]  ;;  %v28_v36 = vld [vmem:[%s829_s0 + $0x70] sm:$0xff]  ;;  %v29_v39 = vld [vmem:[%s829_s0 + $0x78] sm:$0xff] }
   0x7   :  { %214 = vst [vmem:[%s832_s3] sm:$0xff] %v150_v15  ;;  %v154_v25 = vadd.f32 %v315_v2, %v86_v11  ;;  %v156_v31 = vadd.f32 %v315_v2, %v88_v18  ;;  %v92_v32 = vmul.f32 %v310_v1, %v24_v24  ;;  %v157_v34 = vadd.f32 %v315_v2, %v89_v23  ;;  %v30_v42 = vld [vmem:[%s829_s0 + $0x80] sm:$0xff]  ;;  %v31_v45 = vld [vmem:[%s829_s0 + $0x88] sm:$0xff]  ;;  %v32_v48 = vld [vmem:[%s829_s0 + $0x90] sm:$0xff] }
   0x8   :  { %215 = vst [vmem:[%s832_s3 + $0x8] sm:$0xff] %v151_v16  ;;  %v93_v35 = vmul.f32 %v310_v1, %v25_v27  ;;  %v158_v37 = vadd.f32 %v315_v2, %v90_v26  ;;  %v94_v38 = vmul.f32 %v310_v1, %v26_v30  ;;  %v159_v40 = vadd.f32 %v315_v2, %v91_v29  ;;  %v33_v51 = vld [vmem:[%s829_s0 + $0x98] sm:$0xff]  ;;  %v34_v54 = vld [vmem:[%s829_s0 + $0xa0] sm:$0xff]  ;;  %v35_v57 = vld [vmem:[%s829_s0 + $0xa8] sm:$0xff] }
   0x9   :  { %216 = vst [vmem:[%s832_s3 + $0x10] sm:$0xff] %v152_v21  ;;  %v95_v41 = vmul.f32 %v310_v1, %v27_v33  ;;  %v160_v43 = vadd.f32 %v315_v2, %v92_v32  ;;  %v96_v44 = vmul.f32 %v310_v1, %v28_v36  ;;  %v97_v47 = vmul.f32 %v310_v1, %v29_v39  ;;  %v36_v60 = vld [vmem:[%s829_s0 + $0xb0] sm:$0xff]  ;;  %v37_v63 = vld [vmem:[%s829_s0 + $0xb8] sm:$0xff]  ;;  %v38_v4 = vld [vmem:[%s829_s0 + $0xc0] sm:$0xff] }
   0xa   :  { %217 = vst [vmem:[%s832_s3 + $0x18] sm:$0xff] %v153_v22  ;;  %v161_v46 = vadd.f32 %v315_v2, %v93_v35  ;;  %v162_v49 = vadd.f32 %v315_v2, %v94_v38  ;;  %v98_v50 = vmul.f32 %v310_v1, %v30_v42  ;;  %v99_v53 = vmul.f32 %v310_v1, %v31_v45  ;;  %v39_v7 = vld [vmem:[%s829_s0 + $0xc8] sm:$0xff]  ;;  %v40_v10 = vld [vmem:[%s829_s0 + $0xd0] sm:$0xff]  ;;  %v41_v13 = vld [vmem:[%s829_s0 + $0xd8] sm:$0xff] }
   0xb   :  { %218 = vst [vmem:[%s832_s3 + $0x20] sm:$0xff] %v154_v25  ;;  %v163_v52 = vadd.f32 %v315_v2, %v95_v41  ;;  %v164_v55 = vadd.f32 %v315_v2, %v96_v44  ;;  %v100_v56 = vmul.f32 %v310_v1, %v32_v48  ;;  %v165_v58 = vadd.f32 %v315_v2, %v97_v47  ;;  %v42_v16 = vld [vmem:[%s829_s0 + $0xe0] sm:$0xff]  ;;  %v43_v19 = vld [vmem:[%s829_s0 + $0xe8] sm:$0xff]  ;;  %v44_v22 = vld [vmem:[%s829_s0 + $0xf0] sm:$0xff] }
   0xc   :  { %219 = vst [vmem:[%s832_s3 + $0x28] sm:$0xff] %v155_v28  ;;  %v101_v59 = vmul.f32 %v310_v1, %v33_v51  ;;  %v166_v61 = vadd.f32 %v315_v2, %v98_v50  ;;  %v102_v62 = vmul.f32 %v310_v1, %v34_v54  ;;  %v167_v0 = vadd.f32 %v315_v2, %v99_v53  ;;  %v45_v25 = vld [vmem:[%s829_s0 + $0xf8] sm:$0xff]  ;;  %v46_v28 = vld [vmem:[%s829_s0 + $0x100] sm:$0xff]  ;;  %v51_v44 = vld [vmem:[%s829_s0 + $0x128] sm:$0xff] }
   0xd   :  { %220 = vst [vmem:[%s832_s3 + $0x30] sm:$0xff] %v156_v31  ;;  %v103_v3 = vmul.f32 %v310_v1, %v35_v57  ;;  %v168_v5 = vadd.f32 %v315_v2, %v100_v56  ;;  %v104_v6 = vmul.f32 %v310_v1, %v36_v60  ;;  %v105_v9 = vmul.f32 %v310_v1, %v37_v63  ;;  %v47_v31 = vld [vmem:[%s829_s0 + $0x108] sm:$0xff]  ;;  %v77_v41 = vld [vmem:[%s829_s0 + $0x1f8] sm:$0xff]  ;;  %v52_v47 = vld [vmem:[%s829_s0 + $0x130] sm:$0xff] }
   0xe   :  { %221 = vst [vmem:[%s832_s3 + $0x38] sm:$0xff] %v157_v34  ;;  %v169_v8 = vadd.f32 %v315_v2, %v101_v59  ;;  %v170_v11 = vadd.f32 %v315_v2, %v102_v62  ;;  %v106_v12 = vmul.f32 %v310_v1, %v38_v4  ;;  %v107_v15 = vmul.f32 %v310_v1, %v39_v7  ;;  %v48_v34 = vld [vmem:[%s829_s0 + $0x110] sm:$0xff]  ;;  %v53_v51 = vld [vmem:[%s829_s0 + $0x138] sm:$0xff]  ;;  %v54_v54 = vld [vmem:[%s829_s0 + $0x140] sm:$0xff] }
   0xf   :  { %222 = vst [vmem:[%s832_s3 + $0x40] sm:$0xff] %v158_v37  ;;  %v171_v14 = vadd.f32 %v315_v2, %v103_v3  ;;  %v172_v17 = vadd.f32 %v315_v2, %v104_v6  ;;  %v108_v18 = vmul.f32 %v310_v1, %v40_v10  ;;  %v173_v20 = vadd.f32 %v315_v2, %v105_v9  ;;  %v49_v37 = vld [vmem:[%s829_s0 + $0x118] sm:$0xff] }
  0x10   :  { %223 = vst [vmem:[%s832_s3 + $0x48] sm:$0xff] %v159_v40  ;;  %v109_v21 = vmul.f32 %v310_v1, %v41_v13  ;;  %v174_v23 = vadd.f32 %v315_v2, %v106_v12  ;;  %v110_v24 = vmul.f32 %v310_v1, %v42_v16  ;;  %v175_v26 = vadd.f32 %v315_v2, %v107_v15  ;;  %v50_v40 = vld [vmem:[%s829_s0 + $0x120] sm:$0xff] }
  0x11   :  { %224 = vst [vmem:[%s832_s3 + $0x50] sm:$0xff] %v160_v43  ;;  %v111_v27 = vmul.f32 %v310_v1, %v43_v19  ;;  %v176_v29 = vadd.f32 %v315_v2, %v108_v18  ;;  %v112_v30 = vmul.f32 %v310_v1, %v44_v22  ;;  %v113_v33 = vmul.f32 %v310_v1, %v45_v25 }
  0x12   :  { %225 = vst [vmem:[%s832_s3 + $0x58] sm:$0xff] %v161_v46  ;;  %v177_v32 = vadd.f32 %v315_v2, %v109_v21  ;;  %v178_v35 = vadd.f32 %v315_v2, %v110_v24  ;;  %v114_v36 = vmul.f32 %v310_v1, %v46_v28  ;;  %v115_v39 = vmul.f32 %v310_v1, %v47_v31 }
  0x13   :  { %226 = vst [vmem:[%s832_s3 + $0x60] sm:$0xff] %v162_v49  ;;  %v179_v38 = vadd.f32 %v315_v2, %v111_v27  ;;  %v180_v42 = vadd.f32 %v315_v2, %v112_v30  ;;  %v116_v43 = vmul.f32 %v310_v1, %v48_v34  ;;  %v181_v45 = vadd.f32 %v315_v2, %v113_v33 }
  0x14   :  { %227 = vst [vmem:[%s832_s3 + $0x68] sm:$0xff] %v163_v52  ;;  %v117_v46 = vmul.f32 %v310_v1, %v49_v37  ;;  %v145_v48 = vmul.f32 %v310_v1, %v77_v41  ;;  %v182_v49 = vadd.f32 %v315_v2, %v114_v36  ;;  %v118_v50 = vmul.f32 %v310_v1, %v50_v40  ;;  %v70_v41 = vld [vmem:[%s829_s0 + $0x1c0] sm:$0xff] }
  0x15   :  { %228 = vst [vmem:[%s832_s3 + $0x70] sm:$0xff] %v164_v55  ;;  %v183_v52 = vadd.f32 %v315_v2, %v115_v39  ;;  %v119_v53 = vmul.f32 %v310_v1, %v51_v44  ;;  %v184_v56 = vadd.f32 %v315_v2, %v116_v43  ;;  %v120_v57 = vmul.f32 %v310_v1, %v52_v47  ;;  %v71_v44 = vld [vmem:[%s829_s0 + $0x1c8] sm:$0xff]  ;;  %v72_v47 = vld [vmem:[%s829_s0 + $0x1d0] sm:$0xff] }
  0x16   :  { %229 = vst [vmem:[%s832_s3 + $0x78] sm:$0xff] %v165_v58  ;;  %v604_v55 = vadd.f32 %v315_v2, %v145_v48  ;;  %v55_v58 = vld [vmem:[%s829_s0 + $0x148] sm:$0xff]  ;;  %v185_v59 = vadd.f32 %v315_v2, %v117_v46  ;;  %v121_v60 = vmul.f32 %v310_v1, %v53_v51  ;;  %v186_v62 = vadd.f32 %v315_v2, %v118_v50  ;;  %v73_v50 = vld [vmem:[%s829_s0 + $0x1d8] sm:$0xff] }
  0x17   :  { %230 = vst [vmem:[%s832_s3 + $0x80] sm:$0xff] %v166_v61  ;;  %v56_v61 = vld [vmem:[%s829_s0 + $0x150] sm:$0xff]  ;;  %v122_v63 = vmul.f32 %v310_v1, %v54_v54  ;;  %v187_v3 = vadd.f32 %v315_v2, %v119_v53  ;;  %v123_v4 = vmul.f32 %v310_v1, %v55_v58  ;;  %v188_v6 = vadd.f32 %v315_v2, %v120_v57  ;;  %v74_v53 = vld [vmem:[%s829_s0 + $0x1e0] sm:$0xff]  ;;  %v75_v57 = vld [vmem:[%s829_s0 + $0x1e8] sm:$0xff] }
  0x18   :  { %231 = vst [vmem:[%s832_s3 + $0x88] sm:$0xff] %v167_v0  ;;  %v57_v0 = vld [vmem:[%s829_s0 + $0x158] sm:$0xff]  ;;  %v124_v7 = vmul.f32 %v310_v1, %v56_v61  ;;  %v189_v9 = vadd.f32 %v315_v2, %v121_v60  ;;  %v76_v60 = vld [vmem:[%s829_s0 + $0x1f0] sm:$0xff] }
  0x19   :  { %232 = vst [vmem:[%s832_s3 + $0x90] sm:$0xff] %v168_v5  ;;  %v58_v5 = vld [vmem:[%s829_s0 + $0x160] sm:$0xff]  ;;  %v125_v10 = vmul.f32 %v310_v1, %v57_v0  ;;  %v190_v12 = vadd.f32 %v315_v2, %v122_v63  ;;  %v191_v15 = vadd.f32 %v315_v2, %v123_v4  ;;  %v143_v0 = vmul.f32 %v310_v1, %v75_v57 }
  0x1a   :  { %233 = vst [vmem:[%s832_s3 + $0x98] sm:$0xff] %v169_v8  ;;  %v59_v8 = vld [vmem:[%s829_s0 + $0x168] sm:$0xff]  ;;  %v126_v13 = vmul.f32 %v310_v1, %v58_v5  ;;  %v192_v18 = vadd.f32 %v315_v2, %v124_v7  ;;  %v144_v4 = vmul.f32 %v310_v1, %v76_v60 }
  0x1b   :  { %234 = vst [vmem:[%s832_s3 + $0xa0] sm:$0xff] %v170_v11  ;;  %v60_v11 = vld [vmem:[%s829_s0 + $0x170] sm:$0xff]  ;;  %v127_v16 = vmul.f32 %v310_v1, %v59_v8  ;;  %v193_v21 = vadd.f32 %v315_v2, %v125_v10  ;;  %v211_v7 = vadd.f32 %v315_v2, %v143_v0 }
  0x1c   :  { %235 = vst [vmem:[%s832_s3 + $0xa8] sm:$0xff] %v171_v14  ;;  %v61_v14 = vld [vmem:[%s829_s0 + $0x178] sm:$0xff]  ;;  %v128_v19 = vmul.f32 %v310_v1, %v60_v11  ;;  %v194_v24 = vadd.f32 %v315_v2, %v126_v13 }
  0x1d   :  { %236 = vst [vmem:[%s832_s3 + $0xb0] sm:$0xff] %v172_v17  ;;  %v62_v17 = vld [vmem:[%s829_s0 + $0x180] sm:$0xff]  ;;  %v129_v22 = vmul.f32 %v310_v1, %v61_v14  ;;  %v195_v27 = vadd.f32 %v315_v2, %v127_v16 }
  0x1e   :  { %237 = vst [vmem:[%s832_s3 + $0xb8] sm:$0xff] %v173_v20  ;;  %v63_v20 = vld [vmem:[%s829_s0 + $0x188] sm:$0xff]  ;;  %v130_v25 = vmul.f32 %v310_v1, %v62_v17  ;;  %v196_v30 = vadd.f32 %v315_v2, %v128_v19 }
  0x1f   :  { %238 = vst [vmem:[%s832_s3 + $0xc0] sm:$0xff] %v174_v23  ;;  %v64_v23 = vld [vmem:[%s829_s0 + $0x190] sm:$0xff]  ;;  %v131_v28 = vmul.f32 %v310_v1, %v63_v20  ;;  %v197_v33 = vadd.f32 %v315_v2, %v129_v22 }
  0x20   :  { %239 = vst [vmem:[%s832_s3 + $0xc8] sm:$0xff] %v175_v26  ;;  %v65_v26 = vld [vmem:[%s829_s0 + $0x198] sm:$0xff]  ;;  %v132_v31 = vmul.f32 %v310_v1, %v64_v23  ;;  %v198_v36 = vadd.f32 %v315_v2, %v130_v25 }
  0x21   :  { %240 = vst [vmem:[%s832_s3 + $0xd0] sm:$0xff] %v176_v29  ;;  %v66_v29 = vld [vmem:[%s829_s0 + $0x1a0] sm:$0xff]  ;;  %v133_v34 = vmul.f32 %v310_v1, %v65_v26  ;;  %v199_v39 = vadd.f32 %v315_v2, %v131_v28 }
  0x22   :  { %241 = vst [vmem:[%s832_s3 + $0xd8] sm:$0xff] %v177_v32  ;;  %v67_v32 = vld [vmem:[%s829_s0 + $0x1a8] sm:$0xff]  ;;  %v134_v37 = vmul.f32 %v310_v1, %v66_v29 }
  0x23   :  { %242 = vst [vmem:[%s832_s3 + $0xe0] sm:$0xff] %v178_v35  ;;  %v68_v35 = vld [vmem:[%s829_s0 + $0x1b0] sm:$0xff]  ;;  %v135_v40 = vmul.f32 %v310_v1, %v67_v32 }
  0x24   :  { %243 = vst [vmem:[%s832_s3 + $0xe8] sm:$0xff] %v179_v38  ;;  %v69_v38 = vld [vmem:[%s829_s0 + $0x1b8] sm:$0xff]  ;;  %v136_v43 = vmul.f32 %v310_v1, %v68_v35  ;;  %v202_v48 = vadd.f32 %v315_v2, %v134_v37 }
  0x25   :  { %244 = vst [vmem:[%s832_s3 + $0xf0] sm:$0xff] %v180_v42  ;;  %v200_v42 = vadd.f32 %v315_v2, %v132_v31  ;;  %v137_v46 = vmul.f32 %v310_v1, %v69_v38  ;;  %v203_v51 = vadd.f32 %v315_v2, %v135_v40 }
  0x26   :  { %245 = vst [vmem:[%s832_s3 + $0xf8] sm:$0xff] %v181_v45  ;;  %v201_v45 = vadd.f32 %v315_v2, %v133_v34  ;;  %v204_v54 = vadd.f32 %v315_v2, %v136_v43 }
  0x27   :  { %246 = vst [vmem:[%s832_s3 + $0x100] sm:$0xff] %v182_v49  ;;  %v138_v49 = vmul.f32 %v310_v1, %v70_v41  ;;  %v205_v58 = vadd.f32 %v315_v2, %v137_v46 }
  0x28   :  { %247 = vst [vmem:[%s832_s3 + $0x108] sm:$0xff] %v183_v52  ;;  %v139_v52 = vmul.f32 %v310_v1, %v71_v44 }
  0x29   :  { %248 = vst [vmem:[%s832_s3 + $0x110] sm:$0xff] %v184_v56  ;;  %v140_v56 = vmul.f32 %v310_v1, %v72_v47  ;;  %v206_v61 = vadd.f32 %v315_v2, %v138_v49 }
  0x2a   :  { %249 = vst [vmem:[%s832_s3 + $0x118] sm:$0xff] %v185_v59  ;;  %v141_v59 = vmul.f32 %v310_v1, %v73_v50  ;;  %v207_v63 = vadd.f32 %v315_v2, %v139_v52 }
  0x2b   :  { %250 = vst [vmem:[%s832_s3 + $0x120] sm:$0xff] %v186_v62  ;;  %v142_v62 = vmul.f32 %v310_v1, %v74_v53  ;;  %v212_v1 = vadd.f32 %v315_v2, %v144_v4 }
  0x2c   :  { %251 = vst [vmem:[%s832_s3 + $0x128] sm:$0xff] %v187_v3  ;;  %v208_v3 = vadd.f32 %v315_v2, %v140_v56  ;;  %v209_v5 = vadd.f32 %v315_v2, %v141_v59 }
  0x2d   :  { %252 = vst [vmem:[%s832_s3 + $0x130] sm:$0xff] %v188_v6  ;;  %v210_v6 = vadd.f32 %v315_v2, %v142_v62 }
  0x2e   :  { %253 = vst [vmem:[%s832_s3 + $0x138] sm:$0xff] %v189_v9 }
  0x2f   :  { %254 = vst [vmem:[%s832_s3 + $0x140] sm:$0xff] %v190_v12 }
  0x30   :  { %255 = vst [vmem:[%s832_s3 + $0x148] sm:$0xff] %v191_v15 }
  0x31   :  { %256 = vst [vmem:[%s832_s3 + $0x150] sm:$0xff] %v192_v18 }
  0x32   :  { %257 = vst [vmem:[%s832_s3 + $0x158] sm:$0xff] %v193_v21 }
  0x33   :  { %258 = vst [vmem:[%s832_s3 + $0x160] sm:$0xff] %v194_v24 }
  0x34   :  { %259 = vst [vmem:[%s832_s3 + $0x168] sm:$0xff] %v195_v27 }
  0x35   :  { %260 = vst [vmem:[%s832_s3 + $0x170] sm:$0xff] %v196_v30 }
  0x36   :  { %261 = vst [vmem:[%s832_s3 + $0x178] sm:$0xff] %v197_v33 }
  0x37   :  { %262 = vst [vmem:[%s832_s3 + $0x180] sm:$0xff] %v198_v36 }
  0x38   :  { %263 = vst [vmem:[%s832_s3 + $0x188] sm:$0xff] %v199_v39 }
  0x39   :  { %264 = vst [vmem:[%s832_s3 + $0x190] sm:$0xff] %v200_v42 }
  0x3a   :  { %265 = vst [vmem:[%s832_s3 + $0x198] sm:$0xff] %v201_v45 }
  0x3b   :  { %266 = vst [vmem:[%s832_s3 + $0x1a0] sm:$0xff] %v202_v48 }
  0x3c   :  { %267 = vst [vmem:[%s832_s3 + $0x1a8] sm:$0xff] %v203_v51 }
  0x3d   :  { %268 = vst [vmem:[%s832_s3 + $0x1b0] sm:$0xff] %v204_v54 }
  0x3e   :  { %269 = vst [vmem:[%s832_s3 + $0x1b8] sm:$0xff] %v205_v58 }
  0x3f   :  { %270 = vst [vmem:[%s832_s3 + $0x1c0] sm:$0xff] %v206_v61 }
  0x40   :  { %271 = vst [vmem:[%s832_s3 + $0x1c8] sm:$0xff] %v207_v63 }
  0x41   :  { %272 = vst [vmem:[%s832_s3 + $0x1d0] sm:$0xff] %v208_v3 }
  0x42   :  { %273 = vst [vmem:[%s832_s3 + $0x1d8] sm:$0xff] %v209_v5 }
  0x43   :  { %274 = vst [vmem:[%s832_s3 + $0x1e0] sm:$0xff] %v210_v6 }
  0x44   :  { %275 = vst [vmem:[%s832_s3 + $0x1e8] sm:$0xff] %v211_v7 }
  0x45   :  { %276 = vst [vmem:[%s832_s3 + $0x1f0] sm:$0xff] %v212_v1 }
  0x46   :  { %277 = vst [vmem:[%s832_s3 + $0x1f8] sm:$0xff] %v604_v55 }

// kernel: unet_generator_forward.58
= control target key start
LH: loop header
LB: loop body
LE: loop exit
PB: predicated region body
PF: predicated region fallthrough
CT: control target
= control target key end

     0   :  { %s926_s1 = inlined_call_operand.vmem [shape: bf16[256,128], index: 1, kind: input, shape index: {}]   ;;  %s927_s0 = inlined_call_operand.vmem [shape: bf16[128,256], index: 0, kind: input, shape index: {}]   ;;  %s928_s2 = inlined_call_operand.vmem [shape: f32[128,128], index: 2, kind: output, shape index: {0}]   ;;  %s929_s3 = inlined_call_operand.vmem [shape: f32[8,128], index: 3, kind: output, shape index: {1}]  }
   0x1   :  { %v662_v0 = vld [vmem:[%s926_s1 + $0x38] sm:$0xff]  ;;  %v661_v2 = vld [vmem:[%s926_s1 + $0x30] sm:$0xff]  ;;  %v660_v4 = vld [vmem:[%s926_s1 + $0x28] sm:$0xff] }
   0x2   :  { %v670_v1 = vld [vmem:[%s926_s1 + $0x78] sm:$0xff]  ;;  %273 = vmatpush.bf16.msra.mxu0 %v662_v0  ;;  %v669_v3 = vld [vmem:[%s926_s1 + $0x70] sm:$0xff]  ;;  %671 = vmatpush.bf16.msra.mxu2 %v662_v0  ;;  %v668_v5 = vld [vmem:[%s926_s1 + $0x68] sm:$0xff] }
   0x3   :  { %322 = vmatpush.bf16.msra.mxu1 %v670_v1  ;;  %679 = vmatpush.bf16.msra.mxu3 %v670_v1  ;;  %v659_v6 = vld [vmem:[%s926_s1 + $0x20] sm:$0xff]  ;;  %v658_v8 = vld [vmem:[%s926_s1 + $0x18] sm:$0xff]  ;;  %v657_v10 = vld [vmem:[%s926_s1 + $0x10] sm:$0xff] }
   0x4   :  { %v667_v7 = vld [vmem:[%s926_s1 + $0x60] sm:$0xff]  ;;  %v666_v9 = vld [vmem:[%s926_s1 + $0x58] sm:$0xff]  ;;  %v665_v11 = vld [vmem:[%s926_s1 + $0x50] sm:$0xff] }
   0x5   :  { %v656_v12 = vld [vmem:[%s926_s1 + $0x8] sm:$0xff]  ;;  %v655_v14 = vld [vmem:[%s926_s1] sm:$0xff]  ;;  %v521_v28 = vld [vmem:[%s927_s0 + $0x10] sm:$0xf] }
   0x6   :  { %274 = vmatpush.bf16.msra.mxu0 %v661_v2  ;;  %672 = vmatpush.bf16.msra.mxu2 %v661_v2  ;;  %v664_v13 = vld [vmem:[%s926_s1 + $0x48] sm:$0xff]  ;;  %v663_v15 = vld [vmem:[%s926_s1 + $0x40] sm:$0xff]  ;;  %v642_v29 = vld [vmem:[%s927_s0 + $0x14] sm:$0xf0] }
   0x7   :  { %323 = vmatpush.bf16.msra.mxu1 %v669_v3  ;;  %680 = vmatpush.bf16.msra.mxu3 %v669_v3  ;;  %v513_v16 = vld [vmem:[%s927_s0] sm:$0xf]  ;;  %v640_v17 = vld [vmem:[%s927_s0 + $0x4] sm:$0xf0]  ;;  %v639_v18 = vld [vmem:[%s927_s0 + $0x4] sm:$0xf]  ;;  %v522_v36 = vor.u32 %v642_v29, %v521_v28 }
   0x8   :  { %v515_v19 = vld [vmem:[%s927_s0 + $0x8] sm:$0xf0]  ;;  %v545_v20 = vld [vmem:[%s927_s0 + $0x40] sm:$0xf]  ;;  %v648_v21 = vld [vmem:[%s927_s0 + $0x44] sm:$0xf0]  ;;  %v514_v24 = vor.u32 %v640_v17, %v513_v16 }
   0x9   :  { %v647_v22 = vld [vmem:[%s927_s0 + $0x44] sm:$0xf]  ;;  %v547_v23 = vld [vmem:[%s927_s0 + $0x48] sm:$0xf0]  ;;  %v518_v25 = vor.u32 %v639_v18, %v515_v19  ;;  %v546_v26 = vor.u32 %v648_v21, %v545_v20  ;;  %v641_v30 = vld [vmem:[%s927_s0 + $0x14] sm:$0xf] }
   0xa   :  { %275 = vmatpush.bf16.msra.mxu0 %v660_v4  ;;  %673 = vmatpush.bf16.msra.mxu2 %v660_v4  ;;  %v550_v27 = vor.u32 %v647_v22, %v547_v23  ;;  %v523_v31 = vld [vmem:[%s927_s0 + $0x18] sm:$0xf0]  ;;  %v553_v32 = vld [vmem:[%s927_s0 + $0x50] sm:$0xf]  ;;  %v650_v33 = vld [vmem:[%s927_s0 + $0x54] sm:$0xf0] }
   0xb   :  { %324 = vmatpush.bf16.msra.mxu1 %v668_v5  ;;  %681 = vmatpush.bf16.msra.mxu3 %v668_v5  ;;  %v649_v34 = vld [vmem:[%s927_s0 + $0x54] sm:$0xf]  ;;  %v555_v35 = vld [vmem:[%s927_s0 + $0x58] sm:$0xf0]  ;;  %v526_v37 = vor.u32 %v641_v30, %v523_v31  ;;  %v554_v38 = vor.u32 %v650_v33, %v553_v32  ;;  %v529_v40 = vld [vmem:[%s927_s0 + $0x20] sm:$0xf] }
   0xc   :  { %v558_v39 = vor.u32 %v649_v34, %v555_v35  ;;  %v644_v41 = vld [vmem:[%s927_s0 + $0x24] sm:$0xf0]  ;;  %v643_v42 = vld [vmem:[%s927_s0 + $0x24] sm:$0xf]  ;;  %v531_v43 = vld [vmem:[%s927_s0 + $0x28] sm:$0xf0] }
   0xd   :  { %v561_v44 = vld [vmem:[%s927_s0 + $0x60] sm:$0xf]  ;;  %v652_v45 = vld [vmem:[%s927_s0 + $0x64] sm:$0xf0]  ;;  %v651_v46 = vld [vmem:[%s927_s0 + $0x64] sm:$0xf]  ;;  %v530_v48 = vor.u32 %v644_v41, %v529_v40  ;;  %v534_v49 = vor.u32 %v643_v42, %v531_v43 }
   0xe   :  { %276 = vmatpush.bf16.msra.mxu0 %v659_v6  ;;  %674 = vmatpush.bf16.msra.mxu2 %v659_v6  ;;  %v563_v47 = vld [vmem:[%s927_s0 + $0x68] sm:$0xf0]  ;;  %v562_v50 = vor.u32 %v652_v45, %v561_v44  ;;  %v537_v52 = vld [vmem:[%s927_s0 + $0x30] sm:$0xf]  ;;  %v646_v53 = vld [vmem:[%s927_s0 + $0x34] sm:$0xf0] }
   0xf   :  { %325 = vmatpush.bf16.msra.mxu1 %v667_v7  ;;  %682 = vmatpush.bf16.msra.mxu3 %v667_v7  ;;  %v566_v51 = vor.u32 %v651_v46, %v563_v47  ;;  %v645_v54 = vld [vmem:[%s927_s0 + $0x34] sm:$0xf]  ;;  %v539_v55 = vld [vmem:[%s927_s0 + $0x38] sm:$0xf0]  ;;  %v569_v56 = vld [vmem:[%s927_s0 + $0x70] sm:$0xf]  ;;  %v538_v60 = vor.u32 %v646_v53, %v537_v52 }
  0x10   :  { %v654_v57 = vld [vmem:[%s927_s0 + $0x74] sm:$0xf0]  ;;  %v653_v58 = vld [vmem:[%s927_s0 + $0x74] sm:$0xf]  ;;  %v571_v59 = vld [vmem:[%s927_s0 + $0x78] sm:$0xf0]  ;;  %v542_v61 = vor.u32 %v645_v54, %v539_v55 }
  0x11   :  { %v570_v62 = vor.u32 %v654_v57, %v569_v56  ;;  %v574_v63 = vor.u32 %v653_v58, %v571_v59 }
  0x12   :  { %277 = vmatpush.bf16.msra.mxu0 %v658_v8  ;;  %675 = vmatpush.bf16.msra.mxu2 %v658_v8 }
  0x13   :  { %326 = vmatpush.bf16.msra.mxu1 %v666_v9  ;;  %683 = vmatpush.bf16.msra.mxu3 %v666_v9 }
  0x16   :  { %278 = vmatpush.bf16.msra.mxu0 %v657_v10  ;;  %676 = vmatpush.bf16.msra.mxu2 %v657_v10 }
  0x17   :  { %327 = vmatpush.bf16.msra.mxu1 %v665_v11  ;;  %684 = vmatpush.bf16.msra.mxu3 %v665_v11 }
  0x1a   :  { %279 = vmatpush.bf16.msra.mxu0 %v656_v12  ;;  %677 = vmatpush.bf16.msra.mxu2 %v656_v12 }
  0x1b   :  { %328 = vmatpush.bf16.msra.mxu1 %v664_v13  ;;  %685 = vmatpush.bf16.msra.mxu3 %v664_v13 }
  0x1e   :  { %280 = vmatpush.bf16.msra.mxu0 %v655_v14  ;;  %678 = vmatpush.bf16.msra.mxu2 %v655_v14 }
  0x1f   :  { %329 = vmatpush.bf16.msra.mxu1 %v663_v15  ;;  %686 = vmatpush.bf16.msra.mxu3 %v663_v15 }
  0x21   :  { %281 = vmatmul.bf16.vlgmr.msra.gmra.mxu0 %v514_v24  ;;  %301 = vmatmul.bf16.vlgmr.msra.gmra.mxu2 %v546_v26 }
  0x22   :  { %330 = vmatmul.bf16.vlgmr.msra.gmra.mxu1 %v518_v25  ;;  %350 = vmatmul.bf16.vlgmr.msra.gmra.mxu3 %v550_v27 }
  0x31   :  { %286 = vmatmul.bf16.gmra.mxu0 %v522_v36  ;;  %306 = vmatmul.bf16.gmra.mxu2 %v554_v38 }
  0x32   :  { %335 = vmatmul.bf16.gmra.mxu1 %v526_v37  ;;  %355 = vmatmul.bf16.gmra.mxu3 %v558_v39 }
  0x41   :  { %291 = vmatmul.bf16.gmra.mxu0 %v530_v48  ;;  %311 = vmatmul.bf16.gmra.mxu2 %v562_v50 }
  0x42   :  { %340 = vmatmul.bf16.gmra.mxu1 %v534_v49  ;;  %360 = vmatmul.bf16.gmra.mxu3 %v566_v51 }
  0x51   :  { %296 = vmatmul.bf16.gmra.mxu0 %v538_v60  ;;  %316 = vmatmul.bf16.gmra.mxu2 %v570_v62 }
  0x52   :  { %345 = vmatmul.bf16.gmra.mxu1 %v542_v61  ;;  %365 = vmatmul.bf16.gmra.mxu3 %v574_v63 }
  0x9e   :  { %v282_v0 = vpop.f32.mrf.mxu0 }
  0x9f   :  { %v331_v1 = vpop.f32.mrf.mxu1 }
  0xa0   :  { %v332_v2 = vadd.f32 %v331_v1, %v282_v0 }
  0xa2   :  { %422 = vst [vmem:[%s928_s2] sm:$0xff] %v332_v2  ;;  %v459_v34 = vmul.f32 %v332_v2, %v332_v2 }
  0xa4   :  { %v302_v3 = vpop.f32.mrf.mxu2 }
  0xa5   :  { %v351_v4 = vpop.f32.mrf.mxu3 }
  0xa6   :  { %v284_v5 = vpop.f32.mrf.mxu0  ;;  %v854_v7 = vadd.f32 %v351_v4, %v302_v3 }
  0xa7   :  { %v333_v6 = vpop.f32.mrf.mxu1 }
  0xa8   :  { %v334_v8 = vadd.f32 %v333_v6, %v284_v5  ;;  %430 = vst [vmem:[%s928_s2 + $0x40] sm:$0xff] %v854_v7 }
  0xaa   :  { %423 = vst [vmem:[%s928_s2 + $0x8] sm:$0xff] %v334_v8  ;;  %v460_v33 = vmul.f32 %v334_v8, %v334_v8  ;;  %v438_v35 = vadd.f32 %v334_v8, %v332_v2  ;;  %v467_v2 = vmul.f32 %v854_v7, %v854_v7 }
  0xac   :  { %v304_v9 = vpop.f32.mrf.mxu2  ;;  %v475_v42 = vadd.f32 %v460_v33, %v459_v34 }
  0xad   :  { %v353_v10 = vpop.f32.mrf.mxu3 }
  0xae   :  { %v287_v11 = vpop.f32.mrf.mxu0  ;;  %v863_v13 = vadd.f32 %v353_v10, %v304_v9 }
  0xaf   :  { %v336_v12 = vpop.f32.mrf.mxu1 }
  0xb0   :  { %v337_v14 = vadd.f32 %v336_v12, %v287_v11  ;;  %431 = vst [vmem:[%s928_s2 + $0x48] sm:$0xff] %v863_v13  ;;  %v468_v5 = vmul.f32 %v863_v13, %v863_v13 }
  0xb2   :  { %424 = vst [vmem:[%s928_s2 + $0x10] sm:$0xff] %v337_v14  ;;  %v461_v36 = vmul.f32 %v337_v14, %v337_v14  ;;  %v439_v43 = vadd.f32 %v438_v35, %v337_v14  ;;  %v496_v35 = vlaneseq }
  0xb4   :  { %v307_v15 = vpop.f32.mrf.mxu2  ;;  %v476_v46 = vadd.f32 %v475_v42, %v461_v36 }
  0xb5   :  { %v356_v16 = vpop.f32.mrf.mxu3 }
  0xb6   :  { %v289_v17 = vpop.f32.mrf.mxu0  ;;  %v872_v19 = vadd.f32 %v356_v16, %v307_v15 }
  0xb7   :  { %v338_v18 = vpop.f32.mrf.mxu1 }
  0xb8   :  { %v339_v20 = vadd.f32 %v338_v18, %v289_v17  ;;  %432 = vst [vmem:[%s928_s2 + $0x50] sm:$0xff] %v872_v19  ;;  %v469_v12 = vmul.f32 %v872_v19, %v872_v19 }
  0xba   :  { %425 = vst [vmem:[%s928_s2 + $0x18] sm:$0xff] %v339_v20  ;;  %v462_v44 = vmul.f32 %v339_v20, %v339_v20  ;;  %v440_v47 = vadd.f32 %v439_v43, %v339_v20 }
  0xbc   :  { %v309_v21 = vpop.f32.mrf.mxu2  ;;  %v477_v49 = vadd.f32 %v476_v46, %v462_v44 }
  0xbd   :  { %v358_v22 = vpop.f32.mrf.mxu3 }
  0xbe   :  { %v292_v23 = vpop.f32.mrf.mxu0  ;;  %v881_v25 = vadd.f32 %v358_v22, %v309_v21 }
  0xbf   :  { %v341_v24 = vpop.f32.mrf.mxu1 }
  0xc0   :  { %v342_v26 = vadd.f32 %v341_v24, %v292_v23  ;;  %433 = vst [vmem:[%s928_s2 + $0x58] sm:$0xff] %v881_v25 }
  0xc2   :  { %426 = vst [vmem:[%s928_s2 + $0x20] sm:$0xff] %v342_v26  ;;  %v463_v48 = vmul.f32 %v342_v26, %v342_v26  ;;  %v441_v50 = vadd.f32 %v440_v47, %v342_v26 }
  0xc4   :  { %v312_v27 = vpop.f32.mrf.mxu2  ;;  %v478_v52 = vadd.f32 %v477_v49, %v463_v48 }
  0xc5   :  { %v361_v28 = vpop.f32.mrf.mxu3 }
  0xc6   :  { %v294_v29 = vpop.f32.mrf.mxu0  ;;  %v362_v31 = vadd.f32 %v361_v28, %v312_v27 }
  0xc7   :  { %v343_v30 = vpop.f32.mrf.mxu1 }
  0xc8   :  { %v344_v32 = vadd.f32 %v343_v30, %v294_v29  ;;  %434 = vst [vmem:[%s928_s2 + $0x60] sm:$0xff] %v362_v31  ;;  %v471_v17 = vmul.f32 %v362_v31, %v362_v31 }
  0xca   :  { %427 = vst [vmem:[%s928_s2 + $0x28] sm:$0xff] %v344_v32  ;;  %v464_v51 = vmul.f32 %v344_v32, %v344_v32  ;;  %v442_v53 = vadd.f32 %v441_v50, %v344_v32 }
  0xcc   :  { %v314_v37 = vpop.f32.mrf.mxu2  ;;  %v479_v60 = vadd.f32 %v478_v52, %v464_v51 }
  0xcd   :  { %v363_v38 = vpop.f32.mrf.mxu3 }
  0xce   :  { %v297_v39 = vpop.f32.mrf.mxu0  ;;  %v364_v41 = vadd.f32 %v363_v38, %v314_v37 }
  0xcf   :  { %v346_v40 = vpop.f32.mrf.mxu1 }
  0xd0   :  { %v347_v45 = vadd.f32 %v346_v40, %v297_v39  ;;  %435 = vst [vmem:[%s928_s2 + $0x68] sm:$0xff] %v364_v41  ;;  %v472_v21 = vmul.f32 %v364_v41, %v364_v41 }
  0xd2   :  { %428 = vst [vmem:[%s928_s2 + $0x30] sm:$0xff] %v347_v45  ;;  %v465_v54 = vmul.f32 %v347_v45, %v347_v45  ;;  %v443_v61 = vadd.f32 %v442_v53, %v347_v45 }
  0xd4   :  { %v317_v55 = vpop.f32.mrf.mxu2  ;;  %v480_v63 = vadd.f32 %v479_v60, %v465_v54 }
  0xd5   :  { %v366_v56 = vpop.f32.mrf.mxu3 }
  0xd6   :  { %v299_v57 = vpop.f32.mrf.mxu0  ;;  %v367_v59 = vadd.f32 %v366_v56, %v317_v55 }
  0xd7   :  { %v348_v58 = vpop.f32.mrf.mxu1 }
  0xd8   :  { %v349_v62 = vadd.f32 %v348_v58, %v299_v57  ;;  %436 = vst [vmem:[%s928_s2 + $0x70] sm:$0xff] %v367_v59  ;;  %v473_v26 = vmul.f32 %v367_v59, %v367_v59 }
  0xda   :  { %429 = vst [vmem:[%s928_s2 + $0x38] sm:$0xff] %v349_v62  ;;  %v444_v0 = vadd.f32 %v443_v61, %v349_v62  ;;  %v466_v1 = vmul.f32 %v349_v62, %v349_v62 }
  0xdc   :  { %v445_v3 = vadd.f32 %v444_v0, %v854_v7  ;;  %v481_v4 = vadd.f32 %v480_v63, %v466_v1  ;;  %v319_v9 = vpop.f32.mrf.mxu2  ;;  %v470_v7 = vmul.f32 %v881_v25, %v881_v25 }
  0xdd   :  { %v368_v10 = vpop.f32.mrf.mxu3 }
  0xde   :  { %v446_v6 = vadd.f32 %v445_v3, %v863_v13  ;;  %v482_v8 = vadd.f32 %v481_v4, %v467_v2  ;;  %v369_v11 = vadd.f32 %v368_v10, %v319_v9 }
  0xe0   :  { %v447_v14 = vadd.f32 %v446_v6, %v872_v19  ;;  %v483_v15 = vadd.f32 %v482_v8, %v468_v5  ;;  %437 = vst [vmem:[%s928_s2 + $0x78] sm:$0xff] %v369_v11  ;;  %v474_v29 = vmul.f32 %v369_v11, %v369_v11 }
  0xe2   :  { %v484_v16 = vadd.f32 %v483_v15, %v469_v12  ;;  %v448_v13 = vadd.f32 %v447_v14, %v881_v25 }
  0xe4   :  { %v449_v18 = vadd.f32 %v448_v13, %v362_v31  ;;  %v485_v20 = vadd.f32 %v484_v16, %v470_v7  ;;  %v497_v31 = vshrl.u32 %v496_v35, 7 }
  0xe6   :  { %v450_v22 = vadd.f32 %v449_v18, %v364_v41  ;;  %v486_v23 = vadd.f32 %v485_v20, %v471_v17  ;;  %vm499_vm0 = vcmp.eq.s32.totalorder %v497_v31, 1  ;;  %vm498_vm1 = vcmp.eq.s32.totalorder %v497_v31, 0 }
  0xe8   :  { %v451_v24 = vadd.f32 %v450_v22, %v367_v59  ;;  %v487_v19 = vadd.f32 %v486_v23, %v472_v21 }
  0xea   :  { %v488_v27 = vadd.f32 %v487_v19, %v473_v26  ;;  %v452_v28 = vadd.f32 %v451_v24, %v369_v11 }
  0xec   :  { %v453_v30 = vrot.slane %v452_v28, 4  ;;  %v489_v32 = vadd.f32 %v488_v27, %v474_v29 }
  0xee   :  { %v454_v33 = vadd.f32 %v453_v30, %v452_v28  ;;  %v490_v34 = vrot.slane %v489_v32, 4 }
  0xf0   :  { %v455_v36 = vrot.slane %v454_v33, 2  ;;  %v491_v37 = vadd.f32 %v490_v34, %v489_v32 }
  0xf2   :  { %v456_v25 = vadd.f32 %v455_v36, %v454_v33  ;;  %v492_v38 = vrot.slane %v491_v37, 2 }
  0xf4   :  { %v493_v39 = vadd.f32 %v492_v38, %v491_v37  ;;  %v457_v40 = vrot.slane %v456_v25, 1 }
  0xf6   :  { %v494_v41 = vrot.slane %v493_v39, 1  ;;  %v458_v43 = vadd.f32 %v457_v40, %v456_v25 }
  0xf8   :  { %v495_v42 = vadd.f32 %v494_v41, %v493_v39 }
  0xfa   :  { %v500_v44 = vsel %vm499_vm0, %v495_v42, 0.0 }
  0xfb   :  { %v501_v45 = vsel %vm498_vm1, %v458_v43, %v500_v44 }
  0xfc   :  { %502 = vst [vmem:[%s929_s3] sm:$0xff] %v501_v45 }

// kernel: unet_generator_forward.59
= control target key start
LH: loop header
LB: loop body
LE: loop exit
PB: predicated region body
PF: predicated region fallthrough
CT: control target
= control target key end

     0   :  { %s214_s0 = inlined_call_operand.vmem [shape: f32[128,128], index: 0, kind: input, shape index: {}]   ;;  %s215_s1 = inlined_call_operand.vmem [shape: f32[1,128], index: 1, kind: input, shape index: {}]   ;;  %s216_s2 = inlined_call_operand.vmem [shape: f32[1,128], index: 2, kind: input, shape index: {}]   ;;  %s217_s3 = inlined_call_operand.vmem [shape: f32[128,128], index: 3, kind: output, shape index: {}]  }
   0x1   :  { %v14_v0 = vld [vmem:[%s214_s0] sm:$0xff]  ;;  %v15_v3 = vld [vmem:[%s214_s0 + $0x8] sm:$0xff]  ;;  %v16_v6 = vld [vmem:[%s214_s0 + $0x10] sm:$0xff] }
   0x2   :  { %v90_v1 = vld [vmem:[%s215_s1] ss:$0 sm:$0xff]  ;;  %v17_v7 = vld [vmem:[%s214_s0 + $0x18] sm:$0xff]  ;;  %v19_v12 = vld [vmem:[%s214_s0 + $0x28] sm:$0xff] }
   0x3   :  { %v91_v2 = vld [vmem:[%s216_s2] ss:$0 sm:$0xff]  ;;  %v34_v4 = vmul.f32 %v90_v1, %v14_v0  ;;  %v35_v5 = vmul.f32 %v90_v1, %v15_v3  ;;  %v36_v9 = vmul.f32 %v90_v1, %v16_v6  ;;  %v37_v10 = vmul.f32 %v90_v1, %v17_v7  ;;  %v20_v13 = vld [vmem:[%s214_s0 + $0x30] sm:$0xff]  ;;  %v21_v14 = vld [vmem:[%s214_s0 + $0x38] sm:$0xff] }
   0x4   :  { %v18_v8 = vld [vmem:[%s214_s0 + $0x20] sm:$0xff]  ;;  %v39_v17 = vmul.f32 %v90_v1, %v19_v12  ;;  %v40_v18 = vmul.f32 %v90_v1, %v20_v13  ;;  %v23_v20 = vld [vmem:[%s214_s0 + $0x48] sm:$0xff]  ;;  %v41_v23 = vmul.f32 %v90_v1, %v21_v14  ;;  %v24_v24 = vld [vmem:[%s214_s0 + $0x50] sm:$0xff] }
   0x5   :  { %v38_v11 = vmul.f32 %v90_v1, %v18_v8  ;;  %v54_v15 = vadd.f32 %v91_v2, %v34_v4  ;;  %v55_v16 = vadd.f32 %v91_v2, %v35_v5  ;;  %v22_v19 = vld [vmem:[%s214_s0 + $0x40] sm:$0xff]  ;;  %v56_v21 = vadd.f32 %v91_v2, %v36_v9  ;;  %v25_v27 = vld [vmem:[%s214_s0 + $0x58] sm:$0xff]  ;;  %v27_v33 = vld [vmem:[%s214_s0 + $0x68] sm:$0xff] }
   0x6   :  { %v57_v22 = vadd.f32 %v91_v2, %v37_v10  ;;  %v42_v26 = vmul.f32 %v90_v1, %v22_v19  ;;  %v59_v28 = vadd.f32 %v91_v2, %v39_v17  ;;  %v43_v29 = vmul.f32 %v90_v1, %v23_v20  ;;  %v26_v30 = vld [vmem:[%s214_s0 + $0x60] sm:$0xff]  ;;  %v28_v36 = vld [vmem:[%s214_s0 + $0x70] sm:$0xff]  ;;  %v29_v39 = vld [vmem:[%s214_s0 + $0x78] sm:$0xff] }
   0x7   :  { %70 = vst [vmem:[%s217_s3] sm:$0xff] %v54_v15  ;;  %v58_v25 = vadd.f32 %v91_v2, %v38_v11  ;;  %v60_v31 = vadd.f32 %v91_v2, %v40_v18  ;;  %v44_v32 = vmul.f32 %v90_v1, %v24_v24  ;;  %v61_v34 = vadd.f32 %v91_v2, %v41_v23 }
   0x8   :  { %71 = vst [vmem:[%s217_s3 + $0x8] sm:$0xff] %v55_v16  ;;  %v45_v35 = vmul.f32 %v90_v1, %v25_v27  ;;  %v62_v37 = vadd.f32 %v91_v2, %v42_v26  ;;  %v46_v38 = vmul.f32 %v90_v1, %v26_v30  ;;  %v63_v40 = vadd.f32 %v91_v2, %v43_v29 }
   0x9   :  { %72 = vst [vmem:[%s217_s3 + $0x10] sm:$0xff] %v56_v21  ;;  %v47_v41 = vmul.f32 %v90_v1, %v27_v33  ;;  %v64_v42 = vadd.f32 %v91_v2, %v44_v32  ;;  %v48_v43 = vmul.f32 %v90_v1, %v28_v36  ;;  %v49_v45 = vmul.f32 %v90_v1, %v29_v39 }
   0xa   :  { %73 = vst [vmem:[%s217_s3 + $0x18] sm:$0xff] %v57_v22  ;;  %v65_v44 = vadd.f32 %v91_v2, %v45_v35  ;;  %v66_v46 = vadd.f32 %v91_v2, %v46_v38 }
   0xb   :  { %74 = vst [vmem:[%s217_s3 + $0x20] sm:$0xff] %v58_v25  ;;  %v67_v47 = vadd.f32 %v91_v2, %v47_v41  ;;  %v68_v48 = vadd.f32 %v91_v2, %v48_v43  ;;  %v69_v49 = vadd.f32 %v91_v2, %v49_v45 }
   0xc   :  { %75 = vst [vmem:[%s217_s3 + $0x28] sm:$0xff] %v59_v28 }
   0xd   :  { %76 = vst [vmem:[%s217_s3 + $0x30] sm:$0xff] %v60_v31 }
   0xe   :  { %77 = vst [vmem:[%s217_s3 + $0x38] sm:$0xff] %v61_v34 }
   0xf   :  { %78 = vst [vmem:[%s217_s3 + $0x40] sm:$0xff] %v62_v37 }
  0x10   :  { %79 = vst [vmem:[%s217_s3 + $0x48] sm:$0xff] %v63_v40 }
  0x11   :  { %80 = vst [vmem:[%s217_s3 + $0x50] sm:$0xff] %v64_v42 }
  0x12   :  { %81 = vst [vmem:[%s217_s3 + $0x58] sm:$0xff] %v65_v44 }
  0x13   :  { %82 = vst [vmem:[%s217_s3 + $0x60] sm:$0xff] %v66_v46 }
  0x14   :  { %83 = vst [vmem:[%s217_s3 + $0x68] sm:$0xff] %v67_v47 }
  0x15   :  { %84 = vst [vmem:[%s217_s3 + $0x70] sm:$0xff] %v68_v48 }
  0x16   :  { %85 = vst [vmem:[%s217_s3 + $0x78] sm:$0xff] %v69_v49 }

// kernel: unet_generator_forward.61
= control target key start
LH: loop header
LB: loop body
LE: loop exit
PB: predicated region body
PF: predicated region fallthrough
CT: control target
= control target key end

     0   :  { %s94_s0 = inlined_call_operand.vmem [shape: f32[32,128], index: 0, kind: input, shape index: {}]   ;;  %s95_s1 = inlined_call_operand.vmem [shape: f32[1,128], index: 1, kind: input, shape index: {}]   ;;  %s96_s2 = inlined_call_operand.vmem [shape: f32[1,128], index: 2, kind: input, shape index: {}]   ;;  %s97_s3 = inlined_call_operand.vmem [shape: f32[32,128], index: 3, kind: output, shape index: {}]  }
   0x1   :  { %v14_v0 = vld [vmem:[%s94_s0] sm:$0xff]  ;;  %v15_v3 = vld [vmem:[%s94_s0 + $0x8] sm:$0xff]  ;;  %v16_v6 = vld [vmem:[%s94_s0 + $0x10] sm:$0xff] }
   0x2   :  { %v42_v1 = vld [vmem:[%s95_s1] ss:$0 sm:$0xff]  ;;  %v17_v7 = vld [vmem:[%s94_s0 + $0x18] sm:$0xff] }
   0x3   :  { %v43_v2 = vld [vmem:[%s96_s2] ss:$0 sm:$0xff]  ;;  %v22_v4 = vmul.f32 %v42_v1, %v14_v0  ;;  %v23_v5 = vmul.f32 %v42_v1, %v15_v3  ;;  %v24_v8 = vmul.f32 %v42_v1, %v16_v6  ;;  %v25_v9 = vmul.f32 %v42_v1, %v17_v7 }
   0x5   :  { %v30_v10 = vadd.f32 %v43_v2, %v22_v4  ;;  %v31_v11 = vadd.f32 %v43_v2, %v23_v5  ;;  %v32_v12 = vadd.f32 %v43_v2, %v24_v8  ;;  %v33_v13 = vadd.f32 %v43_v2, %v25_v9 }
   0x7   :  { %34 = vst [vmem:[%s97_s3] sm:$0xff] %v30_v10 }
   0x8   :  { %35 = vst [vmem:[%s97_s3 + $0x8] sm:$0xff] %v31_v11 }
   0x9   :  { %36 = vst [vmem:[%s97_s3 + $0x10] sm:$0xff] %v32_v12 }
   0xa   :  { %37 = vst [vmem:[%s97_s3 + $0x18] sm:$0xff] %v33_v13 }

// kernel: unet_generator_forward.60
= control target key start
LH: loop header
LB: loop body
LE: loop exit
PB: predicated region body
PF: predicated region fallthrough
CT: control target
= control target key end

     0   :  { %s1518_s1 = inlined_call_operand.vmem [shape: bf16[512,128], index: 1, kind: input, shape index: {}]   ;;  %s1519_s0 = inlined_call_operand.vmem [shape: bf16[128,512], index: 0, kind: input, shape index: {}]   ;;  %s1520_s2 = inlined_call_operand.vmem [shape: f32[128,128], index: 2, kind: output, shape index: {0}]   ;;  %s1521_s3 = inlined_call_operand.vmem [shape: f32[8,128], index: 3, kind: output, shape index: {1}]  }
   0x1   :  { %v1128_v0 = vld [vmem:[%s1518_s1 + $0x38] sm:$0xff]  ;;  %v1127_v4 = vld [vmem:[%s1518_s1 + $0x30] sm:$0xff]  ;;  %v1126_v8 = vld [vmem:[%s1518_s1 + $0x28] sm:$0xff] }
   0x2   :  { %v1136_v1 = vld [vmem:[%s1518_s1 + $0x78] sm:$0xff]  ;;  %497 = vmatpush.bf16.msra.mxu0 %v1128_v0  ;;  %v1135_v5 = vld [vmem:[%s1518_s1 + $0x70] sm:$0xff]  ;;  %v1134_v9 = vld [vmem:[%s1518_s1 + $0x68] sm:$0xff] }
   0x3   :  { %v1144_v2 = vld [vmem:[%s1518_s1 + $0xb8] sm:$0xff]  ;;  %546 = vmatpush.bf16.msra.mxu1 %v1136_v1  ;;  %v1143_v6 = vld [vmem:[%s1518_s1 + $0xb0] sm:$0xff]  ;;  %v1142_v10 = vld [vmem:[%s1518_s1 + $0xa8] sm:$0xff] }
   0x4   :  { %v1152_v3 = vld [vmem:[%s1518_s1 + $0xf8] sm:$0xff]  ;;  %595 = vmatpush.bf16.msra.mxu2 %v1144_v2  ;;  %v1151_v7 = vld [vmem:[%s1518_s1 + $0xf0] sm:$0xff]  ;;  %v1150_v11 = vld [vmem:[%s1518_s1 + $0xe8] sm:$0xff] }
   0x5   :  { %644 = vmatpush.bf16.msra.mxu3 %v1152_v3  ;;  %v1125_v12 = vld [vmem:[%s1518_s1 + $0x20] sm:$0xff]  ;;  %v1124_v16 = vld [vmem:[%s1518_s1 + $0x18] sm:$0xff]  ;;  %v1123_v20 = vld [vmem:[%s1518_s1 + $0x10] sm:$0xff] }
   0x6   :  { %498 = vmatpush.bf16.msra.mxu0 %v1127_v4  ;;  %v1133_v13 = vld [vmem:[%s1518_s1 + $0x60] sm:$0xff]  ;;  %v1132_v17 = vld [vmem:[%s1518_s1 + $0x58] sm:$0xff]  ;;  %v1131_v21 = vld [vmem:[%s1518_s1 + $0x50] sm:$0xff] }
   0x7   :  { %547 = vmatpush.bf16.msra.mxu1 %v1135_v5  ;;  %v1141_v14 = vld [vmem:[%s1518_s1 + $0xa0] sm:$0xff]  ;;  %v1140_v18 = vld [vmem:[%s1518_s1 + $0x98] sm:$0xff]  ;;  %v1139_v22 = vld [vmem:[%s1518_s1 + $0x90] sm:$0xff] }
   0x8   :  { %596 = vmatpush.bf16.msra.mxu2 %v1143_v6  ;;  %v1149_v15 = vld [vmem:[%s1518_s1 + $0xe0] sm:$0xff]  ;;  %v1148_v19 = vld [vmem:[%s1518_s1 + $0xd8] sm:$0xff]  ;;  %v1147_v23 = vld [vmem:[%s1518_s1 + $0xd0] sm:$0xff] }
   0x9   :  { %645 = vmatpush.bf16.msra.mxu3 %v1151_v7  ;;  %v1122_v24 = vld [vmem:[%s1518_s1 + $0x8] sm:$0xff]  ;;  %v1121_v28 = vld [vmem:[%s1518_s1] sm:$0xff]  ;;  %v1091_v33 = vld [vmem:[%s1519_s0 + $0xc] sm:$0xf0] }
   0xa   :  { %499 = vmatpush.bf16.msra.mxu0 %v1126_v8  ;;  %v1130_v25 = vld [vmem:[%s1518_s1 + $0x48] sm:$0xff]  ;;  %v1129_v29 = vld [vmem:[%s1518_s1 + $0x40] sm:$0xff]  ;;  %v837_v35 = vld [vmem:[%s1519_s0 + $0x10] sm:$0xf0] }
   0xb   :  { %548 = vmatpush.bf16.msra.mxu1 %v1134_v9  ;;  %v1138_v26 = vld [vmem:[%s1518_s1 + $0x88] sm:$0xff]  ;;  %v1137_v30 = vld [vmem:[%s1518_s1 + $0x80] sm:$0xff]  ;;  %v1092_v37 = vld [vmem:[%s1519_s0 + $0x14] sm:$0xf0] }
   0xc   :  { %597 = vmatpush.bf16.msra.mxu2 %v1142_v10  ;;  %v1146_v27 = vld [vmem:[%s1518_s1 + $0xc8] sm:$0xff]  ;;  %v1145_v31 = vld [vmem:[%s1518_s1 + $0xc0] sm:$0xff]  ;;  %v845_v39 = vld [vmem:[%s1519_s0 + $0x18] sm:$0xf0] }
   0xd   :  { %646 = vmatpush.bf16.msra.mxu3 %v1150_v11  ;;  %v835_v32 = vld [vmem:[%s1519_s0] sm:$0xf]  ;;  %v1089_v34 = vld [vmem:[%s1519_s0 + $0x4] sm:$0xf]  ;;  %v843_v36 = vld [vmem:[%s1519_s0 + $0x8] sm:$0xf] }
   0xe   :  { %500 = vmatpush.bf16.msra.mxu0 %v1125_v12  ;;  %v1090_v38 = vld [vmem:[%s1519_s0 + $0xc] sm:$0xf]  ;;  %v836_v40 = vor.u32 %v1091_v33, %v835_v32  ;;  %v840_v41 = vor.u32 %v1089_v34, %v837_v35  ;;  %v844_v42 = vor.u32 %v1092_v37, %v843_v36  ;;  %v851_v44 = vld [vmem:[%s1519_s0 + $0x20] sm:$0xf]  ;;  %v1095_v45 = vld [vmem:[%s1519_s0 + $0x2c] sm:$0xf0] }
   0xf   :  { %549 = vmatpush.bf16.msra.mxu1 %v1133_v13  ;;  %v848_v43 = vor.u32 %v1090_v38, %v845_v39  ;;  %v1093_v46 = vld [vmem:[%s1519_s0 + $0x24] sm:$0xf]  ;;  %v853_v47 = vld [vmem:[%s1519_s0 + $0x30] sm:$0xf0]  ;;  %v859_v48 = vld [vmem:[%s1519_s0 + $0x28] sm:$0xf]  ;;  %v852_v52 = vor.u32 %v1095_v45, %v851_v44 }
  0x10   :  { %598 = vmatpush.bf16.msra.mxu2 %v1141_v14  ;;  %v1096_v49 = vld [vmem:[%s1519_s0 + $0x34] sm:$0xf0]  ;;  %v1094_v50 = vld [vmem:[%s1519_s0 + $0x2c] sm:$0xf]  ;;  %v861_v51 = vld [vmem:[%s1519_s0 + $0x38] sm:$0xf0]  ;;  %v856_v53 = vor.u32 %v1093_v46, %v853_v47 }
  0x11   :  { %647 = vmatpush.bf16.msra.mxu3 %v1149_v15  ;;  %v860_v54 = vor.u32 %v1096_v49, %v859_v48  ;;  %v864_v55 = vor.u32 %v1094_v50, %v861_v51  ;;  %v867_v56 = vld [vmem:[%s1519_s0 + $0x40] sm:$0xf]  ;;  %v1099_v57 = vld [vmem:[%s1519_s0 + $0x4c] sm:$0xf0]  ;;  %v1097_v58 = vld [vmem:[%s1519_s0 + $0x44] sm:$0xf] }
  0x12   :  { %501 = vmatpush.bf16.msra.mxu0 %v1124_v16  ;;  %v869_v59 = vld [vmem:[%s1519_s0 + $0x50] sm:$0xf0]  ;;  %v875_v60 = vld [vmem:[%s1519_s0 + $0x48] sm:$0xf]  ;;  %v1100_v61 = vld [vmem:[%s1519_s0 + $0x54] sm:$0xf0]  ;;  %v868_v0 = vor.u32 %v1099_v57, %v867_v56 }
  0x13   :  { %550 = vmatpush.bf16.msra.mxu1 %v1132_v17  ;;  %v1098_v62 = vld [vmem:[%s1519_s0 + $0x4c] sm:$0xf]  ;;  %v877_v63 = vld [vmem:[%s1519_s0 + $0x58] sm:$0xf0]  ;;  %v872_v1 = vor.u32 %v1097_v58, %v869_v59  ;;  %v876_v2 = vor.u32 %v1100_v61, %v875_v60  ;;  %v883_v4 = vld [vmem:[%s1519_s0 + $0x60] sm:$0xf] }
  0x14   :  { %599 = vmatpush.bf16.msra.mxu2 %v1140_v18  ;;  %v880_v3 = vor.u32 %v1098_v62, %v877_v63  ;;  %v1103_v5 = vld [vmem:[%s1519_s0 + $0x6c] sm:$0xf0]  ;;  %v1101_v6 = vld [vmem:[%s1519_s0 + $0x64] sm:$0xf]  ;;  %v885_v7 = vld [vmem:[%s1519_s0 + $0x70] sm:$0xf0] }
  0x15   :  { %648 = vmatpush.bf16.msra.mxu3 %v1148_v19  ;;  %v891_v8 = vld [vmem:[%s1519_s0 + $0x68] sm:$0xf]  ;;  %v1104_v9 = vld [vmem:[%s1519_s0 + $0x74] sm:$0xf0]  ;;  %v1102_v10 = vld [vmem:[%s1519_s0 + $0x6c] sm:$0xf]  ;;  %v884_v12 = vor.u32 %v1103_v5, %v883_v4  ;;  %v888_v13 = vor.u32 %v1101_v6, %v885_v7 }
  0x16   :  { %502 = vmatpush.bf16.msra.mxu0 %v1123_v20  ;;  %v893_v11 = vld [vmem:[%s1519_s0 + $0x78] sm:$0xf0]  ;;  %v892_v14 = vor.u32 %v1104_v9, %v891_v8  ;;  %v899_v16 = vld [vmem:[%s1519_s0 + $0x80] sm:$0xf]  ;;  %v1107_v17 = vld [vmem:[%s1519_s0 + $0x8c] sm:$0xf0] }
  0x17   :  { %551 = vmatpush.bf16.msra.mxu1 %v1131_v21  ;;  %v896_v15 = vor.u32 %v1102_v10, %v893_v11  ;;  %v1105_v18 = vld [vmem:[%s1519_s0 + $0x84] sm:$0xf]  ;;  %v901_v19 = vld [vmem:[%s1519_s0 + $0x90] sm:$0xf0]  ;;  %v907_v20 = vld [vmem:[%s1519_s0 + $0x88] sm:$0xf] }
  0x18   :  { %600 = vmatpush.bf16.msra.mxu2 %v1139_v22  ;;  %v1108_v21 = vld [vmem:[%s1519_s0 + $0x94] sm:$0xf0]  ;;  %v1106_v22 = vld [vmem:[%s1519_s0 + $0x8c] sm:$0xf]  ;;  %v923_v32 = vld [vmem:[%s1519_s0 + $0xa8] sm:$0xf] }
  0x19   :  { %649 = vmatpush.bf16.msra.mxu3 %v1147_v23  ;;  %v909_v23 = vld [vmem:[%s1519_s0 + $0x98] sm:$0xf0]  ;;  %v1112_v33 = vld [vmem:[%s1519_s0 + $0xb4] sm:$0xf0]  ;;  %v1110_v34 = vld [vmem:[%s1519_s0 + $0xac] sm:$0xf] }
  0x1a   :  { %503 = vmatpush.bf16.msra.mxu0 %v1122_v24  ;;  %v900_v24 = vor.u32 %v1107_v17, %v899_v16  ;;  %v925_v35 = vld [vmem:[%s1519_s0 + $0xb8] sm:$0xf0]  ;;  %v924_v38 = vor.u32 %v1112_v33, %v923_v32  ;;  %v939_v44 = vld [vmem:[%s1519_s0 + $0xc8] sm:$0xf]  ;;  %v1116_v45 = vld [vmem:[%s1519_s0 + $0xd4] sm:$0xf0] }
  0x1b   :  { %552 = vmatpush.bf16.msra.mxu1 %v1130_v25  ;;  %v904_v25 = vor.u32 %v1105_v18, %v901_v19  ;;  %v928_v39 = vor.u32 %v1110_v34, %v925_v35  ;;  %v1114_v46 = vld [vmem:[%s1519_s0 + $0xcc] sm:$0xf]  ;;  %v941_v47 = vld [vmem:[%s1519_s0 + $0xd8] sm:$0xf0]  ;;  %v940_v50 = vor.u32 %v1116_v45, %v939_v44  ;;  %v955_v56 = vld [vmem:[%s1519_s0 + $0xe8] sm:$0xf] }
  0x1c   :  { %601 = vmatpush.bf16.msra.mxu2 %v1138_v26  ;;  %v908_v26 = vor.u32 %v1108_v21, %v907_v20  ;;  %v944_v51 = vor.u32 %v1114_v46, %v941_v47  ;;  %v1120_v57 = vld [vmem:[%s1519_s0 + $0xf4] sm:$0xf0]  ;;  %v1118_v58 = vld [vmem:[%s1519_s0 + $0xec] sm:$0xf]  ;;  %v957_v59 = vld [vmem:[%s1519_s0 + $0xf8] sm:$0xf0] }
  0x1d   :  { %650 = vmatpush.bf16.msra.mxu3 %v1146_v27  ;;  %v912_v27 = vor.u32 %v1106_v22, %v909_v23  ;;  %v956_v62 = vor.u32 %v1120_v57, %v955_v56  ;;  %v960_v63 = vor.u32 %v1118_v58, %v957_v59 }
  0x1e   :  { %504 = vmatpush.bf16.msra.mxu0 %v1121_v28  ;;  %v915_v28 = vld [vmem:[%s1519_s0 + $0xa0] sm:$0xf] }
  0x1f   :  { %553 = vmatpush.bf16.msra.mxu1 %v1129_v29  ;;  %v1111_v29 = vld [vmem:[%s1519_s0 + $0xac] sm:$0xf0] }
  0x20   :  { %602 = vmatpush.bf16.msra.mxu2 %v1137_v30  ;;  %v1109_v30 = vld [vmem:[%s1519_s0 + $0xa4] sm:$0xf]  ;;  %v916_v36 = vor.u32 %v1111_v29, %v915_v28 }
  0x21   :  { %651 = vmatpush.bf16.msra.mxu3 %v1145_v31  ;;  %505 = vmatmul.bf16.vlgmr.msra.gmra.mxu0 %v836_v40  ;;  %v917_v31 = vld [vmem:[%s1519_s0 + $0xb0] sm:$0xf0]  ;;  %v931_v40 = vld [vmem:[%s1519_s0 + $0xc0] sm:$0xf] }
  0x22   :  { %554 = vmatmul.bf16.vlgmr.msra.gmra.mxu1 %v840_v41  ;;  %v920_v37 = vor.u32 %v1109_v30, %v917_v31  ;;  %v1115_v41 = vld [vmem:[%s1519_s0 + $0xcc] sm:$0xf0] }
  0x23   :  { %603 = vmatmul.bf16.vlgmr.msra.gmra.mxu2 %v844_v42  ;;  %v1113_v42 = vld [vmem:[%s1519_s0 + $0xc4] sm:$0xf]  ;;  %v932_v48 = vor.u32 %v1115_v41, %v931_v40 }
  0x24   :  { %652 = vmatmul.bf16.vlgmr.msra.gmra.mxu3 %v848_v43  ;;  %v933_v43 = vld [vmem:[%s1519_s0 + $0xd0] sm:$0xf0] }
  0x25   :  { %v936_v49 = vor.u32 %v1113_v42, %v933_v43 }
  0x31   :  { %510 = vmatmul.bf16.gmra.mxu0 %v852_v52  ;;  %v947_v52 = vld [vmem:[%s1519_s0 + $0xe0] sm:$0xf] }
  0x32   :  { %559 = vmatmul.bf16.gmra.mxu1 %v856_v53  ;;  %v1119_v53 = vld [vmem:[%s1519_s0 + $0xec] sm:$0xf0] }
  0x33   :  { %608 = vmatmul.bf16.gmra.mxu2 %v860_v54  ;;  %v1117_v54 = vld [vmem:[%s1519_s0 + $0xe4] sm:$0xf]  ;;  %v948_v60 = vor.u32 %v1119_v53, %v947_v52 }
  0x34   :  { %657 = vmatmul.bf16.gmra.mxu3 %v864_v55  ;;  %v949_v55 = vld [vmem:[%s1519_s0 + $0xf0] sm:$0xf0] }
  0x35   :  { %v952_v61 = vor.u32 %v1117_v54, %v949_v55 }
  0x41   :  { %515 = vmatmul.bf16.gmra.mxu0 %v868_v0 }
  0x42   :  { %564 = vmatmul.bf16.gmra.mxu1 %v872_v1 }
  0x43   :  { %613 = vmatmul.bf16.gmra.mxu2 %v876_v2 }
  0x44   :  { %662 = vmatmul.bf16.gmra.mxu3 %v880_v3 }
  0x51   :  { %520 = vmatmul.bf16.gmra.mxu0 %v884_v12 }
  0x52   :  { %569 = vmatmul.bf16.gmra.mxu1 %v888_v13 }
  0x53   :  { %618 = vmatmul.bf16.gmra.mxu2 %v892_v14 }
  0x54   :  { %667 = vmatmul.bf16.gmra.mxu3 %v896_v15 }
  0x61   :  { %525 = vmatmul.bf16.gmra.mxu0 %v900_v24 }
  0x62   :  { %574 = vmatmul.bf16.gmra.mxu1 %v904_v25 }
  0x63   :  { %623 = vmatmul.bf16.gmra.mxu2 %v908_v26 }
  0x64   :  { %672 = vmatmul.bf16.gmra.mxu3 %v912_v27 }
  0x71   :  { %530 = vmatmul.bf16.gmra.mxu0 %v916_v36 }
  0x72   :  { %579 = vmatmul.bf16.gmra.mxu1 %v920_v37 }
  0x73   :  { %628 = vmatmul.bf16.gmra.mxu2 %v924_v38 }
  0x74   :  { %677 = vmatmul.bf16.gmra.mxu3 %v928_v39 }
  0x81   :  { %535 = vmatmul.bf16.gmra.mxu0 %v932_v48 }
  0x82   :  { %584 = vmatmul.bf16.gmra.mxu1 %v936_v49 }
  0x83   :  { %633 = vmatmul.bf16.gmra.mxu2 %v940_v50 }
  0x84   :  { %682 = vmatmul.bf16.gmra.mxu3 %v944_v51 }
  0x91   :  { %540 = vmatmul.bf16.gmra.mxu0 %v948_v60 }
  0x92   :  { %589 = vmatmul.bf16.gmra.mxu1 %v952_v61 }
  0x93   :  { %638 = vmatmul.bf16.gmra.mxu2 %v956_v62 }
  0x94   :  { %687 = vmatmul.bf16.gmra.mxu3 %v960_v63 }
  0x9e   :  { %v506_v0 = vpop.f32.mrf.mxu0 }
  0x9f   :  { %v555_v1 = vpop.f32.mrf.mxu1 }
  0xa0   :  { %v556_v2 = vadd.f32 %v555_v1, %v506_v0 }
  0xa6   :  { %v604_v3 = vpop.f32.mrf.mxu2  ;;  %v508_v6 = vpop.f32.mrf.mxu0 }
  0xa7   :  { %v653_v4 = vpop.f32.mrf.mxu3  ;;  %v605_v5 = vadd.f32 %v604_v3, %v556_v2  ;;  %v557_v7 = vpop.f32.mrf.mxu1 }
  0xa8   :  { %v558_v9 = vadd.f32 %v557_v7, %v508_v6 }
  0xa9   :  { %v654_v8 = vadd.f32 %v653_v4, %v605_v5 }
  0xab   :  { %744 = vst [vmem:[%s1520_s2] sm:$0xff] %v654_v8  ;;  %v781_v16 = vmul.f32 %v654_v8, %v654_v8 }
  0xae   :  { %v606_v10 = vpop.f32.mrf.mxu2  ;;  %v511_v13 = vpop.f32.mrf.mxu0 }
  0xaf   :  { %v655_v11 = vpop.f32.mrf.mxu3  ;;  %v607_v12 = vadd.f32 %v606_v10, %v558_v9  ;;  %v560_v14 = vpop.f32.mrf.mxu1 }
  0xb0   :  { %v561_v19 = vadd.f32 %v560_v14, %v511_v13 }
  0xb1   :  { %v656_v15 = vadd.f32 %v655_v11, %v607_v12 }
  0xb3   :  { %745 = vst [vmem:[%s1520_s2 + $0x8] sm:$0xff] %v656_v15  ;;  %v760_v17 = vadd.f32 %v656_v15, %v654_v8  ;;  %v782_v18 = vmul.f32 %v656_v15, %v656_v15 }
  0xb5   :  { %v797_v20 = vadd.f32 %v782_v18, %v781_v16 }
  0xb6   :  { %v609_v21 = vpop.f32.mrf.mxu2  ;;  %v513_v24 = vpop.f32.mrf.mxu0 }
  0xb7   :  { %v658_v22 = vpop.f32.mrf.mxu3  ;;  %v610_v23 = vadd.f32 %v609_v21, %v561_v19  ;;  %v562_v25 = vpop.f32.mrf.mxu1 }
  0xb8   :  { %v563_v30 = vadd.f32 %v562_v25, %v513_v24 }
  0xb9   :  { %v659_v26 = vadd.f32 %v658_v22, %v610_v23 }
  0xbb   :  { %746 = vst [vmem:[%s1520_s2 + $0x10] sm:$0xff] %v659_v26  ;;  %v761_v27 = vadd.f32 %v760_v17, %v659_v26  ;;  %v783_v28 = vmul.f32 %v659_v26, %v659_v26 }
  0xbd   :  { %v798_v29 = vadd.f32 %v797_v20, %v783_v28 }
  0xbe   :  { %v611_v31 = vpop.f32.mrf.mxu2  ;;  %v516_v34 = vpop.f32.mrf.mxu0 }
  0xbf   :  { %v660_v32 = vpop.f32.mrf.mxu3  ;;  %v612_v33 = vadd.f32 %v611_v31, %v563_v30  ;;  %v565_v35 = vpop.f32.mrf.mxu1 }
  0xc0   :  { %v566_v39 = vadd.f32 %v565_v35, %v516_v34 }
  0xc1   :  { %v661_v36 = vadd.f32 %v660_v32, %v612_v33 }
  0xc3   :  { %747 = vst [vmem:[%s1520_s2 + $0x18] sm:$0xff] %v661_v36  ;;  %v762_v37 = vadd.f32 %v761_v27, %v661_v36  ;;  %v784_v38 = vmul.f32 %v661_v36, %v661_v36 }
  0xc5   :  { %v799_v40 = vadd.f32 %v798_v29, %v784_v38 }
  0xc6   :  { %v614_v41 = vpop.f32.mrf.mxu2  ;;  %v518_v44 = vpop.f32.mrf.mxu0 }
  0xc7   :  { %v663_v42 = vpop.f32.mrf.mxu3  ;;  %v615_v43 = vadd.f32 %v614_v41, %v566_v39  ;;  %v567_v45 = vpop.f32.mrf.mxu1 }
  0xc8   :  { %v568_v50 = vadd.f32 %v567_v45, %v518_v44 }
  0xc9   :  { %v664_v46 = vadd.f32 %v663_v42, %v615_v43 }
  0xcb   :  { %748 = vst [vmem:[%s1520_s2 + $0x20] sm:$0xff] %v664_v46  ;;  %v763_v47 = vadd.f32 %v762_v37, %v664_v46  ;;  %v785_v48 = vmul.f32 %v664_v46, %v664_v46 }
  0xcd   :  { %v1476_v49 = vadd.f32 %v799_v40, %v785_v48 }
  0xce   :  { %v616_v51 = vpop.f32.mrf.mxu2  ;;  %v521_v54 = vpop.f32.mrf.mxu0 }
  0xcf   :  { %v665_v52 = vpop.f32.mrf.mxu3  ;;  %v617_v53 = vadd.f32 %v616_v51, %v568_v50  ;;  %v570_v55 = vpop.f32.mrf.mxu1 }
  0xd0   :  { %v571_v58 = vadd.f32 %v570_v55, %v521_v54 }
  0xd1   :  { %v666_v56 = vadd.f32 %v665_v52, %v617_v53 }
  0xd3   :  { %749 = vst [vmem:[%s1520_s2 + $0x28] sm:$0xff] %v666_v56  ;;  %v1481_v57 = vadd.f32 %v763_v47, %v666_v56  ;;  %v786_v43 = vmul.f32 %v666_v56, %v666_v56 }
  0xd5   :  { %v801_v52 = vadd.f32 %v1476_v49, %v786_v43 }
  0xd6   :  { %v619_v59 = vpop.f32.mrf.mxu2  ;;  %v523_v62 = vpop.f32.mrf.mxu0 }
  0xd7   :  { %v668_v60 = vpop.f32.mrf.mxu3  ;;  %v620_v61 = vadd.f32 %v619_v59, %v571_v58  ;;  %v572_v63 = vpop.f32.mrf.mxu1 }
  0xd8   :  { %v573_v1 = vadd.f32 %v572_v63, %v523_v62 }
  0xd9   :  { %v669_v0 = vadd.f32 %v668_v60, %v620_v61 }
  0xdb   :  { %750 = vst [vmem:[%s1520_s2 + $0x30] sm:$0xff] %v669_v0  ;;  %v787_v47 = vmul.f32 %v669_v0, %v669_v0  ;;  %v765_v53 = vadd.f32 %v1481_v57, %v669_v0 }
  0xdd   :  { %v802_v58 = vadd.f32 %v801_v52, %v787_v47 }
  0xde   :  { %v621_v2 = vpop.f32.mrf.mxu2  ;;  %v526_v5 = vpop.f32.mrf.mxu0 }
  0xdf   :  { %v670_v3 = vpop.f32.mrf.mxu3  ;;  %v622_v4 = vadd.f32 %v621_v2, %v573_v1  ;;  %v575_v6 = vpop.f32.mrf.mxu1 }
  0xe0   :  { %v576_v8 = vadd.f32 %v575_v6, %v526_v5 }
  0xe1   :  { %v671_v7 = vadd.f32 %v670_v3, %v622_v4 }
  0xe3   :  { %751 = vst [vmem:[%s1520_s2 + $0x38] sm:$0xff] %v671_v7  ;;  %v788_v54 = vmul.f32 %v671_v7, %v671_v7  ;;  %v766_v59 = vadd.f32 %v765_v53, %v671_v7 }
  0xe5   :  { %v803_v61 = vadd.f32 %v802_v58, %v788_v54 }
  0xe6   :  { %v624_v9 = vpop.f32.mrf.mxu2  ;;  %v528_v12 = vpop.f32.mrf.mxu0 }
  0xe7   :  { %v673_v10 = vpop.f32.mrf.mxu3  ;;  %v625_v11 = vadd.f32 %v624_v9, %v576_v8  ;;  %v577_v13 = vpop.f32.mrf.mxu1 }
  0xe8   :  { %v578_v15 = vadd.f32 %v577_v13, %v528_v12 }
  0xe9   :  { %v674_v14 = vadd.f32 %v673_v10, %v625_v11 }
  0xeb   :  { %752 = vst [vmem:[%s1520_s2 + $0x40] sm:$0xff] %v674_v14  ;;  %v789_v60 = vmul.f32 %v674_v14, %v674_v14  ;;  %v767_v62 = vadd.f32 %v766_v59, %v674_v14 }
  0xed   :  { %v804_v3 = vadd.f32 %v803_v61, %v789_v60 }
  0xee   :  { %v626_v16 = vpop.f32.mrf.mxu2  ;;  %v531_v19 = vpop.f32.mrf.mxu0 }
  0xef   :  { %v675_v17 = vpop.f32.mrf.mxu3  ;;  %v627_v18 = vadd.f32 %v626_v16, %v578_v15  ;;  %v580_v20 = vpop.f32.mrf.mxu1 }
  0xf0   :  { %v581_v22 = vadd.f32 %v580_v20, %v531_v19 }
  0xf1   :  { %v676_v21 = vadd.f32 %v675_v17, %v627_v18 }
  0xf3   :  { %753 = vst [vmem:[%s1520_s2 + $0x48] sm:$0xff] %v676_v21  ;;  %v790_v63 = vmul.f32 %v676_v21, %v676_v21  ;;  %v768_v4 = vadd.f32 %v767_v62, %v676_v21 }
  0xf5   :  { %v805_v57 = vadd.f32 %v804_v3, %v790_v63 }
  0xf6   :  { %v629_v23 = vpop.f32.mrf.mxu2  ;;  %v533_v26 = vpop.f32.mrf.mxu0 }
  0xf7   :  { %v678_v24 = vpop.f32.mrf.mxu3  ;;  %v630_v25 = vadd.f32 %v629_v23, %v581_v22  ;;  %v582_v27 = vpop.f32.mrf.mxu1 }
  0xf8   :  { %v583_v29 = vadd.f32 %v582_v27, %v533_v26 }
  0xf9   :  { %v679_v28 = vadd.f32 %v678_v24, %v630_v25 }
  0xfb   :  { %754 = vst [vmem:[%s1520_s2 + $0x50] sm:$0xff] %v679_v28  ;;  %v791_v49 = vmul.f32 %v679_v28, %v679_v28  ;;  %v769_v0 = vadd.f32 %v768_v4, %v679_v28 }
  0xfd   :  { %v806_v10 = vadd.f32 %v805_v57, %v791_v49 }
  0xfe   :  { %v631_v30 = vpop.f32.mrf.mxu2  ;;  %v536_v33 = vpop.f32.mrf.mxu0 }
  0xff   :  { %v680_v31 = vpop.f32.mrf.mxu3  ;;  %v632_v32 = vadd.f32 %v631_v30, %v583_v29  ;;  %v585_v34 = vpop.f32.mrf.mxu1 }
 0x100   :  { %v586_v36 = vadd.f32 %v585_v34, %v536_v33  ;;  %v818_v33 = vlaneseq }
 0x101   :  { %v681_v35 = vadd.f32 %v680_v31, %v632_v32 }
 0x103   :  { %755 = vst [vmem:[%s1520_s2 + $0x58] sm:$0xff] %v681_v35  ;;  %v792_v6 = vmul.f32 %v681_v35, %v681_v35  ;;  %v770_v11 = vadd.f32 %v769_v0, %v681_v35 }
 0x105   :  { %v807_v13 = vadd.f32 %v806_v10, %v792_v6 }
 0x106   :  { %v634_v37 = vpop.f32.mrf.mxu2  ;;  %v538_v40 = vpop.f32.mrf.mxu0 }
 0x107   :  { %v683_v38 = vpop.f32.mrf.mxu3  ;;  %v635_v39 = vadd.f32 %v634_v37, %v586_v36  ;;  %v587_v41 = vpop.f32.mrf.mxu1 }
 0x108   :  { %v588_v44 = vadd.f32 %v587_v41, %v538_v40 }
 0x109   :  { %v684_v42 = vadd.f32 %v683_v38, %v635_v39  ;;  %v819_v38 = vshrl.u32 %v818_v33, 7 }
 0x10b   :  { %756 = vst [vmem:[%s1520_s2 + $0x60] sm:$0xff] %v684_v42  ;;  %v793_v12 = vmul.f32 %v684_v42, %v684_v42  ;;  %v771_v14 = vadd.f32 %v770_v11, %v684_v42  ;;  %vm821_vm0 = vcmp.eq.s32.totalorder %v819_v38, 1  ;;  %vm820_vm1 = vcmp.eq.s32.totalorder %v819_v38, 0 }
 0x10d   :  { %v808_v18 = vadd.f32 %v807_v13, %v793_v12 }
 0x10e   :  { %v636_v45 = vpop.f32.mrf.mxu2  ;;  %v541_v50 = vpop.f32.mrf.mxu0 }
 0x10f   :  { %v685_v46 = vpop.f32.mrf.mxu3  ;;  %v637_v48 = vadd.f32 %v636_v45, %v588_v44  ;;  %v590_v51 = vpop.f32.mrf.mxu1 }
 0x110   :  { %v591_v56 = vadd.f32 %v590_v51, %v541_v50 }
 0x111   :  { %v686_v55 = vadd.f32 %v685_v46, %v637_v48 }
 0x113   :  { %757 = vst [vmem:[%s1520_s2 + $0x68] sm:$0xff] %v686_v55  ;;  %v794_v15 = vmul.f32 %v686_v55, %v686_v55  ;;  %v772_v19 = vadd.f32 %v771_v14, %v686_v55 }
 0x115   :  { %v809_v23 = vadd.f32 %v808_v18, %v794_v15 }
 0x116   :  { %v639_v1 = vpop.f32.mrf.mxu2  ;;  %v543_v7 = vpop.f32.mrf.mxu0 }
 0x117   :  { %v688_v2 = vpop.f32.mrf.mxu3  ;;  %v640_v5 = vadd.f32 %v639_v1, %v591_v56  ;;  %v592_v9 = vpop.f32.mrf.mxu1 }
 0x118   :  { %v593_v16 = vadd.f32 %v592_v9, %v543_v7 }
 0x119   :  { %v689_v8 = vadd.f32 %v688_v2, %v640_v5 }
 0x11b   :  { %758 = vst [vmem:[%s1520_s2 + $0x70] sm:$0xff] %v689_v8  ;;  %v795_v20 = vmul.f32 %v689_v8, %v689_v8  ;;  %v773_v24 = vadd.f32 %v772_v19, %v689_v8 }
 0x11d   :  { %v810_v26 = vadd.f32 %v809_v23, %v795_v20 }
 0x11e   :  { %v641_v17 = vpop.f32.mrf.mxu2 }
 0x11f   :  { %v642_v21 = vadd.f32 %v641_v17, %v593_v16  ;;  %v690_v22 = vpop.f32.mrf.mxu3 }
 0x121   :  { %v691_v25 = vadd.f32 %v690_v22, %v642_v21 }
 0x123   :  { %759 = vst [vmem:[%s1520_s2 + $0x78] sm:$0xff] %v691_v25  ;;  %v774_v27 = vadd.f32 %v773_v24, %v691_v25  ;;  %v796_v28 = vmul.f32 %v691_v25, %v691_v25 }
 0x125   :  { %v775_v29 = vrot.slane %v774_v27, 4  ;;  %v811_v30 = vadd.f32 %v810_v26, %v796_v28 }
 0x127   :  { %v776_v31 = vadd.f32 %v775_v29, %v774_v27  ;;  %v812_v32 = vrot.slane %v811_v30, 4 }
 0x129   :  { %v777_v34 = vrot.slane %v776_v31, 2  ;;  %v813_v35 = vadd.f32 %v812_v32, %v811_v30 }
 0x12b   :  { %v778_v36 = vadd.f32 %v777_v34, %v776_v31  ;;  %v814_v37 = vrot.slane %v813_v35, 2 }
 0x12d   :  { %v815_v39 = vadd.f32 %v814_v37, %v813_v35  ;;  %v779_v40 = vrot.slane %v778_v36, 1 }
 0x12f   :  { %v816_v41 = vrot.slane %v815_v39, 1  ;;  %v780_v43 = vadd.f32 %v779_v40, %v778_v36 }
 0x131   :  { %v817_v42 = vadd.f32 %v816_v41, %v815_v39 }
 0x133   :  { %v822_v44 = vsel %vm821_vm0, %v817_v42, 0.0 }
 0x134   :  { %v823_v45 = vsel %vm820_vm1, %v780_v43, %v822_v44 }
 0x135   :  { %824 = vst [vmem:[%s1521_s3] sm:$0xff] %v823_v45 }

// kernel: unet_generator_forward.62
= control target key start
LH: loop header
LB: loop body
LE: loop exit
PB: predicated region body
PF: predicated region fallthrough
CT: control target
= control target key end

     0   :  { %s1730_s12 = smov 0   ;;  %s1732_s13 = smov 0   ;;  %s2016_s0 = inlined_call_operand.vmem [shape: bf16[128,1024], index: 0, kind: input, shape index: {}]   ;;  %s2017_s1 = inlined_call_operand.vmem [shape: bf16[1024,128], index: 1, kind: input, shape index: {}]   ;;  %s2018_s2 = inlined_call_operand.vmem [shape: f32[128,128], index: 2, kind: output, shape index: {0}]   ;;  %s2019_s3 = inlined_call_operand.vmem [shape: f32[8,128], index: 3, kind: output, shape index: {1}]  }
   0x1   :  { %s1734_s14 = smov 0   ;;  %s1736_s15 = smov 0  }
   0x2   :  { %s1738_s16 = smov 0  }
   0x3 LB: > { %s26_s17 = sadd.s32 1, %s1703_s15  ;;  %p49_p1 = scmp.ne.s32.totalorder %s1695_s13, %s1691_s12  ;;  %s1707_s16 = sphi %s1738_s16, %s14_s16   ;;  %s1703_s15 = sphi %s1736_s15, %s2023_s15   ;;  %s1699_s14 = sphi %s1734_s14, %s2022_s14   ;;  %s1695_s13 = sphi %s1732_s13, %s2021_s13   ;;  %s1691_s12 = sphi %s1730_s12, %s2020_s12  }
   0x4   : > { %p27_p0 = scmp.ge.s32.totalorder %s26_s17, 2  ;;  %p50_p2 = scmp.eq.s32.totalorder %s1707_s16, 0 }
   0x5   : > { %s42_s19 = sadd.s32 1, %s1695_s13  ;;  %p1292_p5 = scmp.ge.s32.totalorder %s1707_s16, 2 }
   0x6   : > { %s2025_s17 = smov (%p27_p0, %s26_s17), 0  ;;  %p51_p3 = por %p50_p2, %p49_p1 }
   0x7   : > { %s38_s18 = ssub.s32 %s1703_s15, %s2025_s17  ;;  %159 = sbr.rel (%p1292_p5) target bundleno = 48 (0x30), region = 16 }
   0x8   : > { %p40_p4 = scmp.eq.s32.totalorder %s38_s18, 0 }
   0xa   : > { %s1765_s20 = scalar_select %p40_p4, %s1695_s13, %s42_s19  }
   0xc   : > { %162 = sbr.rel (!%p51_p3) target bundleno = 48 (0x30), region = 20  ;;  %s164_s21 = sand.u32 (%p51_p3), 1, %s1695_s13  }
   0xd   : > { %s1563_s22 = sshll.u32 (%p51_p3), %s1703_s15, 4  ;;  %s1293_s23 = sshll.u32 (%p51_p3), %s164_s21, 8 }
   0xe   : > { %s1773_s26 = scalar_lea.vmem (%p51_p3), %s2016_s0, %s1563_s22  ;;  %s1778_s27 = scalar_lea.vmem (%p51_p3), [#allocation3], %s1293_s23 }
   0xf   : > { %v185_v0 = vld [vmem:[%s1773_s26] sm:$0xff] (%p51_p3)  ;;  %v187_v1 = vld [vmem:[%s1773_s26 + $0x8] sm:$0xff] (%p51_p3) }
  0x10   : > { %v189_v2 = vld [vmem:[%s1773_s26 + $0x20] sm:$0xff] (%p51_p3)  ;;  %186 = vst [vmem:[%s1778_s27] sm:$0xff] (%p51_p3), %v185_v0  ;;  %v191_v3 = vld [vmem:[%s1773_s26 + $0x28] sm:$0xff] (%p51_p3) }
  0x11   : > { %188 = vst [vmem:[%s1778_s27 + $0x8] sm:$0xff] %v187_v1  ;;  %v193_v4 = vld [vmem:[%s1773_s26 + $0x40] sm:$0xff]  ;;  %v195_v5 = vld [vmem:[%s1773_s26 + $0x48] sm:$0xff] }
  0x12   : > { %190 = vst [vmem:[%s1778_s27 + $0x10] sm:$0xff] %v189_v2  ;;  %v197_v6 = vld [vmem:[%s1773_s26 + $0x60] sm:$0xff]  ;;  %v199_v7 = vld [vmem:[%s1773_s26 + $0x68] sm:$0xff] }
  0x13   : > { %192 = vst [vmem:[%s1778_s27 + $0x18] sm:$0xff] %v191_v3  ;;  %v201_v8 = vld [vmem:[%s1773_s26 + $0x80] sm:$0xff]  ;;  %v203_v9 = vld [vmem:[%s1773_s26 + $0x88] sm:$0xff] }
  0x14   : > { %194 = vst [vmem:[%s1778_s27 + $0x20] sm:$0xff] %v193_v4  ;;  %v205_v10 = vld [vmem:[%s1773_s26 + $0xa0] sm:$0xff]  ;;  %v207_v11 = vld [vmem:[%s1773_s26 + $0xa8] sm:$0xff] }
  0x15   : > { %196 = vst [vmem:[%s1778_s27 + $0x28] sm:$0xff] %v195_v5  ;;  %v209_v12 = vld [vmem:[%s1773_s26 + $0xc0] sm:$0xff]  ;;  %v211_v13 = vld [vmem:[%s1773_s26 + $0xc8] sm:$0xff] }
  0x16   : > { %198 = vst [vmem:[%s1778_s27 + $0x30] sm:$0xff] %v197_v6  ;;  %v213_v14 = vld [vmem:[%s1773_s26 + $0xe0] sm:$0xff]  ;;  %v215_v15 = vld [vmem:[%s1773_s26 + $0xe8] sm:$0xff] }
  0x17   : > { %200 = vst [vmem:[%s1778_s27 + $0x38] sm:$0xff] %v199_v7  ;;  %v217_v16 = vld [vmem:[%s1773_s26 + $0x100] sm:$0xff]  ;;  %v219_v17 = vld [vmem:[%s1773_s26 + $0x108] sm:$0xff] }
  0x18   : > { %202 = vst [vmem:[%s1778_s27 + $0x40] sm:$0xff] %v201_v8  ;;  %v221_v18 = vld [vmem:[%s1773_s26 + $0x120] sm:$0xff]  ;;  %v223_v19 = vld [vmem:[%s1773_s26 + $0x128] sm:$0xff] }
  0x19   : > { %204 = vst [vmem:[%s1778_s27 + $0x48] sm:$0xff] %v203_v9  ;;  %v225_v20 = vld [vmem:[%s1773_s26 + $0x140] sm:$0xff]  ;;  %v227_v21 = vld [vmem:[%s1773_s26 + $0x148] sm:$0xff] }
  0x1a   : > { %206 = vst [vmem:[%s1778_s27 + $0x50] sm:$0xff] %v205_v10  ;;  %v229_v22 = vld [vmem:[%s1773_s26 + $0x160] sm:$0xff]  ;;  %v231_v23 = vld [vmem:[%s1773_s26 + $0x168] sm:$0xff] }
  0x1b   : > { %208 = vst [vmem:[%s1778_s27 + $0x58] sm:$0xff] %v207_v11  ;;  %v233_v24 = vld [vmem:[%s1773_s26 + $0x180] sm:$0xff]  ;;  %v235_v25 = vld [vmem:[%s1773_s26 + $0x188] sm:$0xff] }
  0x1c   : > { %210 = vst [vmem:[%s1778_s27 + $0x60] sm:$0xff] %v209_v12  ;;  %v237_v26 = vld [vmem:[%s1773_s26 + $0x1a0] sm:$0xff]  ;;  %v239_v27 = vld [vmem:[%s1773_s26 + $0x1a8] sm:$0xff] }
  0x1d   : > { %212 = vst [vmem:[%s1778_s27 + $0x68] sm:$0xff] %v211_v13  ;;  %v241_v28 = vld [vmem:[%s1773_s26 + $0x1c0] sm:$0xff]  ;;  %v243_v29 = vld [vmem:[%s1773_s26 + $0x1c8] sm:$0xff] }
  0x1e   : > { %214 = vst [vmem:[%s1778_s27 + $0x70] sm:$0xff] %v213_v14  ;;  %v245_v30 = vld [vmem:[%s1773_s26 + $0x1e0] sm:$0xff]  ;;  %v247_v31 = vld [vmem:[%s1773_s26 + $0x1e8] sm:$0xff] }
  0x1f   : > { %216 = vst [vmem:[%s1778_s27 + $0x78] sm:$0xff] %v215_v15 }
  0x20   : > { %218 = vst [vmem:[%s1778_s27 + $0x80] sm:$0xff] %v217_v16 }
  0x21   : > { %220 = vst [vmem:[%s1778_s27 + $0x88] sm:$0xff] %v219_v17 }
  0x22   : > { %222 = vst [vmem:[%s1778_s27 + $0x90] sm:$0xff] %v221_v18 }
  0x23   : > { %224 = vst [vmem:[%s1778_s27 + $0x98] sm:$0xff] %v223_v19 }
  0x24   : > { %226 = vst [vmem:[%s1778_s27 + $0xa0] sm:$0xff] %v225_v20 }
  0x25   : > { %228 = vst [vmem:[%s1778_s27 + $0xa8] sm:$0xff] %v227_v21 }
  0x26   : > { %230 = vst [vmem:[%s1778_s27 + $0xb0] sm:$0xff] %v229_v22 }
  0x27   : > { %232 = vst [vmem:[%s1778_s27 + $0xb8] sm:$0xff] %v231_v23 }
  0x28   : > { %234 = vst [vmem:[%s1778_s27 + $0xc0] sm:$0xff] %v233_v24 }
  0x29   : > { %236 = vst [vmem:[%s1778_s27 + $0xc8] sm:$0xff] %v235_v25 }
  0x2a   : > { %238 = vst [vmem:[%s1778_s27 + $0xd0] sm:$0xff] %v237_v26 }
  0x2b   : > { %240 = vst [vmem:[%s1778_s27 + $0xd8] sm:$0xff] %v239_v27 }
  0x2c   : > { %242 = vst [vmem:[%s1778_s27 + $0xe0] sm:$0xff] %v241_v28 }
  0x2d   : > { %244 = vst [vmem:[%s1778_s27 + $0xe8] sm:$0xff] %v243_v29 }
  0x2e   : > { %246 = vst [vmem:[%s1778_s27 + $0xf0] sm:$0xff] %v245_v30 }
  0x2f   : > { %248 = vst [vmem:[%s1778_s27 + $0xf8] sm:$0xff] %v247_v31 }
  0x30 PF: > { %p1296_p6 = scmp.ge.s32.totalorder %s1707_s16, 1  ;;  %p265_p7 = scmp.lt.s32.totalorder %s1707_s16, 3 }
  0x32   : > { %p266_p8 = pnand %p1296_p6, %p265_p7 }
  0x33   : > { %s272_s28 = sand.u32 (!%p266_p8), 1, %s1691_s12   ;;  %s1298_s29 = sshll.u32 (!%p266_p8), %s1699_s14, 6 }
  0x34   : > { %269 = sbr.rel (%p266_p8) target bundleno = 420 (0x1a4), region = 47  ;;  %s1297_s30 = sshll.u32 (!%p266_p8), %s272_s28, 8 }
  0x35   : > { %p316_p9 = scmp.lt.s32.totalorder (!%p266_p8), %s1298_s29, 127  ;;  %s1850_s8 = scalar_lea.vmem (!%p266_p8), [#allocation3], %s1297_s30 }
  0x36   : > { %p1300_p10 = scmp.ne.s32.totalorder (!%p266_p8), %s1699_s14, 0 }
  0x39   : > { %s2027_s29 = smov (!%p316_p9, %s1298_s29), 127  ;;  %343 = sbr.rel (%p1300_p10) target bundleno = 79 (0x4f), region = 55 }
  0x3a   : > { %s1299_s4 = sshll.u32 %s2027_s29, 2 }
  0x3b   : > { %s1848_s7 = scalar_lea.vmem %s2017_s1, %s1299_s4 }
  0x3e   : > { %v1709_v32 = vmov 0.0  }
  0x3f   : > { %344 = vst [vmem:[#allocation2 + $0x30] sm:$0xff] %v1709_v32 }
  0x40   : > { %345 = vst [vmem:[#allocation2] sm:$0xff] %v1709_v32 }
  0x41   : > { %346 = vst [vmem:[#allocation2 + $0x58] sm:$0xff] %v1709_v32 }
  0x42   : > { %347 = vst [vmem:[#allocation2 + $0x18] sm:$0xff] %v1709_v32 }
  0x43   : > { %348 = vst [vmem:[#allocation2 + $0x50] sm:$0xff] %v1709_v32 }
  0x44   : > { %349 = vst [vmem:[#allocation2 + $0x68] sm:$0xff] %v1709_v32 }
  0x45   : > { %350 = vst [vmem:[#allocation2 + $0x8] sm:$0xff] %v1709_v32 }
  0x46   : > { %351 = vst [vmem:[#allocation2 + $0x48] sm:$0xff] %v1709_v32 }
  0x47   : > { %352 = vst [vmem:[#allocation2 + $0x40] sm:$0xff] %v1709_v32 }
  0x48   : > { %353 = vst [vmem:[#allocation2 + $0x20] sm:$0xff] %v1709_v32 }
  0x49   : > { %354 = vst [vmem:[#allocation2 + $0x10] sm:$0xff] %v1709_v32 }
  0x4a   : > { %355 = vst [vmem:[#allocation2 + $0x38] sm:$0xff] %v1709_v32 }
  0x4b   : > { %356 = vst [vmem:[#allocation2 + $0x60] sm:$0xff] %v1709_v32 }
  0x4c   : > { %357 = vst [vmem:[#allocation2 + $0x70] sm:$0xff] %v1709_v32 }
  0x4d   : > { %358 = vst [vmem:[#allocation2 + $0x78] sm:$0xff] %v1709_v32 }
  0x4e   : > { %359 = vst [vmem:[#allocation2 + $0x28] sm:$0xff] %v1709_v32 }
  0x4f PF: > { %v1603_v33 = vld [vmem:[%s1848_s7 + $0x38] sm:$0xff]  ;;  %v1602_v37 = vld [vmem:[%s1848_s7 + $0x30] sm:$0xff]  ;;  %v1601_v41 = vld [vmem:[%s1848_s7 + $0x28] sm:$0xff]  ;;  %p1557_p11 = scmp.ne.s32.totalorder %s1699_s14, 1 }
  0x50   : > { %v1611_v34 = vld [vmem:[%s1848_s7 + $0x78] sm:$0xff]  ;;  %824 = vmatpush.bf16.msra.mxu0 %v1603_v33  ;;  %v1610_v38 = vld [vmem:[%s1848_s7 + $0x70] sm:$0xff]  ;;  %v1609_v42 = vld [vmem:[%s1848_s7 + $0x68] sm:$0xff] }
  0x51   : > { %v1619_v35 = vld [vmem:[%s1848_s7 + $0xb8] sm:$0xff]  ;;  %873 = vmatpush.bf16.msra.mxu1 %v1611_v34  ;;  %v1618_v39 = vld [vmem:[%s1848_s7 + $0xb0] sm:$0xff]  ;;  %v1617_v43 = vld [vmem:[%s1848_s7 + $0xa8] sm:$0xff] }
  0x52   : > { %v1627_v36 = vld [vmem:[%s1848_s7 + $0xf8] sm:$0xff]  ;;  %922 = vmatpush.bf16.msra.mxu2 %v1619_v35  ;;  %v1626_v40 = vld [vmem:[%s1848_s7 + $0xf0] sm:$0xff]  ;;  %v1625_v44 = vld [vmem:[%s1848_s7 + $0xe8] sm:$0xff] }
  0x53   : > { %971 = vmatpush.bf16.msra.mxu3 %v1627_v36  ;;  %v1600_v45 = vld [vmem:[%s1848_s7 + $0x20] sm:$0xff]  ;;  %v1599_v49 = vld [vmem:[%s1848_s7 + $0x18] sm:$0xff]  ;;  %v1598_v53 = vld [vmem:[%s1848_s7 + $0x10] sm:$0xff] }
  0x54   : > { %825 = vmatpush.bf16.msra.mxu0 %v1602_v37  ;;  %v1608_v46 = vld [vmem:[%s1848_s7 + $0x60] sm:$0xff]  ;;  %v1607_v50 = vld [vmem:[%s1848_s7 + $0x58] sm:$0xff]  ;;  %v1606_v54 = vld [vmem:[%s1848_s7 + $0x50] sm:$0xff] }
  0x55   : > { %874 = vmatpush.bf16.msra.mxu1 %v1610_v38  ;;  %v1616_v47 = vld [vmem:[%s1848_s7 + $0xa0] sm:$0xff]  ;;  %v1615_v51 = vld [vmem:[%s1848_s7 + $0x98] sm:$0xff]  ;;  %v1614_v55 = vld [vmem:[%s1848_s7 + $0x90] sm:$0xff] }
  0x56   : > { %923 = vmatpush.bf16.msra.mxu2 %v1618_v39  ;;  %v1624_v48 = vld [vmem:[%s1848_s7 + $0xe0] sm:$0xff]  ;;  %v1623_v52 = vld [vmem:[%s1848_s7 + $0xd8] sm:$0xff]  ;;  %v1622_v56 = vld [vmem:[%s1848_s7 + $0xd0] sm:$0xff] }
  0x57   : > { %972 = vmatpush.bf16.msra.mxu3 %v1626_v40  ;;  %v1597_v57 = vld [vmem:[%s1848_s7 + $0x8] sm:$0xff]  ;;  %v1596_v61 = vld [vmem:[%s1848_s7] sm:$0xff]  ;;  %v1566_v2 = vld [vmem:[%s1850_s8 + $0xc] sm:$0xf0] }
  0x58   : > { %826 = vmatpush.bf16.msra.mxu0 %v1601_v41  ;;  %v1605_v58 = vld [vmem:[%s1848_s7 + $0x48] sm:$0xff]  ;;  %v1604_v62 = vld [vmem:[%s1848_s7 + $0x40] sm:$0xff]  ;;  %v1305_v4 = vld [vmem:[%s1850_s8 + $0x10] sm:$0xf0] }
  0x59   : > { %875 = vmatpush.bf16.msra.mxu1 %v1609_v42  ;;  %v1613_v59 = vld [vmem:[%s1848_s7 + $0x88] sm:$0xff]  ;;  %v1612_v63 = vld [vmem:[%s1848_s7 + $0x80] sm:$0xff]  ;;  %v1567_v6 = vld [vmem:[%s1850_s8 + $0x14] sm:$0xf0] }
  0x5a   : > { %924 = vmatpush.bf16.msra.mxu2 %v1617_v43  ;;  %v1621_v60 = vld [vmem:[%s1848_s7 + $0xc8] sm:$0xff]  ;;  %v1620_v0 = vld [vmem:[%s1848_s7 + $0xc0] sm:$0xff]  ;;  %v1313_v8 = vld [vmem:[%s1850_s8 + $0x18] sm:$0xf0] }
  0x5b   : > { %973 = vmatpush.bf16.msra.mxu3 %v1625_v44  ;;  %v1303_v1 = vld [vmem:[%s1850_s8] sm:$0xf]  ;;  %v1564_v3 = vld [vmem:[%s1850_s8 + $0x4] sm:$0xf]  ;;  %v1311_v5 = vld [vmem:[%s1850_s8 + $0x8] sm:$0xf] }
  0x5c   : > { %827 = vmatpush.bf16.msra.mxu0 %v1600_v45  ;;  %v1565_v7 = vld [vmem:[%s1850_s8 + $0xc] sm:$0xf]  ;;  %v1304_v9 = vor.u32 %v1566_v2, %v1303_v1  ;;  %v1308_v10 = vor.u32 %v1564_v3, %v1305_v4  ;;  %v1312_v11 = vor.u32 %v1567_v6, %v1311_v5  ;;  %v1319_v13 = vld [vmem:[%s1850_s8 + $0x20] sm:$0xf]  ;;  %v1570_v14 = vld [vmem:[%s1850_s8 + $0x2c] sm:$0xf0] }
  0x5d   : > { %876 = vmatpush.bf16.msra.mxu1 %v1608_v46  ;;  %v1316_v12 = vor.u32 %v1565_v7, %v1313_v8  ;;  %v1568_v15 = vld [vmem:[%s1850_s8 + $0x24] sm:$0xf]  ;;  %v1321_v16 = vld [vmem:[%s1850_s8 + $0x30] sm:$0xf0]  ;;  %v1327_v17 = vld [vmem:[%s1850_s8 + $0x28] sm:$0xf]  ;;  %v1320_v21 = vor.u32 %v1570_v14, %v1319_v13 }
  0x5e   : > { %925 = vmatpush.bf16.msra.mxu2 %v1616_v47  ;;  %v1571_v18 = vld [vmem:[%s1850_s8 + $0x34] sm:$0xf0]  ;;  %v1569_v19 = vld [vmem:[%s1850_s8 + $0x2c] sm:$0xf]  ;;  %v1329_v20 = vld [vmem:[%s1850_s8 + $0x38] sm:$0xf0]  ;;  %v1324_v22 = vor.u32 %v1568_v15, %v1321_v16 }
  0x5f   : > { %974 = vmatpush.bf16.msra.mxu3 %v1624_v48  ;;  %v1328_v23 = vor.u32 %v1571_v18, %v1327_v17  ;;  %v1332_v24 = vor.u32 %v1569_v19, %v1329_v20  ;;  %v1335_v25 = vld [vmem:[%s1850_s8 + $0x40] sm:$0xf]  ;;  %v1574_v26 = vld [vmem:[%s1850_s8 + $0x4c] sm:$0xf0]  ;;  %v1572_v27 = vld [vmem:[%s1850_s8 + $0x44] sm:$0xf] }
  0x60   : > { %828 = vmatpush.bf16.msra.mxu0 %v1599_v49  ;;  %v1337_v28 = vld [vmem:[%s1850_s8 + $0x50] sm:$0xf0]  ;;  %v1343_v29 = vld [vmem:[%s1850_s8 + $0x48] sm:$0xf]  ;;  %v1575_v30 = vld [vmem:[%s1850_s8 + $0x54] sm:$0xf0]  ;;  %v1336_v33 = vor.u32 %v1574_v26, %v1335_v25 }
  0x61   : > { %877 = vmatpush.bf16.msra.mxu1 %v1607_v50  ;;  %v1573_v31 = vld [vmem:[%s1850_s8 + $0x4c] sm:$0xf]  ;;  %v1345_v32 = vld [vmem:[%s1850_s8 + $0x58] sm:$0xf0]  ;;  %v1340_v34 = vor.u32 %v1572_v27, %v1337_v28  ;;  %v1344_v35 = vor.u32 %v1575_v30, %v1343_v29  ;;  %v1351_v37 = vld [vmem:[%s1850_s8 + $0x60] sm:$0xf] }
  0x62   : > { %926 = vmatpush.bf16.msra.mxu2 %v1615_v51  ;;  %v1348_v36 = vor.u32 %v1573_v31, %v1345_v32  ;;  %v1578_v38 = vld [vmem:[%s1850_s8 + $0x6c] sm:$0xf0]  ;;  %v1576_v39 = vld [vmem:[%s1850_s8 + $0x64] sm:$0xf]  ;;  %v1353_v40 = vld [vmem:[%s1850_s8 + $0x70] sm:$0xf0] }
  0x63   : > { %975 = vmatpush.bf16.msra.mxu3 %v1623_v52  ;;  %v1359_v41 = vld [vmem:[%s1850_s8 + $0x68] sm:$0xf]  ;;  %v1579_v42 = vld [vmem:[%s1850_s8 + $0x74] sm:$0xf0]  ;;  %v1577_v43 = vld [vmem:[%s1850_s8 + $0x6c] sm:$0xf]  ;;  %v1352_v45 = vor.u32 %v1578_v38, %v1351_v37  ;;  %v1356_v46 = vor.u32 %v1576_v39, %v1353_v40 }
  0x64   : > { %829 = vmatpush.bf16.msra.mxu0 %v1598_v53  ;;  %v1361_v44 = vld [vmem:[%s1850_s8 + $0x78] sm:$0xf0]  ;;  %v1360_v47 = vor.u32 %v1579_v42, %v1359_v41  ;;  %v1367_v49 = vld [vmem:[%s1850_s8 + $0x80] sm:$0xf]  ;;  %v1582_v50 = vld [vmem:[%s1850_s8 + $0x8c] sm:$0xf0] }
  0x65   : > { %878 = vmatpush.bf16.msra.mxu1 %v1606_v54  ;;  %v1364_v48 = vor.u32 %v1577_v43, %v1361_v44  ;;  %v1580_v51 = vld [vmem:[%s1850_s8 + $0x84] sm:$0xf]  ;;  %v1369_v52 = vld [vmem:[%s1850_s8 + $0x90] sm:$0xf0]  ;;  %v1375_v53 = vld [vmem:[%s1850_s8 + $0x88] sm:$0xf] }
  0x66   : > { %927 = vmatpush.bf16.msra.mxu2 %v1614_v55  ;;  %v1583_v54 = vld [vmem:[%s1850_s8 + $0x94] sm:$0xf0]  ;;  %v1581_v55 = vld [vmem:[%s1850_s8 + $0x8c] sm:$0xf]  ;;  %v1391_v1 = vld [vmem:[%s1850_s8 + $0xa8] sm:$0xf] }
  0x67   : > { %976 = vmatpush.bf16.msra.mxu3 %v1622_v56  ;;  %v1377_v56 = vld [vmem:[%s1850_s8 + $0x98] sm:$0xf0]  ;;  %v1587_v2 = vld [vmem:[%s1850_s8 + $0xb4] sm:$0xf0]  ;;  %v1585_v3 = vld [vmem:[%s1850_s8 + $0xac] sm:$0xf] }
  0x68   : > { %830 = vmatpush.bf16.msra.mxu0 %v1597_v57  ;;  %v1368_v57 = vor.u32 %v1582_v50, %v1367_v49  ;;  %v1393_v4 = vld [vmem:[%s1850_s8 + $0xb8] sm:$0xf0]  ;;  %v1392_v7 = vor.u32 %v1587_v2, %v1391_v1  ;;  %v1407_v13 = vld [vmem:[%s1850_s8 + $0xc8] sm:$0xf]  ;;  %v1591_v14 = vld [vmem:[%s1850_s8 + $0xd4] sm:$0xf0] }
  0x69   : > { %879 = vmatpush.bf16.msra.mxu1 %v1605_v58  ;;  %v1372_v58 = vor.u32 %v1580_v51, %v1369_v52  ;;  %v1396_v8 = vor.u32 %v1585_v3, %v1393_v4  ;;  %v1589_v15 = vld [vmem:[%s1850_s8 + $0xcc] sm:$0xf]  ;;  %v1409_v16 = vld [vmem:[%s1850_s8 + $0xd8] sm:$0xf0]  ;;  %v1408_v19 = vor.u32 %v1591_v14, %v1407_v13  ;;  %v1423_v25 = vld [vmem:[%s1850_s8 + $0xe8] sm:$0xf] }
  0x6a   : > { %928 = vmatpush.bf16.msra.mxu2 %v1613_v59  ;;  %v1376_v59 = vor.u32 %v1583_v54, %v1375_v53  ;;  %v1412_v20 = vor.u32 %v1589_v15, %v1409_v16  ;;  %v1595_v26 = vld [vmem:[%s1850_s8 + $0xf4] sm:$0xf0]  ;;  %v1593_v27 = vld [vmem:[%s1850_s8 + $0xec] sm:$0xf]  ;;  %v1425_v28 = vld [vmem:[%s1850_s8 + $0xf8] sm:$0xf0] }
  0x6b   : > { %977 = vmatpush.bf16.msra.mxu3 %v1621_v60  ;;  %v1380_v60 = vor.u32 %v1581_v55, %v1377_v56  ;;  %v1424_v31 = vor.u32 %v1595_v26, %v1423_v25  ;;  %v1428_v32 = vor.u32 %v1593_v27, %v1425_v28  ;;  %v360_v41 = vld [vmem:[#allocation2 + $0x30] sm:$0xff]  ;;  %v361_v50 = vld [vmem:[#allocation2] sm:$0xff]  ;;  %v363_v4 = vld [vmem:[#allocation2 + $0x18] sm:$0xff] }
  0x6c   : > { %831 = vmatpush.bf16.msra.mxu0 %v1596_v61  ;;  %v1383_v61 = vld [vmem:[%s1850_s8 + $0xa0] sm:$0xf]  ;;  %v364_v13 = vld [vmem:[#allocation2 + $0x50] sm:$0xff] }
  0x6d   : > { %880 = vmatpush.bf16.msra.mxu1 %v1604_v62  ;;  %v1586_v62 = vld [vmem:[%s1850_s8 + $0xac] sm:$0xf0] }
  0x6e   : > { %929 = vmatpush.bf16.msra.mxu2 %v1612_v63  ;;  %v1584_v63 = vld [vmem:[%s1850_s8 + $0xa4] sm:$0xf]  ;;  %v1384_v5 = vor.u32 %v1586_v62, %v1383_v61 }
  0x6f   : > { %978 = vmatpush.bf16.msra.mxu3 %v1620_v0  ;;  %832 = vmatmul.bf16.vlgmr.msra.gmra.mxu0 %v1304_v9  ;;  %v1385_v0 = vld [vmem:[%s1850_s8 + $0xb0] sm:$0xf0]  ;;  %v1399_v9 = vld [vmem:[%s1850_s8 + $0xc0] sm:$0xf] }
  0x70   : > { %881 = vmatmul.bf16.vlgmr.msra.gmra.mxu1 %v1308_v10  ;;  %v1388_v6 = vor.u32 %v1584_v63, %v1385_v0  ;;  %v1590_v10 = vld [vmem:[%s1850_s8 + $0xcc] sm:$0xf0] }
  0x71   : > { %930 = vmatmul.bf16.vlgmr.msra.gmra.mxu2 %v1312_v11  ;;  %v1588_v11 = vld [vmem:[%s1850_s8 + $0xc4] sm:$0xf]  ;;  %v1400_v17 = vor.u32 %v1590_v10, %v1399_v9 }
  0x72   : > { %979 = vmatmul.bf16.vlgmr.msra.gmra.mxu3 %v1316_v12  ;;  %v1401_v12 = vld [vmem:[%s1850_s8 + $0xd0] sm:$0xf0] }
  0x73   : > { %v1404_v18 = vor.u32 %v1588_v11, %v1401_v12 }
  0x7f   : > { %837 = vmatmul.bf16.gmra.mxu0 %v1320_v21  ;;  %v1415_v21 = vld [vmem:[%s1850_s8 + $0xe0] sm:$0xf] }
  0x80   : > { %886 = vmatmul.bf16.gmra.mxu1 %v1324_v22  ;;  %v1594_v22 = vld [vmem:[%s1850_s8 + $0xec] sm:$0xf0] }
  0x81   : > { %935 = vmatmul.bf16.gmra.mxu2 %v1328_v23  ;;  %v1592_v23 = vld [vmem:[%s1850_s8 + $0xe4] sm:$0xf]  ;;  %v1416_v29 = vor.u32 %v1594_v22, %v1415_v21  ;;  %v365_v22 = vld [vmem:[#allocation2 + $0x68] sm:$0xff] }
  0x82   : > { %984 = vmatmul.bf16.gmra.mxu3 %v1332_v24  ;;  %v1417_v24 = vld [vmem:[%s1850_s8 + $0xf0] sm:$0xf0] }
  0x83   : > { %v1420_v30 = vor.u32 %v1592_v23, %v1417_v24 }
  0x8f   : > { %842 = vmatmul.bf16.gmra.mxu0 %v1336_v33 }
  0x90   : > { %891 = vmatmul.bf16.gmra.mxu1 %v1340_v34 }
  0x91   : > { %940 = vmatmul.bf16.gmra.mxu2 %v1344_v35 }
  0x92   : > { %989 = vmatmul.bf16.gmra.mxu3 %v1348_v36 }
  0x9f   : > { %847 = vmatmul.bf16.gmra.mxu0 %v1352_v45 }
  0xa0   : > { %896 = vmatmul.bf16.gmra.mxu1 %v1356_v46 }
  0xa1   : > { %945 = vmatmul.bf16.gmra.mxu2 %v1360_v47 }
  0xa2   : > { %994 = vmatmul.bf16.gmra.mxu3 %v1364_v48 }
  0xaf   : > { %852 = vmatmul.bf16.gmra.mxu0 %v1368_v57 }
  0xb0   : > { %901 = vmatmul.bf16.gmra.mxu1 %v1372_v58 }
  0xb1   : > { %950 = vmatmul.bf16.gmra.mxu2 %v1376_v59  ;;  %v362_v59 = vld [vmem:[#allocation2 + $0x58] sm:$0xff] }
  0xb2   : > { %999 = vmatmul.bf16.gmra.mxu3 %v1380_v60 }
  0xbf   : > { %857 = vmatmul.bf16.gmra.mxu0 %v1384_v5 }
  0xc0   : > { %906 = vmatmul.bf16.gmra.mxu1 %v1388_v6 }
  0xc1   : > { %955 = vmatmul.bf16.gmra.mxu2 %v1392_v7 }
  0xc2   : > { %1004 = vmatmul.bf16.gmra.mxu3 %v1396_v8 }
  0xcf   : > { %862 = vmatmul.bf16.gmra.mxu0 %v1400_v17 }
  0xd0   : > { %911 = vmatmul.bf16.gmra.mxu1 %v1404_v18 }
  0xd1   : > { %960 = vmatmul.bf16.gmra.mxu2 %v1408_v19 }
  0xd2   : > { %1009 = vmatmul.bf16.gmra.mxu3 %v1412_v20 }
  0xdf   : > { %867 = vmatmul.bf16.gmra.mxu0 %v1416_v29 }
  0xe0   : > { %916 = vmatmul.bf16.gmra.mxu1 %v1420_v30 }
  0xe1   : > { %965 = vmatmul.bf16.gmra.mxu2 %v1424_v31  ;;  %v366_v31 = vld [vmem:[#allocation2 + $0x8] sm:$0xff] }
  0xe2   : > { %1014 = vmatmul.bf16.gmra.mxu3 %v1428_v32 }
  0xec   : > { %v833_v33 = vpop.f32.mrf.mxu0 }
  0xed   : > { %v882_v34 = vpop.f32.mrf.mxu1 }
  0xee   : > { %v883_v35 = vadd.f32 %v882_v34, %v833_v33 }
  0xf4   : > { %v931_v36 = vpop.f32.mrf.mxu2  ;;  %v835_v39 = vpop.f32.mrf.mxu0 }
  0xf5   : > { %v980_v37 = vpop.f32.mrf.mxu3  ;;  %v932_v38 = vadd.f32 %v931_v36, %v883_v35  ;;  %v884_v40 = vpop.f32.mrf.mxu1 }
  0xf6   : > { %v885_v44 = vadd.f32 %v884_v40, %v835_v39  ;;  %v367_v40 = vld [vmem:[#allocation2 + $0x48] sm:$0xff] }
  0xf7   : > { %v981_v42 = vadd.f32 %v980_v37, %v932_v38 }
  0xf9   : > { %v1020_v43 = vadd.f32 %v981_v42, %v360_v41 }
  0xfb   : > { %1036 = vst [vmem:[#allocation2 + $0x30] sm:$0xff] %v1020_v43 }
  0xfc   : > { %v933_v45 = vpop.f32.mrf.mxu2  ;;  %v838_v48 = vpop.f32.mrf.mxu0 }
  0xfd   : > { %v982_v46 = vpop.f32.mrf.mxu3  ;;  %v934_v47 = vadd.f32 %v933_v45, %v885_v44  ;;  %v887_v49 = vpop.f32.mrf.mxu1 }
  0xfe   : > { %v888_v53 = vadd.f32 %v887_v49, %v838_v48  ;;  %v368_v49 = vld [vmem:[#allocation2 + $0x40] sm:$0xff] }
  0xff   : > { %v983_v51 = vadd.f32 %v982_v46, %v934_v47 }
 0x101   : > { %v1021_v52 = vadd.f32 %v983_v51, %v361_v50 }
 0x103   : > { %1037 = vst [vmem:[#allocation2] sm:$0xff] %v1021_v52 }
 0x104   : > { %v936_v54 = vpop.f32.mrf.mxu2  ;;  %v840_v57 = vpop.f32.mrf.mxu0 }
 0x105   : > { %v985_v55 = vpop.f32.mrf.mxu3  ;;  %v937_v56 = vadd.f32 %v936_v54, %v888_v53  ;;  %v889_v58 = vpop.f32.mrf.mxu1 }
 0x106   : > { %v890_v62 = vadd.f32 %v889_v58, %v840_v57  ;;  %v369_v58 = vld [vmem:[#allocation2 + $0x20] sm:$0xff] }
 0x107   : > { %v986_v60 = vadd.f32 %v985_v55, %v937_v56 }
 0x109   : > { %v1022_v61 = vadd.f32 %v986_v60, %v362_v59 }
 0x10b   : > { %1038 = vst [vmem:[#allocation2 + $0x58] sm:$0xff] %v1022_v61 }
 0x10c   : > { %v938_v63 = vpop.f32.mrf.mxu2  ;;  %v843_v2 = vpop.f32.mrf.mxu0 }
 0x10d   : > { %v987_v0 = vpop.f32.mrf.mxu3  ;;  %v939_v1 = vadd.f32 %v938_v63, %v890_v62  ;;  %v892_v3 = vpop.f32.mrf.mxu1 }
 0x10e   : > { %v893_v7 = vadd.f32 %v892_v3, %v843_v2  ;;  %v370_v3 = vld [vmem:[#allocation2 + $0x10] sm:$0xff] }
 0x10f   : > { %v988_v5 = vadd.f32 %v987_v0, %v939_v1 }
 0x111   : > { %v1023_v6 = vadd.f32 %v988_v5, %v363_v4 }
 0x113   : > { %1039 = vst [vmem:[#allocation2 + $0x18] sm:$0xff] %v1023_v6 }
 0x114   : > { %v941_v8 = vpop.f32.mrf.mxu2  ;;  %v845_v11 = vpop.f32.mrf.mxu0 }
 0x115   : > { %v990_v9 = vpop.f32.mrf.mxu3  ;;  %v942_v10 = vadd.f32 %v941_v8, %v893_v7  ;;  %v894_v12 = vpop.f32.mrf.mxu1 }
 0x116   : > { %v895_v16 = vadd.f32 %v894_v12, %v845_v11  ;;  %v371_v12 = vld [vmem:[#allocation2 + $0x38] sm:$0xff] }
 0x117   : > { %v991_v14 = vadd.f32 %v990_v9, %v942_v10 }
 0x119   : > { %v1024_v15 = vadd.f32 %v991_v14, %v364_v13 }
 0x11b   : > { %1040 = vst [vmem:[#allocation2 + $0x50] sm:$0xff] %v1024_v15 }
 0x11c   : > { %v943_v17 = vpop.f32.mrf.mxu2  ;;  %v848_v20 = vpop.f32.mrf.mxu0 }
 0x11d   : > { %v992_v18 = vpop.f32.mrf.mxu3  ;;  %v944_v19 = vadd.f32 %v943_v17, %v895_v16  ;;  %v897_v21 = vpop.f32.mrf.mxu1 }
 0x11e   : > { %v898_v25 = vadd.f32 %v897_v21, %v848_v20  ;;  %v372_v21 = vld [vmem:[#allocation2 + $0x60] sm:$0xff] }
 0x11f   : > { %v993_v23 = vadd.f32 %v992_v18, %v944_v19 }
 0x121   : > { %v1025_v24 = vadd.f32 %v993_v23, %v365_v22 }
 0x123   : > { %1041 = vst [vmem:[#allocation2 + $0x68] sm:$0xff] %v1025_v24 }
 0x124   : > { %v946_v26 = vpop.f32.mrf.mxu2  ;;  %v850_v29 = vpop.f32.mrf.mxu0 }
 0x125   : > { %v995_v27 = vpop.f32.mrf.mxu3  ;;  %v947_v28 = vadd.f32 %v946_v26, %v898_v25  ;;  %v899_v30 = vpop.f32.mrf.mxu1 }
 0x126   : > { %v900_v34 = vadd.f32 %v899_v30, %v850_v29 }
 0x127   : > { %v996_v32 = vadd.f32 %v995_v27, %v947_v28  ;;  %v373_v28 = vld [vmem:[#allocation2 + $0x70] sm:$0xff] }
 0x129   : > { %v1026_v33 = vadd.f32 %v996_v32, %v366_v31 }
 0x12b   : > { %1042 = vst [vmem:[#allocation2 + $0x8] sm:$0xff] %v1026_v33 }
 0x12c   : > { %v948_v35 = vpop.f32.mrf.mxu2  ;;  %v853_v38 = vpop.f32.mrf.mxu0 }
 0x12d   : > { %v997_v36 = vpop.f32.mrf.mxu3  ;;  %v949_v37 = vadd.f32 %v948_v35, %v900_v34  ;;  %v902_v39 = vpop.f32.mrf.mxu1 }
 0x12e   : > { %v903_v43 = vadd.f32 %v902_v39, %v853_v38 }
 0x12f   : > { %v998_v41 = vadd.f32 %v997_v36, %v949_v37  ;;  %v374_v37 = vld [vmem:[#allocation2 + $0x78] sm:$0xff] }
 0x131   : > { %v1027_v42 = vadd.f32 %v998_v41, %v367_v40 }
 0x133   : > { %1043 = vst [vmem:[#allocation2 + $0x48] sm:$0xff] %v1027_v42 }
 0x134   : > { %v951_v44 = vpop.f32.mrf.mxu2  ;;  %v855_v47 = vpop.f32.mrf.mxu0 }
 0x135   : > { %v1000_v45 = vpop.f32.mrf.mxu3  ;;  %v952_v46 = vadd.f32 %v951_v44, %v903_v43  ;;  %v904_v48 = vpop.f32.mrf.mxu1 }
 0x136   : > { %v905_v52 = vadd.f32 %v904_v48, %v855_v47 }
 0x137   : > { %v1001_v50 = vadd.f32 %v1000_v45, %v952_v46  ;;  %v375_v45 = vld [vmem:[#allocation2 + $0x28] sm:$0xff] }
 0x139   : > { %v1028_v51 = vadd.f32 %v1001_v50, %v368_v49 }
 0x13b   : > { %1044 = vst [vmem:[#allocation2 + $0x40] sm:$0xff] %v1028_v51 }
 0x13c   : > { %v953_v53 = vpop.f32.mrf.mxu2  ;;  %v858_v56 = vpop.f32.mrf.mxu0 }
 0x13d   : > { %v1002_v54 = vpop.f32.mrf.mxu3  ;;  %v954_v55 = vadd.f32 %v953_v53, %v905_v52  ;;  %v907_v57 = vpop.f32.mrf.mxu1 }
 0x13e   : > { %v908_v61 = vadd.f32 %v907_v57, %v858_v56 }
 0x13f   : > { %v1003_v59 = vadd.f32 %v1002_v54, %v954_v55 }
 0x141   : > { %v1029_v60 = vadd.f32 %v1003_v59, %v369_v58 }
 0x143   : > { %1045 = vst [vmem:[#allocation2 + $0x20] sm:$0xff] %v1029_v60 }
 0x144   : > { %v956_v62 = vpop.f32.mrf.mxu2  ;;  %v860_v1 = vpop.f32.mrf.mxu0 }
 0x145   : > { %v1005_v63 = vpop.f32.mrf.mxu3  ;;  %v957_v0 = vadd.f32 %v956_v62, %v908_v61  ;;  %v909_v2 = vpop.f32.mrf.mxu1 }
 0x146   : > { %v910_v6 = vadd.f32 %v909_v2, %v860_v1 }
 0x147   : > { %v1006_v4 = vadd.f32 %v1005_v63, %v957_v0 }
 0x149   : > { %v1030_v5 = vadd.f32 %v1006_v4, %v370_v3 }
 0x14b   : > { %1046 = vst [vmem:[#allocation2 + $0x10] sm:$0xff] %v1030_v5 }
 0x14c   : > { %v958_v7 = vpop.f32.mrf.mxu2  ;;  %v863_v10 = vpop.f32.mrf.mxu0 }
 0x14d   : > { %v1007_v8 = vpop.f32.mrf.mxu3  ;;  %v959_v9 = vadd.f32 %v958_v7, %v910_v6  ;;  %v912_v11 = vpop.f32.mrf.mxu1 }
 0x14e   : > { %v913_v15 = vadd.f32 %v912_v11, %v863_v10 }
 0x14f   : > { %v1008_v13 = vadd.f32 %v1007_v8, %v959_v9 }
 0x151   : > { %v1031_v14 = vadd.f32 %v1008_v13, %v371_v12 }
 0x153   : > { %1047 = vst [vmem:[#allocation2 + $0x38] sm:$0xff] %v1031_v14 }
 0x154   : > { %v961_v16 = vpop.f32.mrf.mxu2  ;;  %v865_v19 = vpop.f32.mrf.mxu0 }
 0x155   : > { %v1010_v17 = vpop.f32.mrf.mxu3  ;;  %v962_v18 = vadd.f32 %v961_v16, %v913_v15  ;;  %v914_v20 = vpop.f32.mrf.mxu1 }
 0x156   : > { %v915_v24 = vadd.f32 %v914_v20, %v865_v19 }
 0x157   : > { %v1011_v22 = vadd.f32 %v1010_v17, %v962_v18 }
 0x159   : > { %v1032_v23 = vadd.f32 %v1011_v22, %v372_v21 }
 0x15b   : > { %1048 = vst [vmem:[#allocation2 + $0x60] sm:$0xff] %v1032_v23 }
 0x15c   : > { %v963_v25 = vpop.f32.mrf.mxu2  ;;  %v868_v29 = vpop.f32.mrf.mxu0 }
 0x15d   : > { %v1012_v26 = vpop.f32.mrf.mxu3  ;;  %v964_v27 = vadd.f32 %v963_v25, %v915_v24  ;;  %v917_v30 = vpop.f32.mrf.mxu1 }
 0x15e   : > { %v918_v33 = vadd.f32 %v917_v30, %v868_v29 }
 0x15f   : > { %v1013_v31 = vadd.f32 %v1012_v26, %v964_v27 }
 0x161   : > { %v1033_v32 = vadd.f32 %v1013_v31, %v373_v28 }
 0x163   : > { %1049 = vst [vmem:[#allocation2 + $0x70] sm:$0xff] %v1033_v32 }
 0x164   : > { %v966_v34 = vpop.f32.mrf.mxu2  ;;  %v870_v39 = vpop.f32.mrf.mxu0 }
 0x165   : > { %v1015_v35 = vpop.f32.mrf.mxu3  ;;  %v967_v36 = vadd.f32 %v966_v34, %v918_v33  ;;  %v919_v40 = vpop.f32.mrf.mxu1 }
 0x166   : > { %v920_v42 = vadd.f32 %v919_v40, %v870_v39 }
 0x167   : > { %v1016_v38 = vadd.f32 %v1015_v35, %v967_v36 }
 0x169   : > { %v1034_v41 = vadd.f32 %v1016_v38, %v374_v37 }
 0x16b   : > { %1050 = vst [vmem:[#allocation2 + $0x78] sm:$0xff] %v1034_v41 }
 0x16c   : > { %v968_v43 = vpop.f32.mrf.mxu2 }
 0x16d   : > { %v969_v44 = vadd.f32 %v968_v43, %v920_v42  ;;  %v1017_v46 = vpop.f32.mrf.mxu3 }
 0x16f   : > { %v1018_v47 = vadd.f32 %v1017_v46, %v969_v44  ;;  %1055 = sbr.rel (%p1557_p11) target bundleno = 420 (0x1a4), region = 59 }
 0x171   : > { %v1035_v48 = vadd.f32 %v1018_v47, %v375_v45 }
 0x173   : > { %1051 = vst [vmem:[#allocation2 + $0x28] sm:$0xff] %v1035_v48 }
 0x174   : > { %v1056_v49 = vld [vmem:[#allocation2 + $0x30] sm:$0xff]  ;;  %v1057_v50 = vld [vmem:[#allocation2] sm:$0xff]  ;;  %v1058_v51 = vld [vmem:[#allocation2 + $0x58] sm:$0xff] }
 0x175   : > { %1072 = vst [vmem:[%s2018_s2] sm:$0xff] %v1056_v49  ;;  %v1109_v52 = vmul.f32 %v1056_v49, %v1056_v49  ;;  %v1088_v53 = vadd.f32 %v1057_v50, %v1056_v49  ;;  %v1110_v54 = vmul.f32 %v1057_v50, %v1057_v50  ;;  %v1111_v55 = vmul.f32 %v1058_v51, %v1058_v51  ;;  %v1059_v56 = vld [vmem:[#allocation2 + $0x18] sm:$0xff]  ;;  %v1060_v57 = vld [vmem:[#allocation2 + $0x50] sm:$0xff]  ;;  %v1061_v61 = vld [vmem:[#allocation2 + $0x68] sm:$0xff] }
 0x176   : > { %1073 = vst [vmem:[%s2018_s2 + $0x8] sm:$0xff] %v1057_v50  ;;  %v1112_v60 = vmul.f32 %v1059_v56, %v1059_v56  ;;  %v1113_v0 = vmul.f32 %v1060_v57, %v1060_v57  ;;  %v1062_v1 = vld [vmem:[#allocation2 + $0x8] sm:$0xff]  ;;  %v1114_v4 = vmul.f32 %v1061_v61, %v1061_v61  ;;  %v1064_v6 = vld [vmem:[#allocation2 + $0x40] sm:$0xff]  ;;  %v1066_v11 = vld [vmem:[#allocation2 + $0x10] sm:$0xff]  ;;  %v1146_v50 = vlaneseq }
 0x177   : > { %v1125_v58 = vadd.f32 %v1110_v54, %v1109_v52  ;;  %1074 = vst [vmem:[%s2018_s2 + $0x10] sm:$0xff] %v1058_v51  ;;  %v1089_v59 = vadd.f32 %v1088_v53, %v1058_v51  ;;  %v1063_v5 = vld [vmem:[#allocation2 + $0x48] sm:$0xff]  ;;  %v1115_v9 = vmul.f32 %v1062_v1, %v1062_v1  ;;  %v1065_v10 = vld [vmem:[#allocation2 + $0x20] sm:$0xff]  ;;  %v1067_v15 = vld [vmem:[#allocation2 + $0x38] sm:$0xff]  ;;  %v1117_v19 = vmul.f32 %v1064_v6, %v1064_v6 }
 0x178   : > { %1075 = vst [vmem:[%s2018_s2 + $0x18] sm:$0xff] %v1059_v56  ;;  %v1116_v14 = vmul.f32 %v1063_v5, %v1063_v5  ;;  %v1068_v16 = vld [vmem:[#allocation2 + $0x60] sm:$0xff]  ;;  %v1069_v20 = vld [vmem:[#allocation2 + $0x70] sm:$0xff]  ;;  %v1070_v21 = vld [vmem:[#allocation2 + $0x78] sm:$0xff]  ;;  %v1118_v24 = vmul.f32 %v1065_v10, %v1065_v10  ;;  %v1119_v28 = vmul.f32 %v1066_v11, %v1066_v11  ;;  %v1120_v31 = vmul.f32 %v1067_v15, %v1067_v15 }
 0x179   : > { %v1126_v62 = vadd.f32 %v1125_v58, %v1111_v55  ;;  %v1090_v63 = vadd.f32 %v1089_v59, %v1059_v56  ;;  %1076 = vst [vmem:[%s2018_s2 + $0x20] sm:$0xff] %v1060_v57  ;;  %v1121_v34 = vmul.f32 %v1068_v16, %v1068_v16  ;;  %v1122_v37 = vmul.f32 %v1069_v20, %v1069_v20 }
 0x17a   : > { %1077 = vst [vmem:[%s2018_s2 + $0x28] sm:$0xff] %v1061_v61  ;;  %v1071_v25 = vld [vmem:[#allocation2 + $0x28] sm:$0xff]  ;;  %v1123_v40 = vmul.f32 %v1070_v21, %v1070_v21  ;;  %v1147_v55 = vshrl.u32 %v1146_v50, 7 }
 0x17b   : > { %v1127_v2 = vadd.f32 %v1126_v62, %v1112_v60  ;;  %v1091_v3 = vadd.f32 %v1090_v63, %v1060_v57  ;;  %1078 = vst [vmem:[%s2018_s2 + $0x30] sm:$0xff] %v1062_v1  ;;  %v1124_v43 = vmul.f32 %v1071_v25, %v1071_v25 }
 0x17c   : > { %1079 = vst [vmem:[%s2018_s2 + $0x38] sm:$0xff] %v1063_v5  ;;  %vm1149_vm0 = vcmp.eq.s32.totalorder %v1147_v55, 1  ;;  %vm1148_vm1 = vcmp.eq.s32.totalorder %v1147_v55, 0 }
 0x17d   : > { %v1128_v7 = vadd.f32 %v1127_v2, %v1113_v0  ;;  %v1092_v8 = vadd.f32 %v1091_v3, %v1061_v61  ;;  %1080 = vst [vmem:[%s2018_s2 + $0x40] sm:$0xff] %v1064_v6 }
 0x17e   : > { %1081 = vst [vmem:[%s2018_s2 + $0x48] sm:$0xff] %v1065_v10 }
 0x17f   : > { %v1129_v12 = vadd.f32 %v1128_v7, %v1114_v4  ;;  %v1093_v13 = vadd.f32 %v1092_v8, %v1062_v1  ;;  %1082 = vst [vmem:[%s2018_s2 + $0x50] sm:$0xff] %v1066_v11 }
 0x180   : > { %1083 = vst [vmem:[%s2018_s2 + $0x58] sm:$0xff] %v1067_v15 }
 0x181   : > { %v1130_v17 = vadd.f32 %v1129_v12, %v1115_v9  ;;  %v1094_v18 = vadd.f32 %v1093_v13, %v1063_v5  ;;  %1084 = vst [vmem:[%s2018_s2 + $0x60] sm:$0xff] %v1068_v16 }
 0x182   : > { %1085 = vst [vmem:[%s2018_s2 + $0x68] sm:$0xff] %v1069_v20 }
 0x183   : > { %v1131_v22 = vadd.f32 %v1130_v17, %v1116_v14  ;;  %v1095_v23 = vadd.f32 %v1094_v18, %v1064_v6  ;;  %1086 = vst [vmem:[%s2018_s2 + $0x70] sm:$0xff] %v1070_v21 }
 0x184   : > { %1087 = vst [vmem:[%s2018_s2 + $0x78] sm:$0xff] %v1071_v25 }
 0x185   : > { %v1132_v26 = vadd.f32 %v1131_v22, %v1117_v19  ;;  %v1096_v27 = vadd.f32 %v1095_v23, %v1065_v10 }
 0x187   : > { %v1133_v29 = vadd.f32 %v1132_v26, %v1118_v24  ;;  %v1097_v30 = vadd.f32 %v1096_v27, %v1066_v11 }
 0x189   : > { %v1134_v32 = vadd.f32 %v1133_v29, %v1119_v28  ;;  %v1098_v33 = vadd.f32 %v1097_v30, %v1067_v15 }
 0x18b   : > { %v1135_v35 = vadd.f32 %v1134_v32, %v1120_v31  ;;  %v1099_v36 = vadd.f32 %v1098_v33, %v1068_v16 }
 0x18d   : > { %v1136_v38 = vadd.f32 %v1135_v35, %v1121_v34  ;;  %v1100_v39 = vadd.f32 %v1099_v36, %v1069_v20 }
 0x18f   : > { %v1137_v41 = vadd.f32 %v1136_v38, %v1122_v37  ;;  %v1101_v42 = vadd.f32 %v1100_v39, %v1070_v21 }
 0x191   : > { %v1138_v44 = vadd.f32 %v1137_v41, %v1123_v40  ;;  %v1102_v45 = vadd.f32 %v1101_v42, %v1071_v25 }
 0x193   : > { %v1103_v46 = vrot.slane %v1102_v45, 4  ;;  %v1139_v47 = vadd.f32 %v1138_v44, %v1124_v43 }
 0x195   : > { %v1104_v48 = vadd.f32 %v1103_v46, %v1102_v45  ;;  %v1140_v49 = vrot.slane %v1139_v47, 4 }
 0x197   : > { %v1105_v51 = vrot.slane %v1104_v48, 2  ;;  %v1141_v52 = vadd.f32 %v1140_v49, %v1139_v47 }
 0x199   : > { %v1106_v53 = vadd.f32 %v1105_v51, %v1104_v48  ;;  %v1142_v54 = vrot.slane %v1141_v52, 2 }
 0x19b   : > { %v1107_v56 = vrot.slane %v1106_v53, 1  ;;  %v1143_v57 = vadd.f32 %v1142_v54, %v1141_v52 }
 0x19d   : > { %v1144_v58 = vrot.slane %v1143_v57, 1  ;;  %v1108_v59 = vadd.f32 %v1107_v56, %v1106_v53 }
 0x19f   : > { %v1145_v60 = vadd.f32 %v1144_v58, %v1143_v57 }
 0x1a1   : > { %v1150_v61 = vsel %vm1149_vm0, %v1145_v60, 0.0 }
 0x1a2   : > { %v1151_v62 = vsel %vm1148_vm1, %v1108_v59, %v1150_v61 }
 0x1a3   : > { %1152 = vst [vmem:[%s2019_s3] sm:$0xff] %v1151_v62 }
 0x1a4 PF: > { %s14_s16 = sadd.s32 1, %s1707_s16   ;;  %s2020_s12 = smov %s1695_s13 }
 0x1a5   : > { %p11_p12 = scmp.ge.s32.totalorder %s14_s16, 4   ;;  %s2021_s13 = smov %s1765_s20 }
 0x1a6   : > { %s2022_s14 = smov %s1703_s15  ;;  %s2023_s15 = smov %s2025_s17 }
 0x1a7   :  { %13 = sbr.rel (!%p11_p12) target bundleno = 3 (0x3), region = 109 }

// kernel: unet_generator_forward.63
= control target key start
LH: loop header
LB: loop body
LE: loop exit
PB: predicated region body
PF: predicated region fallthrough
CT: control target
= control target key end

     0   :  { %s64_s0 = inlined_call_operand.vmem [shape: f32[8,128], index: 0, kind: input, shape index: {}]   ;;  %s65_s1 = inlined_call_operand.vmem [shape: f32[1,128], index: 1, kind: input, shape index: {}]   ;;  %s66_s2 = inlined_call_operand.vmem [shape: f32[1,128], index: 2, kind: input, shape index: {}]   ;;  %s67_s3 = inlined_call_operand.vmem [shape: f32[8,128], index: 3, kind: output, shape index: {}]  }
   0x1   :  { %v14_v0 = vld [vmem:[%s64_s0] sm:$0xff] }
   0x2   :  { %v30_v1 = vld [vmem:[%s65_s1] ss:$0 sm:$0xff] }
   0x3   :  { %v31_v2 = vld [vmem:[%s66_s2] ss:$0 sm:$0xff]  ;;  %v19_v3 = vmul.f32 %v30_v1, %v14_v0 }
   0x5   :  { %v24_v4 = vadd.f32 %v31_v2, %v19_v3 }
   0x7   :  { %25 = vst [vmem:[%s67_s3] sm:$0xff] %v24_v4 }

// kernel: unet_generator_forward.65
= control target key start
LH: loop header
LB: loop body
LE: loop exit
PB: predicated region body
PF: predicated region fallthrough
CT: control target
= control target key end

     0   :  { %s510_s1 = inlined_call_operand.vmem [shape: bf16[128,128], index: 1, kind: input, shape index: {}]   ;;  %s511_s0 = inlined_call_operand.vmem [shape: bf16[128,128], index: 0, kind: input, shape index: {}]   ;;  %s512_s2 = inlined_call_operand.vmem [shape: f32[128,128], index: 2, kind: output, shape index: {}]  }
   0x1   :  { %v374_v0 = vld [vmem:[%s510_s1 + $0x38] sm:$0xff]  ;;  %v373_v1 = vld [vmem:[%s510_s1 + $0x30] sm:$0xff]  ;;  %v372_v2 = vld [vmem:[%s510_s1 + $0x28] sm:$0xff] }
   0x2   :  { %175 = vmatpush.bf16.msra.mxu0 %v374_v0  ;;  %375 = vmatpush.bf16.msra.mxu1 %v374_v0  ;;  %v371_v3 = vld [vmem:[%s510_s1 + $0x20] sm:$0xff]  ;;  %v370_v4 = vld [vmem:[%s510_s1 + $0x18] sm:$0xff]  ;;  %v369_v5 = vld [vmem:[%s510_s1 + $0x10] sm:$0xff] }
   0x3   :  { %376 = vmatpush.bf16.msra.mxu2 %v374_v0  ;;  %377 = vmatpush.bf16.msra.mxu3 %v374_v0  ;;  %v368_v6 = vld [vmem:[%s510_s1 + $0x8] sm:$0xff]  ;;  %v367_v7 = vld [vmem:[%s510_s1] sm:$0xff]  ;;  %v361_v9 = vld [vmem:[%s511_s0 + $0x10] sm:$0xff] }
   0x4   :  { %v359_v8 = vld [vmem:[%s511_s0] sm:$0xff]  ;;  %v365_v11 = vld [vmem:[%s511_s0 + $0x30] sm:$0xff]  ;;  %v360_v12 = vld [vmem:[%s511_s0 + $0x8] sm:$0xff] }
   0x5   :  { %v363_v10 = vld [vmem:[%s511_s0 + $0x20] sm:$0xff]  ;;  %v362_v13 = vld [vmem:[%s511_s0 + $0x18] sm:$0xff]  ;;  %v364_v14 = vld [vmem:[%s511_s0 + $0x28] sm:$0xff] }
   0x6   :  { %176 = vmatpush.bf16.msra.mxu0 %v373_v1  ;;  %378 = vmatpush.bf16.msra.mxu1 %v373_v1  ;;  %v366_v15 = vld [vmem:[%s511_s0 + $0x38] sm:$0xff] }
   0x7   :  { %379 = vmatpush.bf16.msra.mxu2 %v373_v1  ;;  %380 = vmatpush.bf16.msra.mxu3 %v373_v1 }
   0xa   :  { %177 = vmatpush.bf16.msra.mxu0 %v372_v2  ;;  %381 = vmatpush.bf16.msra.mxu1 %v372_v2 }
   0xb   :  { %382 = vmatpush.bf16.msra.mxu2 %v372_v2  ;;  %383 = vmatpush.bf16.msra.mxu3 %v372_v2 }
   0xe   :  { %178 = vmatpush.bf16.msra.mxu0 %v371_v3  ;;  %384 = vmatpush.bf16.msra.mxu1 %v371_v3 }
   0xf   :  { %385 = vmatpush.bf16.msra.mxu2 %v371_v3  ;;  %386 = vmatpush.bf16.msra.mxu3 %v371_v3 }
  0x12   :  { %179 = vmatpush.bf16.msra.mxu0 %v370_v4  ;;  %387 = vmatpush.bf16.msra.mxu1 %v370_v4 }
  0x13   :  { %388 = vmatpush.bf16.msra.mxu2 %v370_v4  ;;  %389 = vmatpush.bf16.msra.mxu3 %v370_v4 }
  0x16   :  { %180 = vmatpush.bf16.msra.mxu0 %v369_v5  ;;  %390 = vmatpush.bf16.msra.mxu1 %v369_v5 }
  0x17   :  { %391 = vmatpush.bf16.msra.mxu2 %v369_v5  ;;  %392 = vmatpush.bf16.msra.mxu3 %v369_v5 }
  0x1a   :  { %181 = vmatpush.bf16.msra.mxu0 %v368_v6  ;;  %393 = vmatpush.bf16.msra.mxu1 %v368_v6 }
  0x1b   :  { %394 = vmatpush.bf16.msra.mxu2 %v368_v6  ;;  %395 = vmatpush.bf16.msra.mxu3 %v368_v6 }
  0x1e   :  { %182 = vmatpush.bf16.msra.mxu0 %v367_v7  ;;  %396 = vmatpush.bf16.msra.mxu1 %v367_v7 }
  0x1f   :  { %397 = vmatpush.bf16.msra.mxu2 %v367_v7  ;;  %398 = vmatpush.bf16.msra.mxu3 %v367_v7 }
  0x21   :  { %183 = vmatmul.bf16.vlgmr.msra.gmra.mxu0 %v359_v8  ;;  %193 = vmatmul.bf16.vlgmr.msra.gmra.mxu1 %v361_v9 }
  0x22   :  { %203 = vmatmul.bf16.vlgmr.msra.gmra.mxu2 %v363_v10  ;;  %213 = vmatmul.bf16.vlgmr.msra.gmra.mxu3 %v365_v11 }
  0x31   :  { %188 = vmatmul.bf16.gmra.mxu0 %v360_v12  ;;  %198 = vmatmul.bf16.gmra.mxu1 %v362_v13 }
  0x32   :  { %208 = vmatmul.bf16.gmra.mxu2 %v364_v14  ;;  %218 = vmatmul.bf16.gmra.mxu3 %v366_v15 }
  0x9e   :  { %v184_v16 = vpop.f32.mrf.mxu0  ;;  %v194_v17 = vpop.f32.mrf.mxu1 }
  0x9f   :  { %275 = vst [vmem:[%s512_s2] sm:$0xff] %v184_v16 }
  0xa0   :  { %279 = vst [vmem:[%s512_s2 + $0x20] sm:$0xff] %v194_v17 }
  0xa5   :  { %v204_v18 = vpop.f32.mrf.mxu2  ;;  %v214_v19 = vpop.f32.mrf.mxu3 }
  0xa6   :  { %283 = vst [vmem:[%s512_s2 + $0x40] sm:$0xff] %v204_v18  ;;  %v186_v20 = vpop.f32.mrf.mxu0  ;;  %v196_v21 = vpop.f32.mrf.mxu1 }
  0xa7   :  { %287 = vst [vmem:[%s512_s2 + $0x60] sm:$0xff] %v214_v19 }
  0xa8   :  { %276 = vst [vmem:[%s512_s2 + $0x8] sm:$0xff] %v186_v20 }
  0xa9   :  { %280 = vst [vmem:[%s512_s2 + $0x28] sm:$0xff] %v196_v21 }
  0xad   :  { %v206_v22 = vpop.f32.mrf.mxu2  ;;  %v216_v23 = vpop.f32.mrf.mxu3 }
  0xae   :  { %284 = vst [vmem:[%s512_s2 + $0x48] sm:$0xff] %v206_v22  ;;  %v189_v24 = vpop.f32.mrf.mxu0  ;;  %v199_v25 = vpop.f32.mrf.mxu1 }
  0xaf   :  { %288 = vst [vmem:[%s512_s2 + $0x68] sm:$0xff] %v216_v23 }
  0xb0   :  { %277 = vst [vmem:[%s512_s2 + $0x10] sm:$0xff] %v189_v24 }
  0xb1   :  { %281 = vst [vmem:[%s512_s2 + $0x30] sm:$0xff] %v199_v25 }
  0xb5   :  { %v209_v26 = vpop.f32.mrf.mxu2  ;;  %v219_v27 = vpop.f32.mrf.mxu3 }
  0xb6   :  { %285 = vst [vmem:[%s512_s2 + $0x50] sm:$0xff] %v209_v26  ;;  %v191_v28 = vpop.f32.mrf.mxu0  ;;  %v201_v29 = vpop.f32.mrf.mxu1 }
  0xb7   :  { %289 = vst [vmem:[%s512_s2 + $0x70] sm:$0xff] %v219_v27 }
  0xb8   :  { %278 = vst [vmem:[%s512_s2 + $0x18] sm:$0xff] %v191_v28 }
  0xb9   :  { %282 = vst [vmem:[%s512_s2 + $0x38] sm:$0xff] %v201_v29 }
  0xbd   :  { %v211_v30 = vpop.f32.mrf.mxu2  ;;  %v221_v31 = vpop.f32.mrf.mxu3 }
  0xbe   :  { %286 = vst [vmem:[%s512_s2 + $0x58] sm:$0xff] %v211_v30 }
  0xbf   :  { %290 = vst [vmem:[%s512_s2 + $0x78] sm:$0xff] %v221_v31 }

// kernel: unet_generator_forward.64
= control target key start
LH: loop header
LB: loop body
LE: loop exit
PB: predicated region body
PF: predicated region fallthrough
CT: control target
= control target key end

     0   :  { %s1575_s9 = smov 0   ;;  %s1577_s10 = smov 0   ;;  %s1858_s0 = inlined_call_operand.vmem [shape: bf16[128,1024], index: 0, kind: input, shape index: {}]   ;;  %s1859_s1 = inlined_call_operand.vmem [shape: bf16[1024,128], index: 1, kind: input, shape index: {}]   ;;  %s1860_s2 = inlined_call_operand.vmem [shape: f32[128,128], index: 2, kind: output, shape index: {}]  }
   0x1   :  { %s1579_s11 = smov 0   ;;  %s1581_s12 = smov 0  }
   0x2   :  { %s1583_s13 = smov 0  }
   0x3 LB: > { %s24_s14 = sadd.s32 1, %s1553_s12  ;;  %p47_p1 = scmp.ne.s32.totalorder %s1545_s10, %s1541_s9  ;;  %s1557_s13 = sphi %s1583_s13, %s12_s13   ;;  %s1553_s12 = sphi %s1581_s12, %s1864_s12   ;;  %s1549_s11 = sphi %s1579_s11, %s1863_s11   ;;  %s1545_s10 = sphi %s1577_s10, %s1862_s10   ;;  %s1541_s9 = sphi %s1575_s9, %s1861_s9  }
   0x4   : > { %p25_p0 = scmp.ge.s32.totalorder %s24_s14, 2  ;;  %p48_p2 = scmp.eq.s32.totalorder %s1557_s13, 0 }
   0x5   : > { %s40_s16 = sadd.s32 1, %s1545_s10  ;;  %p1143_p5 = scmp.ge.s32.totalorder %s1557_s13, 2 }
   0x6   : > { %s1866_s14 = smov (%p25_p0, %s24_s14), 0  ;;  %p49_p3 = por %p48_p2, %p47_p1 }
   0x7   : > { %s36_s15 = ssub.s32 %s1553_s12, %s1866_s14  ;;  %129 = sbr.rel (%p1143_p5) target bundleno = 48 (0x30), region = 16 }
   0x8   : > { %p38_p4 = scmp.eq.s32.totalorder %s36_s15, 0 }
   0xa   : > { %s1610_s17 = scalar_select %p38_p4, %s1545_s10, %s40_s16  }
   0xc   : > { %132 = sbr.rel (!%p49_p3) target bundleno = 48 (0x30), region = 20  ;;  %s134_s18 = sand.u32 (%p49_p3), 1, %s1545_s10  }
   0xd   : > { %s1413_s19 = sshll.u32 (%p49_p3), %s1553_s12, 4  ;;  %s1144_s20 = sshll.u32 (%p49_p3), %s134_s18, 8 }
   0xe   : > { %s1618_s23 = scalar_lea.vmem (%p49_p3), %s1858_s0, %s1413_s19  ;;  %s1623_s24 = scalar_lea.vmem (%p49_p3), [#allocation3], %s1144_s20 }
   0xf   : > { %v155_v0 = vld [vmem:[%s1618_s23] sm:$0xff] (%p49_p3)  ;;  %v157_v1 = vld [vmem:[%s1618_s23 + $0x8] sm:$0xff] (%p49_p3) }
  0x10   : > { %v159_v2 = vld [vmem:[%s1618_s23 + $0x20] sm:$0xff] (%p49_p3)  ;;  %156 = vst [vmem:[%s1623_s24] sm:$0xff] (%p49_p3), %v155_v0  ;;  %v161_v3 = vld [vmem:[%s1618_s23 + $0x28] sm:$0xff] (%p49_p3) }
  0x11   : > { %158 = vst [vmem:[%s1623_s24 + $0x8] sm:$0xff] %v157_v1  ;;  %v163_v4 = vld [vmem:[%s1618_s23 + $0x40] sm:$0xff]  ;;  %v165_v5 = vld [vmem:[%s1618_s23 + $0x48] sm:$0xff] }
  0x12   : > { %160 = vst [vmem:[%s1623_s24 + $0x10] sm:$0xff] %v159_v2  ;;  %v167_v6 = vld [vmem:[%s1618_s23 + $0x60] sm:$0xff]  ;;  %v169_v7 = vld [vmem:[%s1618_s23 + $0x68] sm:$0xff] }
  0x13   : > { %162 = vst [vmem:[%s1623_s24 + $0x18] sm:$0xff] %v161_v3  ;;  %v171_v8 = vld [vmem:[%s1618_s23 + $0x80] sm:$0xff]  ;;  %v173_v9 = vld [vmem:[%s1618_s23 + $0x88] sm:$0xff] }
  0x14   : > { %164 = vst [vmem:[%s1623_s24 + $0x20] sm:$0xff] %v163_v4  ;;  %v175_v10 = vld [vmem:[%s1618_s23 + $0xa0] sm:$0xff]  ;;  %v177_v11 = vld [vmem:[%s1618_s23 + $0xa8] sm:$0xff] }
  0x15   : > { %166 = vst [vmem:[%s1623_s24 + $0x28] sm:$0xff] %v165_v5  ;;  %v179_v12 = vld [vmem:[%s1618_s23 + $0xc0] sm:$0xff]  ;;  %v181_v13 = vld [vmem:[%s1618_s23 + $0xc8] sm:$0xff] }
  0x16   : > { %168 = vst [vmem:[%s1623_s24 + $0x30] sm:$0xff] %v167_v6  ;;  %v183_v14 = vld [vmem:[%s1618_s23 + $0xe0] sm:$0xff]  ;;  %v185_v15 = vld [vmem:[%s1618_s23 + $0xe8] sm:$0xff] }
  0x17   : > { %170 = vst [vmem:[%s1623_s24 + $0x38] sm:$0xff] %v169_v7  ;;  %v187_v16 = vld [vmem:[%s1618_s23 + $0x100] sm:$0xff]  ;;  %v189_v17 = vld [vmem:[%s1618_s23 + $0x108] sm:$0xff] }
  0x18   : > { %172 = vst [vmem:[%s1623_s24 + $0x40] sm:$0xff] %v171_v8  ;;  %v191_v18 = vld [vmem:[%s1618_s23 + $0x120] sm:$0xff]  ;;  %v193_v19 = vld [vmem:[%s1618_s23 + $0x128] sm:$0xff] }
  0x19   : > { %174 = vst [vmem:[%s1623_s24 + $0x48] sm:$0xff] %v173_v9  ;;  %v195_v20 = vld [vmem:[%s1618_s23 + $0x140] sm:$0xff]  ;;  %v197_v21 = vld [vmem:[%s1618_s23 + $0x148] sm:$0xff] }
  0x1a   : > { %176 = vst [vmem:[%s1623_s24 + $0x50] sm:$0xff] %v175_v10  ;;  %v199_v22 = vld [vmem:[%s1618_s23 + $0x160] sm:$0xff]  ;;  %v201_v23 = vld [vmem:[%s1618_s23 + $0x168] sm:$0xff] }
  0x1b   : > { %178 = vst [vmem:[%s1623_s24 + $0x58] sm:$0xff] %v177_v11  ;;  %v203_v24 = vld [vmem:[%s1618_s23 + $0x180] sm:$0xff]  ;;  %v205_v25 = vld [vmem:[%s1618_s23 + $0x188] sm:$0xff] }
  0x1c   : > { %180 = vst [vmem:[%s1623_s24 + $0x60] sm:$0xff] %v179_v12  ;;  %v207_v26 = vld [vmem:[%s1618_s23 + $0x1a0] sm:$0xff]  ;;  %v209_v27 = vld [vmem:[%s1618_s23 + $0x1a8] sm:$0xff] }
  0x1d   : > { %182 = vst [vmem:[%s1623_s24 + $0x68] sm:$0xff] %v181_v13  ;;  %v211_v28 = vld [vmem:[%s1618_s23 + $0x1c0] sm:$0xff]  ;;  %v213_v29 = vld [vmem:[%s1618_s23 + $0x1c8] sm:$0xff] }
  0x1e   : > { %184 = vst [vmem:[%s1623_s24 + $0x70] sm:$0xff] %v183_v14  ;;  %v215_v30 = vld [vmem:[%s1618_s23 + $0x1e0] sm:$0xff]  ;;  %v217_v31 = vld [vmem:[%s1618_s23 + $0x1e8] sm:$0xff] }
  0x1f   : > { %186 = vst [vmem:[%s1623_s24 + $0x78] sm:$0xff] %v185_v15 }
  0x20   : > { %188 = vst [vmem:[%s1623_s24 + $0x80] sm:$0xff] %v187_v16 }
  0x21   : > { %190 = vst [vmem:[%s1623_s24 + $0x88] sm:$0xff] %v189_v17 }
  0x22   : > { %192 = vst [vmem:[%s1623_s24 + $0x90] sm:$0xff] %v191_v18 }
  0x23   : > { %194 = vst [vmem:[%s1623_s24 + $0x98] sm:$0xff] %v193_v19 }
  0x24   : > { %196 = vst [vmem:[%s1623_s24 + $0xa0] sm:$0xff] %v195_v20 }
  0x25   : > { %198 = vst [vmem:[%s1623_s24 + $0xa8] sm:$0xff] %v197_v21 }
  0x26   : > { %200 = vst [vmem:[%s1623_s24 + $0xb0] sm:$0xff] %v199_v22 }
  0x27   : > { %202 = vst [vmem:[%s1623_s24 + $0xb8] sm:$0xff] %v201_v23 }
  0x28   : > { %204 = vst [vmem:[%s1623_s24 + $0xc0] sm:$0xff] %v203_v24 }
  0x29   : > { %206 = vst [vmem:[%s1623_s24 + $0xc8] sm:$0xff] %v205_v25 }
  0x2a   : > { %208 = vst [vmem:[%s1623_s24 + $0xd0] sm:$0xff] %v207_v26 }
  0x2b   : > { %210 = vst [vmem:[%s1623_s24 + $0xd8] sm:$0xff] %v209_v27 }
  0x2c   : > { %212 = vst [vmem:[%s1623_s24 + $0xe0] sm:$0xff] %v211_v28 }
  0x2d   : > { %214 = vst [vmem:[%s1623_s24 + $0xe8] sm:$0xff] %v213_v29 }
  0x2e   : > { %216 = vst [vmem:[%s1623_s24 + $0xf0] sm:$0xff] %v215_v30 }
  0x2f   : > { %218 = vst [vmem:[%s1623_s24 + $0xf8] sm:$0xff] %v217_v31 }
  0x30 PF: > { %p1147_p6 = scmp.ge.s32.totalorder %s1557_s13, 1  ;;  %p235_p7 = scmp.lt.s32.totalorder %s1557_s13, 3 }
  0x32   : > { %p236_p8 = pnand %p1147_p6, %p235_p7 }
  0x33   : > { %s242_s25 = sand.u32 (!%p236_p8), 1, %s1541_s9   ;;  %s1149_s26 = sshll.u32 (!%p236_p8), %s1549_s11, 6 }
  0x34   : > { %239 = sbr.rel (%p236_p8) target bundleno = 389 (0x185), region = 47  ;;  %s1148_s27 = sshll.u32 (!%p236_p8), %s242_s25, 8 }
  0x35   : > { %p277_p9 = scmp.lt.s32.totalorder (!%p236_p8), %s1149_s26, 127  ;;  %s1695_s4 = scalar_lea.vmem (!%p236_p8), [#allocation3], %s1148_s27 }
  0x36   : > { %p1151_p10 = scmp.ne.s32.totalorder (!%p236_p8), %s1549_s11, 0 }
  0x39   : > { %s1868_s26 = smov (!%p277_p9, %s1149_s26), 127  ;;  %297 = sbr.rel (%p1151_p10) target bundleno = 79 (0x4f), region = 55 }
  0x3a   : > { %s1150_s28 = sshll.u32 %s1868_s26, 2 }
  0x3b   : > { %s1693_s3 = scalar_lea.vmem %s1859_s1, %s1150_s28 }
  0x3e   : > { %v1559_v32 = vmov 0.0  }
  0x3f   : > { %298 = vst [vmem:[#allocation2 + $0x30] sm:$0xff] %v1559_v32 }
  0x40   : > { %299 = vst [vmem:[#allocation2] sm:$0xff] %v1559_v32 }
  0x41   : > { %300 = vst [vmem:[#allocation2 + $0x58] sm:$0xff] %v1559_v32 }
  0x42   : > { %301 = vst [vmem:[#allocation2 + $0x18] sm:$0xff] %v1559_v32 }
  0x43   : > { %302 = vst [vmem:[#allocation2 + $0x50] sm:$0xff] %v1559_v32 }
  0x44   : > { %303 = vst [vmem:[#allocation2 + $0x68] sm:$0xff] %v1559_v32 }
  0x45   : > { %304 = vst [vmem:[#allocation2 + $0x8] sm:$0xff] %v1559_v32 }
  0x46   : > { %305 = vst [vmem:[#allocation2 + $0x48] sm:$0xff] %v1559_v32 }
  0x47   : > { %306 = vst [vmem:[#allocation2 + $0x40] sm:$0xff] %v1559_v32 }
  0x48   : > { %307 = vst [vmem:[#allocation2 + $0x20] sm:$0xff] %v1559_v32 }
  0x49   : > { %308 = vst [vmem:[#allocation2 + $0x10] sm:$0xff] %v1559_v32 }
  0x4a   : > { %309 = vst [vmem:[#allocation2 + $0x38] sm:$0xff] %v1559_v32 }
  0x4b   : > { %310 = vst [vmem:[#allocation2 + $0x60] sm:$0xff] %v1559_v32 }
  0x4c   : > { %311 = vst [vmem:[#allocation2 + $0x70] sm:$0xff] %v1559_v32 }
  0x4d   : > { %312 = vst [vmem:[#allocation2 + $0x78] sm:$0xff] %v1559_v32 }
  0x4e   : > { %313 = vst [vmem:[#allocation2 + $0x28] sm:$0xff] %v1559_v32 }
  0x4f PF: > { %v1453_v33 = vld [vmem:[%s1693_s3 + $0x38] sm:$0xff]  ;;  %v1452_v37 = vld [vmem:[%s1693_s3 + $0x30] sm:$0xff]  ;;  %v1451_v41 = vld [vmem:[%s1693_s3 + $0x28] sm:$0xff]  ;;  %p1408_p11 = scmp.ne.s32.totalorder %s1549_s11, 1 }
  0x50   : > { %v1461_v34 = vld [vmem:[%s1693_s3 + $0x78] sm:$0xff]  ;;  %778 = vmatpush.bf16.msra.mxu0 %v1453_v33  ;;  %v1460_v38 = vld [vmem:[%s1693_s3 + $0x70] sm:$0xff]  ;;  %v1459_v42 = vld [vmem:[%s1693_s3 + $0x68] sm:$0xff] }
  0x51   : > { %v1469_v35 = vld [vmem:[%s1693_s3 + $0xb8] sm:$0xff]  ;;  %827 = vmatpush.bf16.msra.mxu1 %v1461_v34  ;;  %v1468_v39 = vld [vmem:[%s1693_s3 + $0xb0] sm:$0xff]  ;;  %v1467_v43 = vld [vmem:[%s1693_s3 + $0xa8] sm:$0xff] }
  0x52   : > { %v1477_v36 = vld [vmem:[%s1693_s3 + $0xf8] sm:$0xff]  ;;  %876 = vmatpush.bf16.msra.mxu2 %v1469_v35  ;;  %v1476_v40 = vld [vmem:[%s1693_s3 + $0xf0] sm:$0xff]  ;;  %v1475_v44 = vld [vmem:[%s1693_s3 + $0xe8] sm:$0xff] }
  0x53   : > { %925 = vmatpush.bf16.msra.mxu3 %v1477_v36  ;;  %v1450_v45 = vld [vmem:[%s1693_s3 + $0x20] sm:$0xff]  ;;  %v1449_v49 = vld [vmem:[%s1693_s3 + $0x18] sm:$0xff]  ;;  %v1448_v53 = vld [vmem:[%s1693_s3 + $0x10] sm:$0xff] }
  0x54   : > { %779 = vmatpush.bf16.msra.mxu0 %v1452_v37  ;;  %v1458_v46 = vld [vmem:[%s1693_s3 + $0x60] sm:$0xff]  ;;  %v1457_v50 = vld [vmem:[%s1693_s3 + $0x58] sm:$0xff]  ;;  %v1456_v54 = vld [vmem:[%s1693_s3 + $0x50] sm:$0xff] }
  0x55   : > { %828 = vmatpush.bf16.msra.mxu1 %v1460_v38  ;;  %v1466_v47 = vld [vmem:[%s1693_s3 + $0xa0] sm:$0xff]  ;;  %v1465_v51 = vld [vmem:[%s1693_s3 + $0x98] sm:$0xff]  ;;  %v1464_v55 = vld [vmem:[%s1693_s3 + $0x90] sm:$0xff] }
  0x56   : > { %877 = vmatpush.bf16.msra.mxu2 %v1468_v39  ;;  %v1474_v48 = vld [vmem:[%s1693_s3 + $0xe0] sm:$0xff]  ;;  %v1473_v52 = vld [vmem:[%s1693_s3 + $0xd8] sm:$0xff]  ;;  %v1472_v56 = vld [vmem:[%s1693_s3 + $0xd0] sm:$0xff] }
  0x57   : > { %926 = vmatpush.bf16.msra.mxu3 %v1476_v40  ;;  %v1447_v57 = vld [vmem:[%s1693_s3 + $0x8] sm:$0xff]  ;;  %v1446_v61 = vld [vmem:[%s1693_s3] sm:$0xff]  ;;  %v1416_v2 = vld [vmem:[%s1695_s4 + $0xc] sm:$0xf0] }
  0x58   : > { %780 = vmatpush.bf16.msra.mxu0 %v1451_v41  ;;  %v1455_v58 = vld [vmem:[%s1693_s3 + $0x48] sm:$0xff]  ;;  %v1454_v62 = vld [vmem:[%s1693_s3 + $0x40] sm:$0xff]  ;;  %v1156_v4 = vld [vmem:[%s1695_s4 + $0x10] sm:$0xf0] }
  0x59   : > { %829 = vmatpush.bf16.msra.mxu1 %v1459_v42  ;;  %v1463_v59 = vld [vmem:[%s1693_s3 + $0x88] sm:$0xff]  ;;  %v1462_v63 = vld [vmem:[%s1693_s3 + $0x80] sm:$0xff]  ;;  %v1417_v6 = vld [vmem:[%s1695_s4 + $0x14] sm:$0xf0] }
  0x5a   : > { %878 = vmatpush.bf16.msra.mxu2 %v1467_v43  ;;  %v1471_v60 = vld [vmem:[%s1693_s3 + $0xc8] sm:$0xff]  ;;  %v1470_v0 = vld [vmem:[%s1693_s3 + $0xc0] sm:$0xff]  ;;  %v1164_v8 = vld [vmem:[%s1695_s4 + $0x18] sm:$0xf0] }
  0x5b   : > { %927 = vmatpush.bf16.msra.mxu3 %v1475_v44  ;;  %v1154_v1 = vld [vmem:[%s1695_s4] sm:$0xf]  ;;  %v1414_v3 = vld [vmem:[%s1695_s4 + $0x4] sm:$0xf]  ;;  %v1162_v5 = vld [vmem:[%s1695_s4 + $0x8] sm:$0xf] }
  0x5c   : > { %781 = vmatpush.bf16.msra.mxu0 %v1450_v45  ;;  %v1415_v7 = vld [vmem:[%s1695_s4 + $0xc] sm:$0xf]  ;;  %v1155_v9 = vor.u32 %v1416_v2, %v1154_v1  ;;  %v1159_v10 = vor.u32 %v1414_v3, %v1156_v4  ;;  %v1163_v11 = vor.u32 %v1417_v6, %v1162_v5  ;;  %v1170_v13 = vld [vmem:[%s1695_s4 + $0x20] sm:$0xf]  ;;  %v1420_v14 = vld [vmem:[%s1695_s4 + $0x2c] sm:$0xf0] }
  0x5d   : > { %830 = vmatpush.bf16.msra.mxu1 %v1458_v46  ;;  %v1167_v12 = vor.u32 %v1415_v7, %v1164_v8  ;;  %v1418_v15 = vld [vmem:[%s1695_s4 + $0x24] sm:$0xf]  ;;  %v1172_v16 = vld [vmem:[%s1695_s4 + $0x30] sm:$0xf0]  ;;  %v1178_v17 = vld [vmem:[%s1695_s4 + $0x28] sm:$0xf]  ;;  %v1171_v21 = vor.u32 %v1420_v14, %v1170_v13 }
  0x5e   : > { %879 = vmatpush.bf16.msra.mxu2 %v1466_v47  ;;  %v1421_v18 = vld [vmem:[%s1695_s4 + $0x34] sm:$0xf0]  ;;  %v1419_v19 = vld [vmem:[%s1695_s4 + $0x2c] sm:$0xf]  ;;  %v1180_v20 = vld [vmem:[%s1695_s4 + $0x38] sm:$0xf0]  ;;  %v1175_v22 = vor.u32 %v1418_v15, %v1172_v16 }
  0x5f   : > { %928 = vmatpush.bf16.msra.mxu3 %v1474_v48  ;;  %v1179_v23 = vor.u32 %v1421_v18, %v1178_v17  ;;  %v1183_v24 = vor.u32 %v1419_v19, %v1180_v20  ;;  %v1186_v25 = vld [vmem:[%s1695_s4 + $0x40] sm:$0xf]  ;;  %v1424_v26 = vld [vmem:[%s1695_s4 + $0x4c] sm:$0xf0]  ;;  %v1422_v27 = vld [vmem:[%s1695_s4 + $0x44] sm:$0xf] }
  0x60   : > { %782 = vmatpush.bf16.msra.mxu0 %v1449_v49  ;;  %v1188_v28 = vld [vmem:[%s1695_s4 + $0x50] sm:$0xf0]  ;;  %v1194_v29 = vld [vmem:[%s1695_s4 + $0x48] sm:$0xf]  ;;  %v1425_v30 = vld [vmem:[%s1695_s4 + $0x54] sm:$0xf0]  ;;  %v1187_v33 = vor.u32 %v1424_v26, %v1186_v25 }
  0x61   : > { %831 = vmatpush.bf16.msra.mxu1 %v1457_v50  ;;  %v1423_v31 = vld [vmem:[%s1695_s4 + $0x4c] sm:$0xf]  ;;  %v1196_v32 = vld [vmem:[%s1695_s4 + $0x58] sm:$0xf0]  ;;  %v1191_v34 = vor.u32 %v1422_v27, %v1188_v28  ;;  %v1195_v35 = vor.u32 %v1425_v30, %v1194_v29  ;;  %v1202_v37 = vld [vmem:[%s1695_s4 + $0x60] sm:$0xf] }
  0x62   : > { %880 = vmatpush.bf16.msra.mxu2 %v1465_v51  ;;  %v1199_v36 = vor.u32 %v1423_v31, %v1196_v32  ;;  %v1428_v38 = vld [vmem:[%s1695_s4 + $0x6c] sm:$0xf0]  ;;  %v1426_v39 = vld [vmem:[%s1695_s4 + $0x64] sm:$0xf]  ;;  %v1204_v40 = vld [vmem:[%s1695_s4 + $0x70] sm:$0xf0] }
  0x63   : > { %929 = vmatpush.bf16.msra.mxu3 %v1473_v52  ;;  %v1210_v41 = vld [vmem:[%s1695_s4 + $0x68] sm:$0xf]  ;;  %v1429_v42 = vld [vmem:[%s1695_s4 + $0x74] sm:$0xf0]  ;;  %v1427_v43 = vld [vmem:[%s1695_s4 + $0x6c] sm:$0xf]  ;;  %v1203_v45 = vor.u32 %v1428_v38, %v1202_v37  ;;  %v1207_v46 = vor.u32 %v1426_v39, %v1204_v40 }
  0x64   : > { %783 = vmatpush.bf16.msra.mxu0 %v1448_v53  ;;  %v1212_v44 = vld [vmem:[%s1695_s4 + $0x78] sm:$0xf0]  ;;  %v1211_v47 = vor.u32 %v1429_v42, %v1210_v41  ;;  %v1218_v49 = vld [vmem:[%s1695_s4 + $0x80] sm:$0xf]  ;;  %v1432_v50 = vld [vmem:[%s1695_s4 + $0x8c] sm:$0xf0] }
  0x65   : > { %832 = vmatpush.bf16.msra.mxu1 %v1456_v54  ;;  %v1215_v48 = vor.u32 %v1427_v43, %v1212_v44  ;;  %v1430_v51 = vld [vmem:[%s1695_s4 + $0x84] sm:$0xf]  ;;  %v1220_v52 = vld [vmem:[%s1695_s4 + $0x90] sm:$0xf0]  ;;  %v1226_v53 = vld [vmem:[%s1695_s4 + $0x88] sm:$0xf] }
  0x66   : > { %881 = vmatpush.bf16.msra.mxu2 %v1464_v55  ;;  %v1433_v54 = vld [vmem:[%s1695_s4 + $0x94] sm:$0xf0]  ;;  %v1431_v55 = vld [vmem:[%s1695_s4 + $0x8c] sm:$0xf]  ;;  %v1242_v1 = vld [vmem:[%s1695_s4 + $0xa8] sm:$0xf] }
  0x67   : > { %930 = vmatpush.bf16.msra.mxu3 %v1472_v56  ;;  %v1228_v56 = vld [vmem:[%s1695_s4 + $0x98] sm:$0xf0]  ;;  %v1437_v2 = vld [vmem:[%s1695_s4 + $0xb4] sm:$0xf0]  ;;  %v1435_v3 = vld [vmem:[%s1695_s4 + $0xac] sm:$0xf] }
  0x68   : > { %784 = vmatpush.bf16.msra.mxu0 %v1447_v57  ;;  %v1219_v57 = vor.u32 %v1432_v50, %v1218_v49  ;;  %v1244_v4 = vld [vmem:[%s1695_s4 + $0xb8] sm:$0xf0]  ;;  %v1243_v7 = vor.u32 %v1437_v2, %v1242_v1  ;;  %v1258_v13 = vld [vmem:[%s1695_s4 + $0xc8] sm:$0xf]  ;;  %v1441_v14 = vld [vmem:[%s1695_s4 + $0xd4] sm:$0xf0] }
  0x69   : > { %833 = vmatpush.bf16.msra.mxu1 %v1455_v58  ;;  %v1223_v58 = vor.u32 %v1430_v51, %v1220_v52  ;;  %v1247_v8 = vor.u32 %v1435_v3, %v1244_v4  ;;  %v1439_v15 = vld [vmem:[%s1695_s4 + $0xcc] sm:$0xf]  ;;  %v1260_v16 = vld [vmem:[%s1695_s4 + $0xd8] sm:$0xf0]  ;;  %v1259_v19 = vor.u32 %v1441_v14, %v1258_v13  ;;  %v1274_v25 = vld [vmem:[%s1695_s4 + $0xe8] sm:$0xf] }
  0x6a   : > { %882 = vmatpush.bf16.msra.mxu2 %v1463_v59  ;;  %v1227_v59 = vor.u32 %v1433_v54, %v1226_v53  ;;  %v1263_v20 = vor.u32 %v1439_v15, %v1260_v16  ;;  %v1445_v26 = vld [vmem:[%s1695_s4 + $0xf4] sm:$0xf0]  ;;  %v1443_v27 = vld [vmem:[%s1695_s4 + $0xec] sm:$0xf]  ;;  %v1276_v28 = vld [vmem:[%s1695_s4 + $0xf8] sm:$0xf0] }
  0x6b   : > { %931 = vmatpush.bf16.msra.mxu3 %v1471_v60  ;;  %v1231_v60 = vor.u32 %v1431_v55, %v1228_v56  ;;  %v1275_v31 = vor.u32 %v1445_v26, %v1274_v25  ;;  %v1279_v32 = vor.u32 %v1443_v27, %v1276_v28  ;;  %v314_v41 = vld [vmem:[#allocation2 + $0x30] sm:$0xff]  ;;  %v315_v50 = vld [vmem:[#allocation2] sm:$0xff]  ;;  %v317_v4 = vld [vmem:[#allocation2 + $0x18] sm:$0xff] }
  0x6c   : > { %785 = vmatpush.bf16.msra.mxu0 %v1446_v61  ;;  %v1234_v61 = vld [vmem:[%s1695_s4 + $0xa0] sm:$0xf]  ;;  %v318_v13 = vld [vmem:[#allocation2 + $0x50] sm:$0xff] }
  0x6d   : > { %834 = vmatpush.bf16.msra.mxu1 %v1454_v62  ;;  %v1436_v62 = vld [vmem:[%s1695_s4 + $0xac] sm:$0xf0] }
  0x6e   : > { %883 = vmatpush.bf16.msra.mxu2 %v1462_v63  ;;  %v1434_v63 = vld [vmem:[%s1695_s4 + $0xa4] sm:$0xf]  ;;  %v1235_v5 = vor.u32 %v1436_v62, %v1234_v61 }
  0x6f   : > { %932 = vmatpush.bf16.msra.mxu3 %v1470_v0  ;;  %786 = vmatmul.bf16.vlgmr.msra.gmra.mxu0 %v1155_v9  ;;  %v1236_v0 = vld [vmem:[%s1695_s4 + $0xb0] sm:$0xf0]  ;;  %v1250_v9 = vld [vmem:[%s1695_s4 + $0xc0] sm:$0xf] }
  0x70   : > { %835 = vmatmul.bf16.vlgmr.msra.gmra.mxu1 %v1159_v10  ;;  %v1239_v6 = vor.u32 %v1434_v63, %v1236_v0  ;;  %v1440_v10 = vld [vmem:[%s1695_s4 + $0xcc] sm:$0xf0] }
  0x71   : > { %884 = vmatmul.bf16.vlgmr.msra.gmra.mxu2 %v1163_v11  ;;  %v1438_v11 = vld [vmem:[%s1695_s4 + $0xc4] sm:$0xf]  ;;  %v1251_v17 = vor.u32 %v1440_v10, %v1250_v9 }
  0x72   : > { %933 = vmatmul.bf16.vlgmr.msra.gmra.mxu3 %v1167_v12  ;;  %v1252_v12 = vld [vmem:[%s1695_s4 + $0xd0] sm:$0xf0] }
  0x73   : > { %v1255_v18 = vor.u32 %v1438_v11, %v1252_v12 }
  0x7f   : > { %791 = vmatmul.bf16.gmra.mxu0 %v1171_v21  ;;  %v1266_v21 = vld [vmem:[%s1695_s4 + $0xe0] sm:$0xf] }
  0x80   : > { %840 = vmatmul.bf16.gmra.mxu1 %v1175_v22  ;;  %v1444_v22 = vld [vmem:[%s1695_s4 + $0xec] sm:$0xf0] }
  0x81   : > { %889 = vmatmul.bf16.gmra.mxu2 %v1179_v23  ;;  %v1442_v23 = vld [vmem:[%s1695_s4 + $0xe4] sm:$0xf]  ;;  %v1267_v29 = vor.u32 %v1444_v22, %v1266_v21  ;;  %v319_v22 = vld [vmem:[#allocation2 + $0x68] sm:$0xff] }
  0x82   : > { %938 = vmatmul.bf16.gmra.mxu3 %v1183_v24  ;;  %v1268_v24 = vld [vmem:[%s1695_s4 + $0xf0] sm:$0xf0] }
  0x83   : > { %v1271_v30 = vor.u32 %v1442_v23, %v1268_v24 }
  0x8f   : > { %796 = vmatmul.bf16.gmra.mxu0 %v1187_v33 }
  0x90   : > { %845 = vmatmul.bf16.gmra.mxu1 %v1191_v34 }
  0x91   : > { %894 = vmatmul.bf16.gmra.mxu2 %v1195_v35 }
  0x92   : > { %943 = vmatmul.bf16.gmra.mxu3 %v1199_v36 }
  0x9f   : > { %801 = vmatmul.bf16.gmra.mxu0 %v1203_v45 }
  0xa0   : > { %850 = vmatmul.bf16.gmra.mxu1 %v1207_v46 }
  0xa1   : > { %899 = vmatmul.bf16.gmra.mxu2 %v1211_v47 }
  0xa2   : > { %948 = vmatmul.bf16.gmra.mxu3 %v1215_v48 }
  0xaf   : > { %806 = vmatmul.bf16.gmra.mxu0 %v1219_v57 }
  0xb0   : > { %855 = vmatmul.bf16.gmra.mxu1 %v1223_v58 }
  0xb1   : > { %904 = vmatmul.bf16.gmra.mxu2 %v1227_v59  ;;  %v316_v59 = vld [vmem:[#allocation2 + $0x58] sm:$0xff] }
  0xb2   : > { %953 = vmatmul.bf16.gmra.mxu3 %v1231_v60 }
  0xbf   : > { %811 = vmatmul.bf16.gmra.mxu0 %v1235_v5 }
  0xc0   : > { %860 = vmatmul.bf16.gmra.mxu1 %v1239_v6 }
  0xc1   : > { %909 = vmatmul.bf16.gmra.mxu2 %v1243_v7 }
  0xc2   : > { %958 = vmatmul.bf16.gmra.mxu3 %v1247_v8 }
  0xcf   : > { %816 = vmatmul.bf16.gmra.mxu0 %v1251_v17 }
  0xd0   : > { %865 = vmatmul.bf16.gmra.mxu1 %v1255_v18 }
  0xd1   : > { %914 = vmatmul.bf16.gmra.mxu2 %v1259_v19 }
  0xd2   : > { %963 = vmatmul.bf16.gmra.mxu3 %v1263_v20 }
  0xdf   : > { %821 = vmatmul.bf16.gmra.mxu0 %v1267_v29 }
  0xe0   : > { %870 = vmatmul.bf16.gmra.mxu1 %v1271_v30 }
  0xe1   : > { %919 = vmatmul.bf16.gmra.mxu2 %v1275_v31  ;;  %v320_v31 = vld [vmem:[#allocation2 + $0x8] sm:$0xff] }
  0xe2   : > { %968 = vmatmul.bf16.gmra.mxu3 %v1279_v32 }
  0xec   : > { %v787_v33 = vpop.f32.mrf.mxu0 }
  0xed   : > { %v836_v34 = vpop.f32.mrf.mxu1 }
  0xee   : > { %v837_v35 = vadd.f32 %v836_v34, %v787_v33 }
  0xf4   : > { %v885_v36 = vpop.f32.mrf.mxu2  ;;  %v789_v39 = vpop.f32.mrf.mxu0 }
  0xf5   : > { %v934_v37 = vpop.f32.mrf.mxu3  ;;  %v886_v38 = vadd.f32 %v885_v36, %v837_v35  ;;  %v838_v40 = vpop.f32.mrf.mxu1 }
  0xf6   : > { %v839_v44 = vadd.f32 %v838_v40, %v789_v39  ;;  %v321_v40 = vld [vmem:[#allocation2 + $0x48] sm:$0xff] }
  0xf7   : > { %v935_v42 = vadd.f32 %v934_v37, %v886_v38 }
  0xf9   : > { %v974_v43 = vadd.f32 %v935_v42, %v314_v41 }
  0xfb   : > { %990 = vst [vmem:[#allocation2 + $0x30] sm:$0xff] %v974_v43 }
  0xfc   : > { %v887_v45 = vpop.f32.mrf.mxu2  ;;  %v792_v48 = vpop.f32.mrf.mxu0 }
  0xfd   : > { %v936_v46 = vpop.f32.mrf.mxu3  ;;  %v888_v47 = vadd.f32 %v887_v45, %v839_v44  ;;  %v841_v49 = vpop.f32.mrf.mxu1 }
  0xfe   : > { %v842_v53 = vadd.f32 %v841_v49, %v792_v48  ;;  %v322_v49 = vld [vmem:[#allocation2 + $0x40] sm:$0xff] }
  0xff   : > { %v937_v51 = vadd.f32 %v936_v46, %v888_v47 }
 0x101   : > { %v975_v52 = vadd.f32 %v937_v51, %v315_v50 }
 0x103   : > { %991 = vst [vmem:[#allocation2] sm:$0xff] %v975_v52 }
 0x104   : > { %v890_v54 = vpop.f32.mrf.mxu2  ;;  %v794_v57 = vpop.f32.mrf.mxu0 }
 0x105   : > { %v939_v55 = vpop.f32.mrf.mxu3  ;;  %v891_v56 = vadd.f32 %v890_v54, %v842_v53  ;;  %v843_v58 = vpop.f32.mrf.mxu1 }
 0x106   : > { %v844_v62 = vadd.f32 %v843_v58, %v794_v57  ;;  %v323_v58 = vld [vmem:[#allocation2 + $0x20] sm:$0xff] }
 0x107   : > { %v940_v60 = vadd.f32 %v939_v55, %v891_v56 }
 0x109   : > { %v976_v61 = vadd.f32 %v940_v60, %v316_v59 }
 0x10b   : > { %992 = vst [vmem:[#allocation2 + $0x58] sm:$0xff] %v976_v61 }
 0x10c   : > { %v892_v63 = vpop.f32.mrf.mxu2  ;;  %v797_v2 = vpop.f32.mrf.mxu0 }
 0x10d   : > { %v941_v0 = vpop.f32.mrf.mxu3  ;;  %v893_v1 = vadd.f32 %v892_v63, %v844_v62  ;;  %v846_v3 = vpop.f32.mrf.mxu1 }
 0x10e   : > { %v847_v7 = vadd.f32 %v846_v3, %v797_v2  ;;  %v324_v3 = vld [vmem:[#allocation2 + $0x10] sm:$0xff] }
 0x10f   : > { %v942_v5 = vadd.f32 %v941_v0, %v893_v1 }
 0x111   : > { %v977_v6 = vadd.f32 %v942_v5, %v317_v4 }
 0x113   : > { %993 = vst [vmem:[#allocation2 + $0x18] sm:$0xff] %v977_v6 }
 0x114   : > { %v895_v8 = vpop.f32.mrf.mxu2  ;;  %v799_v11 = vpop.f32.mrf.mxu0 }
 0x115   : > { %v944_v9 = vpop.f32.mrf.mxu3  ;;  %v896_v10 = vadd.f32 %v895_v8, %v847_v7  ;;  %v848_v12 = vpop.f32.mrf.mxu1 }
 0x116   : > { %v849_v16 = vadd.f32 %v848_v12, %v799_v11  ;;  %v325_v12 = vld [vmem:[#allocation2 + $0x38] sm:$0xff] }
 0x117   : > { %v945_v14 = vadd.f32 %v944_v9, %v896_v10 }
 0x119   : > { %v978_v15 = vadd.f32 %v945_v14, %v318_v13 }
 0x11b   : > { %994 = vst [vmem:[#allocation2 + $0x50] sm:$0xff] %v978_v15 }
 0x11c   : > { %v897_v17 = vpop.f32.mrf.mxu2  ;;  %v802_v20 = vpop.f32.mrf.mxu0 }
 0x11d   : > { %v946_v18 = vpop.f32.mrf.mxu3  ;;  %v898_v19 = vadd.f32 %v897_v17, %v849_v16  ;;  %v851_v21 = vpop.f32.mrf.mxu1 }
 0x11e   : > { %v852_v25 = vadd.f32 %v851_v21, %v802_v20  ;;  %v326_v21 = vld [vmem:[#allocation2 + $0x60] sm:$0xff] }
 0x11f   : > { %v947_v23 = vadd.f32 %v946_v18, %v898_v19 }
 0x121   : > { %v979_v24 = vadd.f32 %v947_v23, %v319_v22 }
 0x123   : > { %995 = vst [vmem:[#allocation2 + $0x68] sm:$0xff] %v979_v24 }
 0x124   : > { %v900_v26 = vpop.f32.mrf.mxu2  ;;  %v804_v29 = vpop.f32.mrf.mxu0 }
 0x125   : > { %v949_v27 = vpop.f32.mrf.mxu3  ;;  %v901_v28 = vadd.f32 %v900_v26, %v852_v25  ;;  %v853_v30 = vpop.f32.mrf.mxu1 }
 0x126   : > { %v854_v34 = vadd.f32 %v853_v30, %v804_v29 }
 0x127   : > { %v950_v32 = vadd.f32 %v949_v27, %v901_v28  ;;  %v327_v28 = vld [vmem:[#allocation2 + $0x70] sm:$0xff] }
 0x129   : > { %v980_v33 = vadd.f32 %v950_v32, %v320_v31 }
 0x12b   : > { %996 = vst [vmem:[#allocation2 + $0x8] sm:$0xff] %v980_v33 }
 0x12c   : > { %v902_v35 = vpop.f32.mrf.mxu2  ;;  %v807_v38 = vpop.f32.mrf.mxu0 }
 0x12d   : > { %v951_v36 = vpop.f32.mrf.mxu3  ;;  %v903_v37 = vadd.f32 %v902_v35, %v854_v34  ;;  %v856_v39 = vpop.f32.mrf.mxu1 }
 0x12e   : > { %v857_v43 = vadd.f32 %v856_v39, %v807_v38 }
 0x12f   : > { %v952_v41 = vadd.f32 %v951_v36, %v903_v37  ;;  %v328_v37 = vld [vmem:[#allocation2 + $0x78] sm:$0xff] }
 0x131   : > { %v981_v42 = vadd.f32 %v952_v41, %v321_v40 }
 0x133   : > { %997 = vst [vmem:[#allocation2 + $0x48] sm:$0xff] %v981_v42 }
 0x134   : > { %v905_v44 = vpop.f32.mrf.mxu2  ;;  %v809_v47 = vpop.f32.mrf.mxu0 }
 0x135   : > { %v954_v45 = vpop.f32.mrf.mxu3  ;;  %v906_v46 = vadd.f32 %v905_v44, %v857_v43  ;;  %v858_v48 = vpop.f32.mrf.mxu1 }
 0x136   : > { %v859_v52 = vadd.f32 %v858_v48, %v809_v47 }
 0x137   : > { %v955_v50 = vadd.f32 %v954_v45, %v906_v46  ;;  %v329_v45 = vld [vmem:[#allocation2 + $0x28] sm:$0xff] }
 0x139   : > { %v982_v51 = vadd.f32 %v955_v50, %v322_v49 }
 0x13b   : > { %998 = vst [vmem:[#allocation2 + $0x40] sm:$0xff] %v982_v51 }
 0x13c   : > { %v907_v53 = vpop.f32.mrf.mxu2  ;;  %v812_v56 = vpop.f32.mrf.mxu0 }
 0x13d   : > { %v956_v54 = vpop.f32.mrf.mxu3  ;;  %v908_v55 = vadd.f32 %v907_v53, %v859_v52  ;;  %v861_v57 = vpop.f32.mrf.mxu1 }
 0x13e   : > { %v862_v61 = vadd.f32 %v861_v57, %v812_v56 }
 0x13f   : > { %v957_v59 = vadd.f32 %v956_v54, %v908_v55 }
 0x141   : > { %v983_v60 = vadd.f32 %v957_v59, %v323_v58 }
 0x143   : > { %999 = vst [vmem:[#allocation2 + $0x20] sm:$0xff] %v983_v60 }
 0x144   : > { %v910_v62 = vpop.f32.mrf.mxu2  ;;  %v814_v1 = vpop.f32.mrf.mxu0 }
 0x145   : > { %v959_v63 = vpop.f32.mrf.mxu3  ;;  %v911_v0 = vadd.f32 %v910_v62, %v862_v61  ;;  %v863_v2 = vpop.f32.mrf.mxu1 }
 0x146   : > { %v864_v6 = vadd.f32 %v863_v2, %v814_v1 }
 0x147   : > { %v960_v4 = vadd.f32 %v959_v63, %v911_v0 }
 0x149   : > { %v984_v5 = vadd.f32 %v960_v4, %v324_v3 }
 0x14b   : > { %1000 = vst [vmem:[#allocation2 + $0x10] sm:$0xff] %v984_v5 }
 0x14c   : > { %v912_v7 = vpop.f32.mrf.mxu2  ;;  %v817_v10 = vpop.f32.mrf.mxu0 }
 0x14d   : > { %v961_v8 = vpop.f32.mrf.mxu3  ;;  %v913_v9 = vadd.f32 %v912_v7, %v864_v6  ;;  %v866_v11 = vpop.f32.mrf.mxu1 }
 0x14e   : > { %v867_v15 = vadd.f32 %v866_v11, %v817_v10 }
 0x14f   : > { %v962_v13 = vadd.f32 %v961_v8, %v913_v9 }
 0x151   : > { %v985_v14 = vadd.f32 %v962_v13, %v325_v12 }
 0x153   : > { %1001 = vst [vmem:[#allocation2 + $0x38] sm:$0xff] %v985_v14 }
 0x154   : > { %v915_v16 = vpop.f32.mrf.mxu2  ;;  %v819_v19 = vpop.f32.mrf.mxu0 }
 0x155   : > { %v964_v17 = vpop.f32.mrf.mxu3  ;;  %v916_v18 = vadd.f32 %v915_v16, %v867_v15  ;;  %v868_v20 = vpop.f32.mrf.mxu1 }
 0x156   : > { %v869_v24 = vadd.f32 %v868_v20, %v819_v19 }
 0x157   : > { %v965_v22 = vadd.f32 %v964_v17, %v916_v18 }
 0x159   : > { %v986_v23 = vadd.f32 %v965_v22, %v326_v21 }
 0x15b   : > { %1002 = vst [vmem:[#allocation2 + $0x60] sm:$0xff] %v986_v23 }
 0x15c   : > { %v917_v25 = vpop.f32.mrf.mxu2  ;;  %v822_v29 = vpop.f32.mrf.mxu0 }
 0x15d   : > { %v966_v26 = vpop.f32.mrf.mxu3  ;;  %v918_v27 = vadd.f32 %v917_v25, %v869_v24  ;;  %v871_v30 = vpop.f32.mrf.mxu1 }
 0x15e   : > { %v872_v33 = vadd.f32 %v871_v30, %v822_v29 }
 0x15f   : > { %v967_v31 = vadd.f32 %v966_v26, %v918_v27 }
 0x161   : > { %v987_v32 = vadd.f32 %v967_v31, %v327_v28 }
 0x163   : > { %1003 = vst [vmem:[#allocation2 + $0x70] sm:$0xff] %v987_v32 }
 0x164   : > { %v920_v34 = vpop.f32.mrf.mxu2  ;;  %v824_v39 = vpop.f32.mrf.mxu0 }
 0x165   : > { %v969_v35 = vpop.f32.mrf.mxu3  ;;  %v921_v36 = vadd.f32 %v920_v34, %v872_v33  ;;  %v873_v40 = vpop.f32.mrf.mxu1 }
 0x166   : > { %v874_v42 = vadd.f32 %v873_v40, %v824_v39 }
 0x167   : > { %v970_v38 = vadd.f32 %v969_v35, %v921_v36 }
 0x169   : > { %v988_v41 = vadd.f32 %v970_v38, %v328_v37 }
 0x16b   : > { %1004 = vst [vmem:[#allocation2 + $0x78] sm:$0xff] %v988_v41 }
 0x16c   : > { %v922_v43 = vpop.f32.mrf.mxu2 }
 0x16d   : > { %v923_v44 = vadd.f32 %v922_v43, %v874_v42  ;;  %v971_v46 = vpop.f32.mrf.mxu3 }
 0x16f   : > { %v972_v47 = vadd.f32 %v971_v46, %v923_v44  ;;  %1009 = sbr.rel (%p1408_p11) target bundleno = 389 (0x185), region = 59 }
 0x171   : > { %v989_v48 = vadd.f32 %v972_v47, %v329_v45 }
 0x173   : > { %1005 = vst [vmem:[#allocation2 + $0x28] sm:$0xff] %v989_v48 }
 0x174   : > { %v1010_v49 = vld [vmem:[#allocation2 + $0x30] sm:$0xff]  ;;  %v1011_v50 = vld [vmem:[#allocation2] sm:$0xff]  ;;  %v1012_v51 = vld [vmem:[#allocation2 + $0x58] sm:$0xff] }
 0x175   : > { %1026 = vst [vmem:[%s1860_s2] sm:$0xff] %v1010_v49  ;;  %v1013_v52 = vld [vmem:[#allocation2 + $0x18] sm:$0xff]  ;;  %v1014_v53 = vld [vmem:[#allocation2 + $0x50] sm:$0xff]  ;;  %v1015_v54 = vld [vmem:[#allocation2 + $0x68] sm:$0xff] }
 0x176   : > { %1027 = vst [vmem:[%s1860_s2 + $0x8] sm:$0xff] %v1011_v50  ;;  %v1016_v55 = vld [vmem:[#allocation2 + $0x8] sm:$0xff]  ;;  %v1018_v57 = vld [vmem:[#allocation2 + $0x40] sm:$0xff]  ;;  %v1020_v59 = vld [vmem:[#allocation2 + $0x10] sm:$0xff] }
 0x177   : > { %1028 = vst [vmem:[%s1860_s2 + $0x10] sm:$0xff] %v1012_v51  ;;  %v1017_v56 = vld [vmem:[#allocation2 + $0x48] sm:$0xff]  ;;  %v1019_v58 = vld [vmem:[#allocation2 + $0x20] sm:$0xff]  ;;  %v1021_v60 = vld [vmem:[#allocation2 + $0x38] sm:$0xff] }
 0x178   : > { %1029 = vst [vmem:[%s1860_s2 + $0x18] sm:$0xff] %v1013_v52  ;;  %v1022_v61 = vld [vmem:[#allocation2 + $0x60] sm:$0xff]  ;;  %v1023_v62 = vld [vmem:[#allocation2 + $0x70] sm:$0xff]  ;;  %v1024_v63 = vld [vmem:[#allocation2 + $0x78] sm:$0xff] }
 0x179   : > { %1030 = vst [vmem:[%s1860_s2 + $0x20] sm:$0xff] %v1014_v53 }
 0x17a   : > { %1031 = vst [vmem:[%s1860_s2 + $0x28] sm:$0xff] %v1015_v54  ;;  %v1025_v0 = vld [vmem:[#allocation2 + $0x28] sm:$0xff] }
 0x17b   : > { %1032 = vst [vmem:[%s1860_s2 + $0x30] sm:$0xff] %v1016_v55 }
 0x17c   : > { %1033 = vst [vmem:[%s1860_s2 + $0x38] sm:$0xff] %v1017_v56 }
 0x17d   : > { %1034 = vst [vmem:[%s1860_s2 + $0x40] sm:$0xff] %v1018_v57 }
 0x17e   : > { %1035 = vst [vmem:[%s1860_s2 + $0x48] sm:$0xff] %v1019_v58 }
 0x17f   : > { %1036 = vst [vmem:[%s1860_s2 + $0x50] sm:$0xff] %v1020_v59 }
 0x180   : > { %1037 = vst [vmem:[%s1860_s2 + $0x58] sm:$0xff] %v1021_v60 }
 0x181   : > { %1038 = vst [vmem:[%s1860_s2 + $0x60] sm:$0xff] %v1022_v61 }
 0x182   : > { %1039 = vst [vmem:[%s1860_s2 + $0x68] sm:$0xff] %v1023_v62 }
 0x183   : > { %1040 = vst [vmem:[%s1860_s2 + $0x70] sm:$0xff] %v1024_v63 }
 0x184   : > { %1041 = vst [vmem:[%s1860_s2 + $0x78] sm:$0xff] %v1025_v0 }
 0x185 PF: > { %s12_s13 = sadd.s32 1, %s1557_s13   ;;  %s1861_s9 = smov %s1545_s10 }
 0x186   : > { %p9_p12 = scmp.ge.s32.totalorder %s12_s13, 4   ;;  %s1862_s10 = smov %s1610_s17 }
 0x187   : > { %s1863_s11 = smov %s1553_s12  ;;  %s1864_s12 = smov %s1866_s14 }
 0x188   :  { %11 = sbr.rel (!%p9_p12) target bundleno = 3 (0x3), region = 97 }

// kernel: unet_generator_forward.106
= control target key start
LH: loop header
LB: loop body
LE: loop exit
PB: predicated region body
PF: predicated region fallthrough
CT: control target
= control target key end

     0   :  { %s1208_s12 = smov 0   ;;  %s1210_s13 = smov 0   ;;  %s1361_s0 = inlined_call_operand.vmem [shape: bf16[2048,128], index: 0, kind: input, shape index: {}]   ;;  %s1362_s1 = inlined_call_operand.vmem [shape: bf16[128,128], index: 1, kind: input, shape index: {}]   ;;  %s1363_s2 = inlined_call_operand.vmem [shape: f32[1,128], index: 2, kind: input, shape index: {}]   ;;  %s1364_s3 = inlined_call_operand.vmem [shape: f32[2048,128], index: 3, kind: output, shape index: {}]  }
   0x1   :  { %s1212_s14 = smov 0  }
   0x2 LB: > { %s32_s15 = sadd.s32 1, %s1182_s13  ;;  %p924_p0 = scmp.ge.s32.totalorder %s1186_s14, 1  ;;  %s1186_s14 = sphi %s1212_s14, %s13_s14   ;;  %s1182_s13 = sphi %s1210_s13, %s1366_s13   ;;  %s1178_s12 = sphi %s1208_s12, %s1365_s12  }
   0x3   : > { %p34_p1 = scmp.ge.s32.totalorder %s32_s15, 8  ;;  %p188_p2 = scmp.lt.s32.totalorder %s1186_s14, 9 }
   0x5   : > { %s1368_s15 = smov (%p34_p1, %s32_s15), 0  ;;  %p189_p3 = pnand %p924_p0, %p188_p2 }
   0x6   : > { %s925_s24 = sshll.u32 (!%p189_p3), %s1178_s12, 5 }
   0x7   : > { %192 = sbr.rel (%p189_p3) target bundleno = 244 (0xf4), region = 32  ;;  %p230_p4 = scmp.lt.s32.totalorder (!%p189_p3), %s925_s24, 255 }
   0xc   : > { %v1050_v0 = vld [vmem:[%s1362_s1 + $0x38] sm:$0xff]  ;;  %v1049_v1 = vld [vmem:[%s1362_s1 + $0x30] sm:$0xff]  ;;  %v1048_v2 = vld [vmem:[%s1362_s1 + $0x28] sm:$0xff]  ;;  %s1370_s24 = smov (!%p230_p4, %s925_s24), 255 }
   0xd   : > { %519 = vmatpush.bf16.msra.mxu0 %v1050_v0  ;;  %1051 = vmatpush.bf16.msra.mxu1 %v1050_v0  ;;  %v1047_v3 = vld [vmem:[%s1362_s1 + $0x20] sm:$0xff]  ;;  %v1046_v4 = vld [vmem:[%s1362_s1 + $0x18] sm:$0xff]  ;;  %v1045_v5 = vld [vmem:[%s1362_s1 + $0x10] sm:$0xff]  ;;  %s926_s4 = sshll.u32 %s1370_s24, 2  ;;  %s928_s12 = sshll.u32 %s1370_s24, 3 }
   0xe   : > { %1052 = vmatpush.bf16.msra.mxu2 %v1050_v0  ;;  %1053 = vmatpush.bf16.msra.mxu3 %v1050_v0  ;;  %v1044_v6 = vld [vmem:[%s1362_s1 + $0x8] sm:$0xff]  ;;  %v1043_v7 = vld [vmem:[%s1362_s1] sm:$0xff]  ;;  %s1259_s9 = scalar_lea.vmem %s1361_s0, %s926_s4  ;;  %s1288_s18 = scalar_lea.vmem %s1364_s3, %s928_s12 }
   0xf   : > { %v1027_v8 = vld [vmem:[%s1259_s9] sm:$0xff]  ;;  %v1028_v12 = vld [vmem:[%s1259_s9 + $0x8] sm:$0xff]  ;;  %v1029_v16 = vld [vmem:[%s1259_s9 + $0x10] sm:$0xff] }
  0x10   : > { %v1031_v9 = vld [vmem:[%s1259_s9 + $0x20] sm:$0xff]  ;;  %v1032_v13 = vld [vmem:[%s1259_s9 + $0x28] sm:$0xff]  ;;  %v1033_v17 = vld [vmem:[%s1259_s9 + $0x30] sm:$0xff] }
  0x11   : > { %520 = vmatpush.bf16.msra.mxu0 %v1049_v1  ;;  %1054 = vmatpush.bf16.msra.mxu1 %v1049_v1  ;;  %v1035_v10 = vld [vmem:[%s1259_s9 + $0x40] sm:$0xff]  ;;  %v1036_v14 = vld [vmem:[%s1259_s9 + $0x48] sm:$0xff]  ;;  %v1037_v18 = vld [vmem:[%s1259_s9 + $0x50] sm:$0xff] }
  0x12   : > { %1055 = vmatpush.bf16.msra.mxu2 %v1049_v1  ;;  %1056 = vmatpush.bf16.msra.mxu3 %v1049_v1  ;;  %v1039_v11 = vld [vmem:[%s1259_s9 + $0x60] sm:$0xff]  ;;  %v1040_v15 = vld [vmem:[%s1259_s9 + $0x68] sm:$0xff]  ;;  %v1041_v19 = vld [vmem:[%s1259_s9 + $0x70] sm:$0xff] }
  0x13   : > { %v1030_v20 = vld [vmem:[%s1259_s9 + $0x18] sm:$0xff]  ;;  %v1280_v24 = vld [vmem:[%s1363_s2] ss:$0 sm:$0xff] }
  0x14   : > { %v1034_v21 = vld [vmem:[%s1259_s9 + $0x38] sm:$0xff] }
  0x15   : > { %521 = vmatpush.bf16.msra.mxu0 %v1048_v2  ;;  %1057 = vmatpush.bf16.msra.mxu1 %v1048_v2  ;;  %v1038_v22 = vld [vmem:[%s1259_s9 + $0x58] sm:$0xff] }
  0x16   : > { %1058 = vmatpush.bf16.msra.mxu2 %v1048_v2  ;;  %1059 = vmatpush.bf16.msra.mxu3 %v1048_v2  ;;  %v1042_v23 = vld [vmem:[%s1259_s9 + $0x78] sm:$0xff] }
  0x19   : > { %522 = vmatpush.bf16.msra.mxu0 %v1047_v3  ;;  %1060 = vmatpush.bf16.msra.mxu1 %v1047_v3 }
  0x1a   : > { %1061 = vmatpush.bf16.msra.mxu2 %v1047_v3  ;;  %1062 = vmatpush.bf16.msra.mxu3 %v1047_v3 }
  0x1d   : > { %523 = vmatpush.bf16.msra.mxu0 %v1046_v4  ;;  %1063 = vmatpush.bf16.msra.mxu1 %v1046_v4 }
  0x1e   : > { %1064 = vmatpush.bf16.msra.mxu2 %v1046_v4  ;;  %1065 = vmatpush.bf16.msra.mxu3 %v1046_v4 }
  0x21   : > { %524 = vmatpush.bf16.msra.mxu0 %v1045_v5  ;;  %1066 = vmatpush.bf16.msra.mxu1 %v1045_v5 }
  0x22   : > { %1067 = vmatpush.bf16.msra.mxu2 %v1045_v5  ;;  %1068 = vmatpush.bf16.msra.mxu3 %v1045_v5 }
  0x25   : > { %525 = vmatpush.bf16.msra.mxu0 %v1044_v6  ;;  %1069 = vmatpush.bf16.msra.mxu1 %v1044_v6 }
  0x26   : > { %1070 = vmatpush.bf16.msra.mxu2 %v1044_v6  ;;  %1071 = vmatpush.bf16.msra.mxu3 %v1044_v6 }
  0x29   : > { %526 = vmatpush.bf16.msra.mxu0 %v1043_v7  ;;  %1072 = vmatpush.bf16.msra.mxu1 %v1043_v7 }
  0x2a   : > { %1073 = vmatpush.bf16.msra.mxu2 %v1043_v7  ;;  %1074 = vmatpush.bf16.msra.mxu3 %v1043_v7 }
  0x2c   : > { %527 = vmatmul.bf16.vlgmr.msra.gmra.mxu0 %v1027_v8  ;;  %547 = vmatmul.bf16.vlgmr.msra.gmra.mxu1 %v1031_v9 }
  0x2d   : > { %567 = vmatmul.bf16.vlgmr.msra.gmra.mxu2 %v1035_v10  ;;  %587 = vmatmul.bf16.vlgmr.msra.gmra.mxu3 %v1039_v11 }
  0x3c   : > { %532 = vmatmul.bf16.gmra.mxu0 %v1028_v12  ;;  %552 = vmatmul.bf16.gmra.mxu1 %v1032_v13 }
  0x3d   : > { %572 = vmatmul.bf16.gmra.mxu2 %v1036_v14  ;;  %592 = vmatmul.bf16.gmra.mxu3 %v1040_v15 }
  0x4c   : > { %537 = vmatmul.bf16.gmra.mxu0 %v1029_v16  ;;  %557 = vmatmul.bf16.gmra.mxu1 %v1033_v17 }
  0x4d   : > { %577 = vmatmul.bf16.gmra.mxu2 %v1037_v18  ;;  %597 = vmatmul.bf16.gmra.mxu3 %v1041_v19 }
  0x5c   : > { %542 = vmatmul.bf16.gmra.mxu0 %v1030_v20  ;;  %562 = vmatmul.bf16.gmra.mxu1 %v1034_v21 }
  0x5d   : > { %582 = vmatmul.bf16.gmra.mxu2 %v1038_v22  ;;  %602 = vmatmul.bf16.gmra.mxu3 %v1042_v23 }
  0xa9   : > { %v528_v25 = vpop.f32.mrf.mxu0  ;;  %v548_v26 = vpop.f32.mrf.mxu1 }
  0xaa   : > { %v711_v27 = vadd.f32 %v1280_v24, %v528_v25  ;;  %v719_v28 = vadd.f32 %v1280_v24, %v548_v26 }
  0xac   : > { %1100 = vtanh.f32 %v711_v27 }
  0xad   : > { %1102 = vtanh.f32 %v719_v28 }
  0xb0   : > { %v568_v29 = vpop.f32.mrf.mxu2  ;;  %v588_v30 = vpop.f32.mrf.mxu3 }
  0xb1   : > { %v727_v31 = vadd.f32 %v1280_v24, %v568_v29  ;;  %v735_v32 = vadd.f32 %v1280_v24, %v588_v30  ;;  %v530_v33 = vpop.f32.mrf.mxu0  ;;  %v550_v34 = vpop.f32.mrf.mxu1 }
  0xb2   : > { %v1101_v35 = vpop.eup %1100  ;;  %v712_v36 = vadd.f32 %v1280_v24, %v530_v33  ;;  %v720_v37 = vadd.f32 %v1280_v24, %v550_v34 }
  0xb3   : > { %v1103_v38 = vpop.eup %1102  ;;  %775 = vst [vmem:[%s1288_s18] sm:$0xff] %v1101_v35  ;;  %1104 = vtanh.f32 %v727_v31 }
  0xb4   : > { %783 = vst [vmem:[%s1288_s18 + $0x40] sm:$0xff] %v1103_v38  ;;  %1106 = vtanh.f32 %v735_v32 }
  0xb5   : > { %1108 = vtanh.f32 %v712_v36 }
  0xb6   : > { %1110 = vtanh.f32 %v720_v37 }
  0xb8   : > { %v570_v39 = vpop.f32.mrf.mxu2  ;;  %v590_v40 = vpop.f32.mrf.mxu3 }
  0xb9   : > { %v1105_v41 = vpop.eup %1104  ;;  %v728_v42 = vadd.f32 %v1280_v24, %v570_v39  ;;  %v736_v43 = vadd.f32 %v1280_v24, %v590_v40  ;;  %v533_v44 = vpop.f32.mrf.mxu0 }
  0xba   : > { %v553_v45 = vpop.f32.mrf.mxu1  ;;  %v1107_v46 = vpop.eup %1106  ;;  %791 = vst [vmem:[%s1288_s18 + $0x80] sm:$0xff] %v1105_v41  ;;  %v713_v47 = vadd.f32 %v1280_v24, %v533_v44 }
  0xbb   : > { %v721_v48 = vadd.f32 %v1280_v24, %v553_v45  ;;  %v1109_v49 = vpop.eup %1108  ;;  %799 = vst [vmem:[%s1288_s18 + $0xc0] sm:$0xff] %v1107_v46  ;;  %1112 = vtanh.f32 %v728_v42 }
  0xbc   : > { %v1111_v50 = vpop.eup %1110  ;;  %776 = vst [vmem:[%s1288_s18 + $0x8] sm:$0xff] %v1109_v49  ;;  %1114 = vtanh.f32 %v736_v43 }
  0xbd   : > { %784 = vst [vmem:[%s1288_s18 + $0x48] sm:$0xff] %v1111_v50  ;;  %1116 = vtanh.f32 %v713_v47 }
  0xbe   : > { %1118 = vtanh.f32 %v721_v48 }
  0xc0   : > { %v573_v51 = vpop.f32.mrf.mxu2  ;;  %v593_v52 = vpop.f32.mrf.mxu3 }
  0xc1   : > { %v1113_v53 = vpop.eup %1112  ;;  %v729_v54 = vadd.f32 %v1280_v24, %v573_v51  ;;  %v737_v55 = vadd.f32 %v1280_v24, %v593_v52  ;;  %v535_v56 = vpop.f32.mrf.mxu0 }
  0xc2   : > { %v555_v57 = vpop.f32.mrf.mxu1  ;;  %v1115_v58 = vpop.eup %1114  ;;  %792 = vst [vmem:[%s1288_s18 + $0x88] sm:$0xff] %v1113_v53  ;;  %v714_v59 = vadd.f32 %v1280_v24, %v535_v56 }
  0xc3   : > { %v722_v60 = vadd.f32 %v1280_v24, %v555_v57  ;;  %v1117_v61 = vpop.eup %1116  ;;  %800 = vst [vmem:[%s1288_s18 + $0xc8] sm:$0xff] %v1115_v58  ;;  %1120 = vtanh.f32 %v729_v54 }
  0xc4   : > { %v1119_v62 = vpop.eup %1118  ;;  %777 = vst [vmem:[%s1288_s18 + $0x10] sm:$0xff] %v1117_v61  ;;  %1122 = vtanh.f32 %v737_v55 }
  0xc5   : > { %785 = vst [vmem:[%s1288_s18 + $0x50] sm:$0xff] %v1119_v62  ;;  %1124 = vtanh.f32 %v714_v59 }
  0xc6   : > { %1126 = vtanh.f32 %v722_v60 }
  0xc8   : > { %v575_v63 = vpop.f32.mrf.mxu2  ;;  %v595_v0 = vpop.f32.mrf.mxu3 }
  0xc9   : > { %v1121_v1 = vpop.eup %1120  ;;  %v730_v2 = vadd.f32 %v1280_v24, %v575_v63  ;;  %v738_v3 = vadd.f32 %v1280_v24, %v595_v0  ;;  %v538_v4 = vpop.f32.mrf.mxu0 }
  0xca   : > { %v558_v5 = vpop.f32.mrf.mxu1  ;;  %v1123_v6 = vpop.eup %1122  ;;  %793 = vst [vmem:[%s1288_s18 + $0x90] sm:$0xff] %v1121_v1  ;;  %v715_v7 = vadd.f32 %v1280_v24, %v538_v4 }
  0xcb   : > { %v723_v8 = vadd.f32 %v1280_v24, %v558_v5  ;;  %v1125_v9 = vpop.eup %1124  ;;  %801 = vst [vmem:[%s1288_s18 + $0xd0] sm:$0xff] %v1123_v6  ;;  %1128 = vtanh.f32 %v730_v2 }
  0xcc   : > { %v1127_v10 = vpop.eup %1126  ;;  %778 = vst [vmem:[%s1288_s18 + $0x18] sm:$0xff] %v1125_v9  ;;  %1130 = vtanh.f32 %v738_v3 }
  0xcd   : > { %786 = vst [vmem:[%s1288_s18 + $0x58] sm:$0xff] %v1127_v10  ;;  %1132 = vtanh.f32 %v715_v7 }
  0xce   : > { %1134 = vtanh.f32 %v723_v8 }
  0xd0   : > { %v578_v11 = vpop.f32.mrf.mxu2  ;;  %v598_v12 = vpop.f32.mrf.mxu3 }
  0xd1   : > { %v1129_v13 = vpop.eup %1128  ;;  %v731_v14 = vadd.f32 %v1280_v24, %v578_v11  ;;  %v739_v15 = vadd.f32 %v1280_v24, %v598_v12  ;;  %v540_v16 = vpop.f32.mrf.mxu0 }
  0xd2   : > { %v560_v17 = vpop.f32.mrf.mxu1  ;;  %v1131_v18 = vpop.eup %1130  ;;  %794 = vst [vmem:[%s1288_s18 + $0x98] sm:$0xff] %v1129_v13  ;;  %v716_v19 = vadd.f32 %v1280_v24, %v540_v16 }
  0xd3   : > { %v724_v20 = vadd.f32 %v1280_v24, %v560_v17  ;;  %v1133_v21 = vpop.eup %1132  ;;  %802 = vst [vmem:[%s1288_s18 + $0xd8] sm:$0xff] %v1131_v18  ;;  %1136 = vtanh.f32 %v731_v14 }
  0xd4   : > { %v1135_v22 = vpop.eup %1134  ;;  %779 = vst [vmem:[%s1288_s18 + $0x20] sm:$0xff] %v1133_v21  ;;  %1138 = vtanh.f32 %v739_v15 }
  0xd5   : > { %787 = vst [vmem:[%s1288_s18 + $0x60] sm:$0xff] %v1135_v22  ;;  %1140 = vtanh.f32 %v716_v19 }
  0xd6   : > { %1142 = vtanh.f32 %v724_v20 }
  0xd8   : > { %v580_v23 = vpop.f32.mrf.mxu2  ;;  %v600_v25 = vpop.f32.mrf.mxu3 }
  0xd9   : > { %v1137_v26 = vpop.eup %1136  ;;  %v732_v27 = vadd.f32 %v1280_v24, %v580_v23  ;;  %v740_v28 = vadd.f32 %v1280_v24, %v600_v25  ;;  %v543_v29 = vpop.f32.mrf.mxu0 }
  0xda   : > { %v563_v30 = vpop.f32.mrf.mxu1  ;;  %v1139_v31 = vpop.eup %1138  ;;  %795 = vst [vmem:[%s1288_s18 + $0xa0] sm:$0xff] %v1137_v26  ;;  %v717_v32 = vadd.f32 %v1280_v24, %v543_v29 }
  0xdb   : > { %v725_v33 = vadd.f32 %v1280_v24, %v563_v30  ;;  %v1141_v34 = vpop.eup %1140  ;;  %803 = vst [vmem:[%s1288_s18 + $0xe0] sm:$0xff] %v1139_v31  ;;  %1144 = vtanh.f32 %v732_v27 }
  0xdc   : > { %v1143_v35 = vpop.eup %1142  ;;  %780 = vst [vmem:[%s1288_s18 + $0x28] sm:$0xff] %v1141_v34  ;;  %1146 = vtanh.f32 %v740_v28 }
  0xdd   : > { %788 = vst [vmem:[%s1288_s18 + $0x68] sm:$0xff] %v1143_v35  ;;  %1148 = vtanh.f32 %v717_v32 }
  0xde   : > { %1150 = vtanh.f32 %v725_v33 }
  0xe0   : > { %v583_v36 = vpop.f32.mrf.mxu2  ;;  %v603_v37 = vpop.f32.mrf.mxu3 }
  0xe1   : > { %v1145_v38 = vpop.eup %1144  ;;  %v733_v39 = vadd.f32 %v1280_v24, %v583_v36  ;;  %v741_v40 = vadd.f32 %v1280_v24, %v603_v37  ;;  %v545_v41 = vpop.f32.mrf.mxu0 }
  0xe2   : > { %v565_v42 = vpop.f32.mrf.mxu1  ;;  %v1147_v43 = vpop.eup %1146  ;;  %796 = vst [vmem:[%s1288_s18 + $0xa8] sm:$0xff] %v1145_v38  ;;  %v718_v44 = vadd.f32 %v1280_v24, %v545_v41 }
  0xe3   : > { %v726_v45 = vadd.f32 %v1280_v24, %v565_v42  ;;  %v1149_v46 = vpop.eup %1148  ;;  %804 = vst [vmem:[%s1288_s18 + $0xe8] sm:$0xff] %v1147_v43  ;;  %1152 = vtanh.f32 %v733_v39 }
  0xe4   : > { %v1151_v47 = vpop.eup %1150  ;;  %781 = vst [vmem:[%s1288_s18 + $0x30] sm:$0xff] %v1149_v46  ;;  %1154 = vtanh.f32 %v741_v40 }
  0xe5   : > { %789 = vst [vmem:[%s1288_s18 + $0x70] sm:$0xff] %v1151_v47  ;;  %1156 = vtanh.f32 %v718_v44 }
  0xe6   : > { %1158 = vtanh.f32 %v726_v45 }
  0xe8   : > { %v585_v48 = vpop.f32.mrf.mxu2  ;;  %v605_v49 = vpop.f32.mrf.mxu3 }
  0xe9   : > { %v1153_v50 = vpop.eup %1152  ;;  %v734_v51 = vadd.f32 %v1280_v24, %v585_v48  ;;  %v742_v52 = vadd.f32 %v1280_v24, %v605_v49 }
  0xea   : > { %v1155_v53 = vpop.eup %1154  ;;  %797 = vst [vmem:[%s1288_s18 + $0xb0] sm:$0xff] %v1153_v50 }
  0xeb   : > { %v1157_v54 = vpop.eup %1156  ;;  %805 = vst [vmem:[%s1288_s18 + $0xf0] sm:$0xff] %v1155_v53  ;;  %1160 = vtanh.f32 %v734_v51 }
  0xec   : > { %v1159_v55 = vpop.eup %1158  ;;  %782 = vst [vmem:[%s1288_s18 + $0x38] sm:$0xff] %v1157_v54  ;;  %1162 = vtanh.f32 %v742_v52 }
  0xed   : > { %790 = vst [vmem:[%s1288_s18 + $0x78] sm:$0xff] %v1159_v55 }
  0xf1   : > { %v1161_v56 = vpop.eup %1160 }
  0xf2   : > { %v1163_v57 = vpop.eup %1162  ;;  %798 = vst [vmem:[%s1288_s18 + $0xb8] sm:$0xff] %v1161_v56 }
  0xf3   : > { %806 = vst [vmem:[%s1288_s18 + $0xf8] sm:$0xff] %v1163_v57 }
  0xf4 PF: > { %s13_s14 = sadd.s32 1, %s1186_s14   ;;  %s1365_s12 = smov %s1182_s13 }
  0xf5   : > { %p10_p5 = scmp.ge.s32.totalorder %s13_s14, 10   ;;  %s1366_s13 = smov %s1368_s15 }
  0xf7   :  { %12 = sbr.rel (!%p10_p5) target bundleno = 2 (0x2), region = 76 }

</bundles_post_ra>
